<compile_context>
chip_gen: v5e
topology: v5e:2x2
jax: 0.10.0
libtpu: 0.0.40
codegen_flags: <defaults>
</compile_context>

<pallas_src>
import jax
import jax.numpy as jnp
from jax import lax
from jax.experimental import pallas as pl
from jax.experimental.pallas import tpu as pltpu


LANE = 128
SUBLANE = 16              # bf16 packs 16 rows per (sublane, lane) tile


def _round_up(x, m):
    return (x + m - 1) // m * m


def _cdiv(a, b):
    return -(-a // b)


def _pad_to(a, shape):
    return jnp.pad(a, [(0, t - s) for s, t in zip(a.shape, shape)])


# ----------------------------------------------------------------------------
# Per-generation VMEM budget / row-tile cap
# ----------------------------------------------------------------------------
_HW_BUDGET = None


def _hw_budget():
    """(vmem_limit_bytes, row_tile_cap); falls back to v7x-safe values."""
    global _HW_BUDGET
    if _HW_BUDGET is None:
        phys = 64 * 1024 * 1024
        try:
            phys = int(getattr(pltpu.get_tpu_info(), "vmem_capacity_bytes", phys))
        except Exception:
            pass
        if phys >= 96 * 1024 * 1024:            # v5e / v6e: 128 MiB physical
            _HW_BUDGET = (96 * 1024 * 1024, 4096)
        else:                                    # v7x: 64 MiB physical per TC
            _HW_BUDGET = (48 * 1024 * 1024, 2048)
    return _HW_BUDGET


def _pick_tm(m, bytes_per_row):
    """Row-tile size: as large as the VMEM budget allows (double-buffered
    input slab kept under ~1/3 of the limit), balanced across tiles, at least
    2 grid steps when possible (v7x has 2 TensorCores), multiple of 16."""
    vmem_limit, cap = _hw_budget()
    max_rows = (vmem_limit // 3) // (2 * bytes_per_row)
    cap = max(SUBLANE, min(cap, max_rows // SUBLANE * SUBLANE))
    m16 = _round_up(m, SUBLANE)
    if m16 <= SUBLANE:
        return SUBLANE
    n_tiles = max(2, _cdiv(m16, cap))
    return _round_up(_cdiv(m16, n_tiles), SUBLANE)


# ----------------------------------------------------------------------------
# Pallas kernels
# ----------------------------------------------------------------------------
def _conv_pool_kernel(x_ref, w_ref, b_ref, o_ref):
    # x_ref: (4, tm, Kp) bf16 -- one im2col slab per 2x2 pool-window position.
    # out = relu(max_q(x_q @ w) + b), stored bf16.
    # Valid because bias is shared per channel and ReLU is monotone:
    #   maxpool(relu(conv + b)) == relu(max_q(conv_q) + b).
    q, tm, kp = x_ref.shape
    x = x_ref[...].reshape(q * tm, kp)                      # tile-aligned collapse
    acc = jnp.dot(x, w_ref[...], preferred_element_type=jnp.float32)
    acc = jnp.max(acc.reshape(q, tm, acc.shape[-1]), axis=0)
    o_ref[...] = jnp.maximum(acc + b_ref[...], 0.0).astype(o_ref.dtype)


def _fc_fused_kernel(x_ref, w1_ref, b1_ref, w2_ref, b2_ref, o_ref):
    # out = relu(relu(x @ w1 + b1) @ w2 + b2)
    h = jnp.dot(x_ref[...], w1_ref[...], preferred_element_type=jnp.float32)
    h = jnp.maximum(h + b1_ref[...], 0.0)
    o = jnp.dot(h.astype(w2_ref.dtype), w2_ref[...],
                preferred_element_type=jnp.float32)
    o_ref[...] = jnp.maximum(o + b2_ref[...], 0.0)


# ----------------------------------------------------------------------------
# Kernel wrappers (gridded over the row dimension)
# ----------------------------------------------------------------------------
def conv_relu_pool(x_stk, w, b):
    """Fused conv(+bias)+ReLU+MaxPool2x2 over pool-grouped im2col patches.

    x_stk: (4, M, Kp) bf16; w: (Kp, Np) bf16; b: (1, Np) f32.
    Returns (M, Np) bf16.
    """
    _, m, kp = x_stk.shape
    n = w.shape[1]
    tm = _pick_tm(m, bytes_per_row=4 * kp * 2)
    mp = _round_up(m, tm)
    if mp != m:
        x_stk = jnp.pad(x_stk, ((0, 0), (0, mp - m), (0, 0)))

    vmem_limit, _ = _hw_budget()
    out = pl.pallas_call(
        _conv_pool_kernel,
        out_shape=jax.ShapeDtypeStruct((mp, n), jnp.bfloat16),
        grid_spec=pltpu.PrefetchScalarGridSpec(
            num_scalar_prefetch=0,
            grid=(mp // tm,),
            in_specs=[pl.BlockSpec((4, tm, kp), lambda i: (0, i, 0)),
                      pl.BlockSpec((kp, n), lambda i: (0, 0)),
                      pl.BlockSpec((1, n), lambda i: (0, 0))],
            out_specs=pl.BlockSpec((tm, n), lambda i: (i, 0)),
        ),
        compiler_params=pltpu.CompilerParams(
            dimension_semantics=("parallel",),
            vmem_limit_bytes=vmem_limit,
        ),
    )(x_stk, w, b)
    return out[:m]


def fc_relu_fc_relu(x, w1, b1, w2, b2):
    """relu(relu(x @ w1 + b1) @ w2 + b2) in one kernel.  x: (M, K1) bf16."""
    m, k1 = x.shape
    n1 = w1.shape[1]
    n2 = w2.shape[1]
    tm = _pick_tm(m, bytes_per_row=k1 * 2)
    mp = _round_up(m, tm)
    if mp != m:
        x = jnp.pad(x, ((0, mp - m), (0, 0)))

    vmem_limit, _ = _hw_budget()
    out = pl.pallas_call(
        _fc_fused_kernel,
        out_shape=jax.ShapeDtypeStruct((mp, n2), jnp.float32),
        grid_spec=pltpu.PrefetchScalarGridSpec(
            num_scalar_prefetch=0,
            grid=(mp // tm,),
            in_specs=[pl.BlockSpec((tm, k1), lambda i: (i, 0)),
                      pl.BlockSpec((k1, n1), lambda i: (0, 0)),
                      pl.BlockSpec((1, n1), lambda i: (0, 0)),
                      pl.BlockSpec((n1, n2), lambda i: (0, 0)),
                      pl.BlockSpec((1, n2), lambda i: (0, 0))],
            out_specs=pl.BlockSpec((tm, n2), lambda i: (i, 0)),
        ),
        compiler_params=pltpu.CompilerParams(
            dimension_semantics=("parallel",),
            vmem_limit_bytes=vmem_limit,
        ),
    )(x, w1, b1, w2, b2)
    return out[:m]


# ----------------------------------------------------------------------------
# Glue: pool-grouped im2col (pure XLA reshuffle, no compute)
# ----------------------------------------------------------------------------
def im2col_pooled(x_nhwc, kh, kw, k_pad):
    """Extract (kh,kw) stride-1 patches grouped by 2x2 max-pool window.

    Returns a (4, B*POH*POW, k_pad) stack; slab q = (qi, qj) holds the im2col
    rows of conv output position (2*poh + qi, 2*pow + qj).  Feature index is
    (i*kw + j)*C + c (matches the conv-weight repack), zero-padded to k_pad.
    """
    B, H, W, C = x_nhwc.shape
    OH, OW = H - kh + 1, W - kw + 1
    POH, POW = OH // 2, OW // 2
    K = kh * kw * C
    slabs = []
    for qi in range(2):
        for qj in range(2):
            cols = []
            for i in range(kh):
                for j in range(kw):
                    r0, c0 = qi + i, qj + j
                    sl = x_nhwc[:, r0:r0 + 2 * POH:2, c0:c0 + 2 * POW:2, :]
                    cols.append(sl)                        # (B, POH, POW, C)
            patches = jnp.stack(cols, axis=3)              # (B, POH, POW, kh*kw, C)
            mat = patches.reshape(B * POH * POW, K)
            if k_pad > K:
                mat = jnp.pad(mat, ((0, 0), (0, k_pad - K)))
            slabs.append(mat)
    return jnp.stack(slabs, axis=0), (B, POH, POW)         # (4, M, k_pad)


# ----------------------------------------------------------------------------
# Parameters: deterministic init (PyTorch layout) + one-time kernel repack
# ----------------------------------------------------------------------------
def init_params(key):
    ks = jax.random.split(key, 8)

    def u(k, shape, fan_in):
        bound = 1.0 / jnp.sqrt(fan_in)
        return jax.random.uniform(k, shape, jnp.float32, -bound, bound)

    return {
        "conv1_w": u(ks[0], (16, 3, 5, 5), 3 * 5 * 5),
        "conv1_b": u(ks[1], (16,), 3 * 5 * 5),
        "conv2_w": u(ks[2], (36, 16, 3, 3), 16 * 3 * 3),
        "conv2_b": u(ks[3], (36,), 16 * 3 * 3),
        "fc1_w": u(ks[4], (128, 36 * 6 * 6), 36 * 6 * 6),   # PyTorch (out, in)
        "fc1_b": u(ks[5], (128,), 36 * 6 * 6),
        "fc2_w": u(ks[6], (10, 128), 128),
        "fc2_b": u(ks[7], (10,), 128),
    }


def prepare_params(params):
    """One-time repack: transpose to (K, N), zero-pad K/N to 128 multiples,
    bake the NCHW flatten into fc1's weight, cast matmul operands to bf16."""
    def conv_w(w_oikk, k_pad, n_pad):
        o, i, kh, kw = w_oikk.shape
        w = jnp.transpose(w_oikk, (2, 3, 1, 0)).reshape(kh * kw * i, o)
        return _pad_to(w, (k_pad, n_pad)).astype(jnp.bfloat16)

    def bias(b, n_pad):
        return _pad_to(b, (n_pad,)).reshape(1, n_pad).astype(jnp.float32)

    # fc1 weight with PyTorch flatten + conv2 channel padding baked in:
    # conv2 kernel output is (B*6*6, 128), rows ordered (b, h, w), lane = c
    # (lanes 36..127 exact zeros).  Reshaping it to (B, 6*6*128) gives feature
    # index f = (h*6 + w)*128 + c; PyTorch fc1 expects f_pt = c*36 + h*6 + w.
    fc1 = params["fc1_w"].reshape(128, 36, 6, 6)                 # (out, c, h, w)
    w3 = jnp.transpose(fc1, (2, 3, 1, 0))                        # (h, w, c, out)
    w3 = jnp.pad(w3, ((0, 0), (0, 0), (0, 128 - 36), (0, 0)))    # c -> 128 lanes
    w3 = w3.reshape(6 * 6 * 128, 128).astype(jnp.bfloat16)       # (4608, 128)

    packed = {
        "w1": conv_w(params["conv1_w"], 128, 128),               # 75x16   -> 128x128
        "b1": bias(params["conv1_b"], 128),
        "w2": conv_w(params["conv2_w"], 256, 128),               # 144x36  -> 256x128
        "b2": bias(params["conv2_b"], 128),
        "w3": w3,                                                # 1296x128 -> 4608x128
        "b3": bias(params["fc1_b"], 128),
        "w4": _pad_to(params["fc2_w"].T, (128, 128)).astype(jnp.bfloat16),
        "b4": bias(params["fc2_b"], 128),
    }
    # Contract: padded weight columns / bias lanes MUST be exactly zero so the
    # sliced conv outputs and the baked flatten see relu(0 + 0) = 0.
    assert bool(jnp.all(packed["w1"][:, 16:] == 0))
    assert bool(jnp.all(packed["b1"][:, 16:] == 0))
    assert bool(jnp.all(packed["w2"][:, 36:] == 0))
    assert bool(jnp.all(packed["b2"][:, 36:] == 0))
    assert bool(jnp.all(packed["w4"][:, 10:] == 0))
    assert bool(jnp.all(packed["b4"][:, 10:] == 0))
    return packed


# ----------------------------------------------------------------------------
# Forward pass (equivalent to CNNNet.forward)
# ----------------------------------------------------------------------------
def cnn_net_forward(pp, x_nchw):
    """x_nchw: (B, 3, 32, 32) float32 -> (B, 10) float32."""
    B = x_nchw.shape[0]
    x = jnp.transpose(x_nchw, (0, 2, 3, 1)).astype(jnp.bfloat16)   # NHWC bf16

    # conv1 (5x5, 3->16) + ReLU + MaxPool(2,2): one fused kernel, bf16 out
    x1, (_, ph1, pw1) = im2col_pooled(x, 5, 5, k_pad=128)          # (4, B*196, 128)
    y1 = conv_relu_pool(x1, pp["w1"], pp["b1"])                    # (B*196, 128) bf16
    y1 = y1[:, :16].reshape(B, ph1, pw1, 16)                       # (B,14,14,16)

    # conv2 (3x3, 16->36) + ReLU + MaxPool(2,2): one fused kernel, bf16 out
    x2, (_, ph2, pw2) = im2col_pooled(y1, 3, 3, k_pad=256)         # (4, B*36, 256)
    y2 = conv_relu_pool(x2, pp["w2"], pp["b2"])                    # (B*36, 128) bf16

    # Flatten: contiguous view only.  The NCHW permutation, the 36->128 lane
    # padding and the bf16 cast are all baked into pp["w3"] at repack time.
    flat = y2.reshape(B, ph2 * pw2 * 128)                          # (B, 4608) bf16

    # fc1 + ReLU + fc2 + ReLU: one fused kernel; slice padded N back to 10
    out = fc_relu_fc_relu(flat, pp["w3"], pp["b3"], pp["w4"], pp["b4"])
    return out[:, :10]


# ----------------------------------------------------------------------------
# Pure-XLA float32 reference (for tolerance validation)
# ----------------------------------------------------------------------------
def reference_forward(params, x_nchw):
    dn = ("NCHW", "OIHW", "NCHW")
    y = lax.conv_general_dilated(x_nchw, params["conv1_w"], (1, 1), "VALID",
                                 dimension_numbers=dn)
    y = jax.nn.relu(y + params["conv1_b"][None, :, None, None])
    y = lax.reduce_window(y, -jnp.inf, lax.max, (1, 1, 2, 2), (1, 1, 2, 2), "VALID")
    y = lax.conv_general_dilated(y, params["conv2_w"], (1, 1), "VALID",
                                 dimension_numbers=dn)
    y = jax.nn.relu(y + params["conv2_b"][None, :, None, None])
    y = lax.reduce_window(y, -jnp.inf, lax.max, (1, 1, 2, 2), (1, 1, 2, 2), "VALID")
    flat = y.reshape(y.shape[0], -1)                               # NCHW flatten
    h = jax.nn.relu(flat @ params["fc1_w"].T + params["fc1_b"])
    return jax.nn.relu(h @ params["fc2_w"].T + params["fc2_b"])


# ----------------------------------------------------------------------------
if __name__ == "__main__":
    key = jax.random.PRNGKey(0)
    k_param, k_x = jax.random.split(key)

    params = init_params(k_param)
    packed = prepare_params(params)        # one-time weight repack (outside jit)

    # Input consistent with the module: fc1 expects 36*6*6 -> 32x32 spatial, 3 ch.
    x = jax.random.normal(k_x, (2, 3, 32, 32), jnp.float32)

    fwd = jax.jit(cnn_net_forward)
    out = jax.block_until_ready(fwd(packed, x))

    assert out.shape == (2, 10), out.shape
    assert out.dtype == jnp.float32
    assert bool(jnp.all(jnp.isfinite(out)))
    assert bool(jnp.all(out >= 0.0))       # final ReLU applied in forward

    # bf16-on-MXU vs f32 reference: expect ~1e-2-level deviation.
    ref = reference_forward(params, x)
    assert bool(jnp.allclose(out, ref, atol=0.1, rtol=0.1)), float(
        jnp.max(jnp.abs(out - ref)))

    print("KERNEL_OK")
</pallas_src>

<mosaic_0001>
module attributes {stable_mosaic.version = 11 : i64} {
  func.func @_conv_pool_kernel(%arg0: i32, %arg1: memref<4x208x128xbf16, #tpu.memory_space<vmem>>, %arg2: memref<128x128xbf16, #tpu.memory_space<vmem>>, %arg3: memref<1x128xf32, #tpu.memory_space<vmem>>, %arg4: memref<208x128xbf16, #tpu.memory_space<vmem>>) attributes {dimension_semantics = [#tpu.dimension_semantics<parallel>], iteration_bounds = array<i64: 2>, scalar_prefetch = 0 : i64, scratch_operands = 0 : i64, tpu.core_type = #tpu.core_type<tc>, window_params = [{transform_indices = @transform_0, window_bounds = array<i64: 4, 208, 128>}, {pipeline_mode = #tpu.pipeline_mode<synchronous>, transform_indices = @transform_1, window_bounds = array<i64: 128, 128>}, {pipeline_mode = #tpu.pipeline_mode<synchronous>, transform_indices = @transform_2, window_bounds = array<i64: 1, 128>}, {transform_indices = @transform_3, window_bounds = array<i64: 208, 128>}]} {
    %c0 = arith.constant 0 : index
    %c0_0 = arith.constant 0 : index
    %c0_1 = arith.constant 0 : index
    %0 = vector.load %arg1[%c0, %c0_0, %c0_1] : memref<4x208x128xbf16, #tpu.memory_space<vmem>>, vector<4x208x128xbf16>
    %1 = vector.shape_cast %0 : vector<4x208x128xbf16> to vector<832x128xbf16>
    %c0_2 = arith.constant 0 : index
    %c0_3 = arith.constant 0 : index
    %2 = vector.load %arg2[%c0_2, %c0_3] : memref<128x128xbf16, #tpu.memory_space<vmem>>, vector<128x128xbf16>
    %cst = arith.constant dense<0.000000e+00> : vector<832x128xf32>
    %3 = tpu.matmul %1, %2, %cst {dimension_numbers = #tpu.dot_dimension_numbers<[1], [0], [0], [1], [0, 0, 1, 1], [], []>} : vector<832x128xbf16>, vector<128x128xbf16>, vector<832x128xf32> -> vector<832x128xf32>
    %4 = vector.shape_cast %3 : vector<832x128xf32> to vector<4x208x128xf32>
    %cst_4 = arith.constant dense<0xFF800000> : vector<208x128xf32>
    %5 = vector.multi_reduction <maximumf>, %4, %cst_4 [0] : vector<4x208x128xf32> to vector<208x128xf32>
    %c0_5 = arith.constant 0 : index
    %c0_6 = arith.constant 0 : index
    %6 = vector.load %arg3[%c0_5, %c0_6] : memref<1x128xf32, #tpu.memory_space<vmem>>, vector<1x128xf32>
    %7 = vector.broadcast %6 : vector<1x128xf32> to vector<208x128xf32>
    %8 = arith.addf %5, %7 : vector<208x128xf32>
    %cst_7 = arith.constant 0.000000e+00 : f32
    %9 = vector.broadcast %cst_7 : f32 to vector<208x128xf32>
    %10 = arith.maximumf %8, %9 : vector<208x128xf32>
    %11 = arith.truncf %10 : vector<208x128xf32> to vector<208x128xbf16>
    %c0_8 = arith.constant 0 : index
    %c0_9 = arith.constant 0 : index
    %12 = vector.load %arg4[%c0_8, %c0_9] : memref<208x128xbf16, #tpu.memory_space<vmem>>, vector<208x128xbf16>
    tpu.vector_store %arg4[%c0_8, %c0_9], %11 {strides = array<i32>} : memref<208x128xbf16, #tpu.memory_space<vmem>>, vector<208x128xbf16>,
    return
  }
  func.func @transform_0(%arg0: i32) -> (i32, i32, i32) {
    %c0_i32 = arith.constant 0 : i32
    %c0_i32_0 = arith.constant 0 : i32
    %c0_i32_1 = arith.constant 0 : i32
    return %c0_i32, %arg0, %c0_i32_0 : i32, i32, i32
  }
  func.func @transform_1(%arg0: i32) -> (i32, i32) {
    %c0_i32 = arith.constant 0 : i32
    %c0_i32_0 = arith.constant 0 : i32
    %c0_i32_1 = arith.constant 0 : i32
    return %c0_i32, %c0_i32_0 : i32, i32
  }
  func.func @transform_2(%arg0: i32) -> (i32, i32) {
    %c0_i32 = arith.constant 0 : i32
    %c0_i32_0 = arith.constant 0 : i32
    %c0_i32_1 = arith.constant 0 : i32
    return %c0_i32, %c0_i32_0 : i32, i32
  }
  func.func @transform_3(%arg0: i32) -> (i32, i32) {
    %c0_i32 = arith.constant 0 : i32
    %c0_i32_0 = arith.constant 0 : i32
    return %arg0, %c0_i32 : i32, i32
  }
}

module attributes {stable_mosaic.version = 11 : i64} {
  func.func @_conv_pool_kernel(%arg0: i32, %arg1: memref<4x48x256xbf16, #tpu.memory_space<vmem>>, %arg2: memref<256x128xbf16, #tpu.memory_space<vmem>>, %arg3: memref<1x128xf32, #tpu.memory_space<vmem>>, %arg4: memref<48x128xbf16, #tpu.memory_space<vmem>>) attributes {dimension_semantics = [#tpu.dimension_semantics<parallel>], iteration_bounds = array<i64: 2>, scalar_prefetch = 0 : i64, scratch_operands = 0 : i64, tpu.core_type = #tpu.core_type<tc>, window_params = [{transform_indices = @transform_0, window_bounds = array<i64: 4, 48, 256>}, {pipeline_mode = #tpu.pipeline_mode<synchronous>, transform_indices = @transform_1, window_bounds = array<i64: 256, 128>}, {pipeline_mode = #tpu.pipeline_mode<synchronous>, transform_indices = @transform_2, window_bounds = array<i64: 1, 128>}, {transform_indices = @transform_3, window_bounds = array<i64: 48, 128>}]} {
    %c0 = arith.constant 0 : index
    %c0_0 = arith.constant 0 : index
    %c0_1 = arith.constant 0 : index
    %0 = vector.load %arg1[%c0, %c0_0, %c0_1] : memref<4x48x256xbf16, #tpu.memory_space<vmem>>, vector<4x48x256xbf16>
    %1 = vector.shape_cast %0 : vector<4x48x256xbf16> to vector<192x256xbf16>
    %c0_2 = arith.constant 0 : index
    %c0_3 = arith.constant 0 : index
    %2 = vector.load %arg2[%c0_2, %c0_3] : memref<256x128xbf16, #tpu.memory_space<vmem>>, vector<256x128xbf16>
    %cst = arith.constant dense<0.000000e+00> : vector<192x128xf32>
    %3 = tpu.matmul %1, %2, %cst {dimension_numbers = #tpu.dot_dimension_numbers<[1], [0], [0], [1], [0, 0, 1, 1], [], []>} : vector<192x256xbf16>, vector<256x128xbf16>, vector<192x128xf32> -> vector<192x128xf32>
    %4 = vector.shape_cast %3 : vector<192x128xf32> to vector<4x48x128xf32>
    %cst_4 = arith.constant dense<0xFF800000> : vector<48x128xf32>
    %5 = vector.multi_reduction <maximumf>, %4, %cst_4 [0] : vector<4x48x128xf32> to vector<48x128xf32>
    %c0_5 = arith.constant 0 : index
    %c0_6 = arith.constant 0 : index
    %6 = vector.load %arg3[%c0_5, %c0_6] : memref<1x128xf32, #tpu.memory_space<vmem>>, vector<1x128xf32>
    %7 = vector.broadcast %6 : vector<1x128xf32> to vector<48x128xf32>
    %8 = arith.addf %5, %7 : vector<48x128xf32>
    %cst_7 = arith.constant 0.000000e+00 : f32
    %9 = vector.broadcast %cst_7 : f32 to vector<48x128xf32>
    %10 = arith.maximumf %8, %9 : vector<48x128xf32>
    %11 = arith.truncf %10 : vector<48x128xf32> to vector<48x128xbf16>
    %c0_8 = arith.constant 0 : index
    %c0_9 = arith.constant 0 : index
    %12 = vector.load %arg4[%c0_8, %c0_9] : memref<48x128xbf16, #tpu.memory_space<vmem>>, vector<48x128xbf16>
    tpu.vector_store %arg4[%c0_8, %c0_9], %11 {strides = array<i32>} : memref<48x128xbf16, #tpu.memory_space<vmem>>, vector<48x128xbf16>,
    return
  }
  func.func @transform_0(%arg0: i32) -> (i32, i32, i32) {
    %c0_i32 = arith.constant 0 : i32
    %c0_i32_0 = arith.constant 0 : i32
    %c0_i32_1 = arith.constant 0 : i32
    return %c0_i32, %arg0, %c0_i32_0 : i32, i32, i32
  }
  func.func @transform_1(%arg0: i32) -> (i32, i32) {
    %c0_i32 = arith.constant 0 : i32
    %c0_i32_0 = arith.constant 0 : i32
    %c0_i32_1 = arith.constant 0 : i32
    return %c0_i32, %c0_i32_0 : i32, i32
  }
  func.func @transform_2(%arg0: i32) -> (i32, i32) {
    %c0_i32 = arith.constant 0 : i32
    %c0_i32_0 = arith.constant 0 : i32
    %c0_i32_1 = arith.constant 0 : i32
    return %c0_i32, %c0_i32_0 : i32, i32
  }
  func.func @transform_3(%arg0: i32) -> (i32, i32) {
    %c0_i32 = arith.constant 0 : i32
    %c0_i32_0 = arith.constant 0 : i32
    return %arg0, %c0_i32 : i32, i32
  }
}

module attributes {stable_mosaic.version = 11 : i64} {
  func.func @_fc_fused_kernel(%arg0: i32, %arg1: memref<16x4608xbf16, #tpu.memory_space<vmem>>, %arg2: memref<4608x128xbf16, #tpu.memory_space<vmem>>, %arg3: memref<1x128xf32, #tpu.memory_space<vmem>>, %arg4: memref<128x128xbf16, #tpu.memory_space<vmem>>, %arg5: memref<1x128xf32, #tpu.memory_space<vmem>>, %arg6: memref<16x128xf32, #tpu.memory_space<vmem>>) attributes {dimension_semantics = [#tpu.dimension_semantics<parallel>], iteration_bounds = array<i64: 1>, scalar_prefetch = 0 : i64, scratch_operands = 0 : i64, tpu.core_type = #tpu.core_type<tc>, window_params = [{transform_indices = @transform_0, window_bounds = array<i64: 16, 4608>}, {pipeline_mode = #tpu.pipeline_mode<synchronous>, transform_indices = @transform_1, window_bounds = array<i64: 4608, 128>}, {pipeline_mode = #tpu.pipeline_mode<synchronous>, transform_indices = @transform_2, window_bounds = array<i64: 1, 128>}, {pipeline_mode = #tpu.pipeline_mode<synchronous>, transform_indices = @transform_3, window_bounds = array<i64: 128, 128>}, {pipeline_mode = #tpu.pipeline_mode<synchronous>, transform_indices = @transform_4, window_bounds = array<i64: 1, 128>}, {transform_indices = @transform_5, window_bounds = array<i64: 16, 128>}]} {
    %c0 = arith.constant 0 : index
    %c0_0 = arith.constant 0 : index
    %0 = vector.load %arg1[%c0, %c0_0] : memref<16x4608xbf16, #tpu.memory_space<vmem>>, vector<16x4608xbf16>
    %c0_1 = arith.constant 0 : index
    %c0_2 = arith.constant 0 : index
    %1 = vector.load %arg2[%c0_1, %c0_2] : memref<4608x128xbf16, #tpu.memory_space<vmem>>, vector<4608x128xbf16>
    %cst = arith.constant dense<0.000000e+00> : vector<16x128xf32>
    %2 = tpu.matmul %0, %1, %cst {dimension_numbers = #tpu.dot_dimension_numbers<[1], [0], [0], [1], [0, 0, 1, 1], [], []>} : vector<16x4608xbf16>, vector<4608x128xbf16>, vector<16x128xf32> -> vector<16x128xf32>
    %c0_3 = arith.constant 0 : index
    %c0_4 = arith.constant 0 : index
    %3 = vector.load %arg3[%c0_3, %c0_4] : memref<1x128xf32, #tpu.memory_space<vmem>>, vector<1x128xf32>
    %4 = vector.broadcast %3 : vector<1x128xf32> to vector<16x128xf32>
    %5 = arith.addf %2, %4 : vector<16x128xf32>
    %cst_5 = arith.constant 0.000000e+00 : f32
    %6 = vector.broadcast %cst_5 : f32 to vector<16x128xf32>
    %7 = arith.maximumf %5, %6 : vector<16x128xf32>
    %8 = arith.truncf %7 : vector<16x128xf32> to vector<16x128xbf16>
    %c0_6 = arith.constant 0 : index
    %c0_7 = arith.constant 0 : index
    %9 = vector.load %arg4[%c0_6, %c0_7] : memref<128x128xbf16, #tpu.memory_space<vmem>>, vector<128x128xbf16>
    %cst_8 = arith.constant dense<0.000000e+00> : vector<16x128xf32>
    %10 = tpu.matmul %8, %9, %cst_8 {dimension_numbers = #tpu.dot_dimension_numbers<[1], [0], [0], [1], [0, 0, 1, 1], [], []>} : vector<16x128xbf16>, vector<128x128xbf16>, vector<16x128xf32> -> vector<16x128xf32>
    %c0_9 = arith.constant 0 : index
    %c0_10 = arith.constant 0 : index
    %11 = vector.load %arg5[%c0_9, %c0_10] : memref<1x128xf32, #tpu.memory_space<vmem>>, vector<1x128xf32>
    %12 = vector.broadcast %11 : vector<1x128xf32> to vector<16x128xf32>
    %13 = arith.addf %10, %12 : vector<16x128xf32>
    %cst_11 = arith.constant 0.000000e+00 : f32
    %14 = vector.broadcast %cst_11 : f32 to vector<16x128xf32>
    %15 = arith.maximumf %13, %14 : vector<16x128xf32>
    %c0_12 = arith.constant 0 : index
    %c0_13 = arith.constant 0 : index
    %16 = vector.load %arg6[%c0_12, %c0_13] : memref<16x128xf32, #tpu.memory_space<vmem>>, vector<16x128xf32>
    tpu.vector_store %arg6[%c0_12, %c0_13], %15 {strides = array<i32>} : memref<16x128xf32, #tpu.memory_space<vmem>>, vector<16x128xf32>,
    return
  }
  func.func @transform_0(%arg0: i32) -> (i32, i32) {
    %c0_i32 = arith.constant 0 : i32
    %c0_i32_0 = arith.constant 0 : i32
    return %arg0, %c0_i32 : i32, i32
  }
  func.func @transform_1(%arg0: i32) -> (i32, i32) {
    %c0_i32 = arith.constant 0 : i32
    %c0_i32_0 = arith.constant 0 : i32
    %c0_i32_1 = arith.constant 0 : i32
    return %c0_i32, %c0_i32_0 : i32, i32
  }
  func.func @transform_2(%arg0: i32) -> (i32, i32) {
    %c0_i32 = arith.constant 0 : i32
    %c0_i32_0 = arith.constant 0 : i32
    %c0_i32_1 = arith.constant 0 : i32
    return %c0_i32, %c0_i32_0 : i32, i32
  }
  func.func @transform_3(%arg0: i32) -> (i32, i32) {
    %c0_i32 = arith.constant 0 : i32
    %c0_i32_0 = arith.constant 0 : i32
    %c0_i32_1 = arith.constant 0 : i32
    return %c0_i32, %c0_i32_0 : i32, i32
  }
  func.func @transform_4(%arg0: i32) -> (i32, i32) {
    %c0_i32 = arith.constant 0 : i32
    %c0_i32_0 = arith.constant 0 : i32
    %c0_i32_1 = arith.constant 0 : i32
    return %c0_i32, %c0_i32_0 : i32, i32
  }
  func.func @transform_5(%arg0: i32) -> (i32, i32) {
    %c0_i32 = arith.constant 0 : i32
    %c0_i32_0 = arith.constant 0 : i32
    return %arg0, %c0_i32 : i32, i32
  }
}

</mosaic_0001>

<bundles_post_ra>
// kernel: cnn_net_forward.3
= control target key start
LH: loop header
LB: loop body
LE: loop exit
PB: predicated region body
PF: predicated region fallthrough
CT: control target
= control target key end

     0   :  { %s2108_s12 = smov 0   ;;  %s2110_s13 = smov 0   ;;  %s2392_s0 = inlined_call_operand.vmem [shape: bf16[4,416,128], index: 0, kind: input, shape index: {}]   ;;  %s2393_s1 = inlined_call_operand.vmem [shape: bf16[128,128], index: 1, kind: input, shape index: {}]   ;;  %s2394_s2 = inlined_call_operand.vmem [shape: f32[1,128], index: 2, kind: input, shape index: {}]   ;;  %s2395_s3 = inlined_call_operand.vmem [shape: bf16[416,128], index: 3, kind: output, shape index: {}]  }
   0x1   :  { %s2112_s14 = smov 0  }
   0x2 LB: > { %s1626_s15 = sadd.s32 4294967295, %s2086_s14   ;;  %s2125_s16 = sadd.s32 1, %s2086_s14   ;;  %s2086_s14 = sphi %s2112_s14, %s2398_s14   ;;  %s2082_s13 = sphi %s2110_s13, %s2397_s13   ;;  %s2078_s12 = sphi %s2108_s12, %s2396_s12  }
   0x3   : > { %s17_s17 = ssub.s32 %s2086_s14, %s2125_s16  ;;  %s20_s18 = sadd.s32 1, %s2082_s13 }
   0x4   : > { %p18_p0 = scmp.eq.s32.totalorder %s17_s17, 0  ;;  %p27_p1 = scmp.ne.s32.totalorder %s2082_s13, %s2078_s12 }
   0x5   : > { %p28_p2 = scmp.eq.s32.totalorder %s2086_s14, 0  ;;  %p1629_p4 = scmp.ge.s32.totalorder %s2086_s14, 2 }
   0x6   : > { %s2134_s19 = scalar_select %p18_p0, %s2082_s13, %s20_s18  }
   0x7   : > { %p29_p3 = por %p28_p2, %p27_p1  ;;  %127 = sbr.rel (%p1629_p4) target bundleno = 69 (0x45), region = 24 }
   0xc   : > { %130 = sbr.rel (!%p29_p3) target bundleno = 69 (0x45), region = 28  ;;  %s132_s20 = sand.u32 (%p29_p3), 1, %s2082_s13  }
   0xd   : > { %s1875_s21 = smul.u32 (%p29_p3), 104, %s2086_s14 }
   0xe   : > { %s2037_s22 = smul.u32 (%p29_p3), 416, %s132_s20 }
   0xf   : > { %s2142_s25 = scalar_lea.vmem (%p29_p3), %s2392_s0, %s1875_s21 }
  0x10   : > { %v154_v0 = vld [vmem:[%s2142_s25] sm:$0xff] (%p29_p3)   ;;  %v158_v1 = vld [vmem:[%s2142_s25 + $0x8] sm:$0xff] (%p29_p3)   ;;  %v162_v2 = vld [vmem:[%s2142_s25 + $0x10] sm:$0xff] (%p29_p3)   ;;  %s2147_s26 = scalar_lea.vmem (%p29_p3), [#allocation2], %s2037_s22 }
  0x11   : > { %155 = vst [vmem:[%s2147_s26] sm:$0xff] %v154_v0   ;;  %v166_v3 = vld [vmem:[%s2142_s25 + $0x18] sm:$0xff]   ;;  %v170_v4 = vld [vmem:[%s2142_s25 + $0x20] sm:$0xff]   ;;  %v174_v5 = vld [vmem:[%s2142_s25 + $0x28] sm:$0xff]  }
  0x12   : > { %159 = vst [vmem:[%s2147_s26 + $0x8] sm:$0xff] %v158_v1   ;;  %v178_v6 = vld [vmem:[%s2142_s25 + $0x30] sm:$0xff]   ;;  %v182_v7 = vld [vmem:[%s2142_s25 + $0x38] sm:$0xff]   ;;  %v186_v8 = vld [vmem:[%s2142_s25 + $0x40] sm:$0xff]  }
  0x13   : > { %163 = vst [vmem:[%s2147_s26 + $0x10] sm:$0xff] %v162_v2   ;;  %v190_v9 = vld [vmem:[%s2142_s25 + $0x48] sm:$0xff]   ;;  %v194_v10 = vld [vmem:[%s2142_s25 + $0x50] sm:$0xff]   ;;  %v198_v11 = vld [vmem:[%s2142_s25 + $0x58] sm:$0xff]  }
  0x14   : > { %167 = vst [vmem:[%s2147_s26 + $0x18] sm:$0xff] %v166_v3   ;;  %v202_v12 = vld [vmem:[%s2142_s25 + $0x60] sm:$0xff]   ;;  %v206_v13 = vld [vmem:[%s2142_s25 + $0xd0] sm:$0xff]   ;;  %v210_v14 = vld [vmem:[%s2142_s25 + $0xd8] sm:$0xff]  }
  0x15   : > { %171 = vst [vmem:[%s2147_s26 + $0x20] sm:$0xff] %v170_v4   ;;  %v214_v15 = vld [vmem:[%s2142_s25 + $0xe0] sm:$0xff]   ;;  %v218_v16 = vld [vmem:[%s2142_s25 + $0xe8] sm:$0xff]   ;;  %v222_v17 = vld [vmem:[%s2142_s25 + $0xf0] sm:$0xff]  }
  0x16   : > { %175 = vst [vmem:[%s2147_s26 + $0x28] sm:$0xff] %v174_v5   ;;  %v226_v18 = vld [vmem:[%s2142_s25 + $0xf8] sm:$0xff]   ;;  %v230_v19 = vld [vmem:[%s2142_s25 + $0x100] sm:$0xff]   ;;  %v234_v20 = vld [vmem:[%s2142_s25 + $0x108] sm:$0xff]  }
  0x17   : > { %179 = vst [vmem:[%s2147_s26 + $0x30] sm:$0xff] %v178_v6   ;;  %v238_v21 = vld [vmem:[%s2142_s25 + $0x110] sm:$0xff]   ;;  %v242_v22 = vld [vmem:[%s2142_s25 + $0x118] sm:$0xff]   ;;  %v246_v23 = vld [vmem:[%s2142_s25 + $0x120] sm:$0xff]  }
  0x18   : > { %183 = vst [vmem:[%s2147_s26 + $0x38] sm:$0xff] %v182_v7   ;;  %v250_v24 = vld [vmem:[%s2142_s25 + $0x128] sm:$0xff]   ;;  %v254_v25 = vld [vmem:[%s2142_s25 + $0x130] sm:$0xff]   ;;  %v258_v26 = vld [vmem:[%s2142_s25 + $0x1a0] sm:$0xff]  }
  0x19   : > { %187 = vst [vmem:[%s2147_s26 + $0x40] sm:$0xff] %v186_v8   ;;  %v262_v27 = vld [vmem:[%s2142_s25 + $0x1a8] sm:$0xff]   ;;  %v266_v28 = vld [vmem:[%s2142_s25 + $0x1b0] sm:$0xff]   ;;  %v270_v29 = vld [vmem:[%s2142_s25 + $0x1b8] sm:$0xff]  }
  0x1a   : > { %191 = vst [vmem:[%s2147_s26 + $0x48] sm:$0xff] %v190_v9   ;;  %v274_v30 = vld [vmem:[%s2142_s25 + $0x1c0] sm:$0xff]   ;;  %v278_v31 = vld [vmem:[%s2142_s25 + $0x1c8] sm:$0xff]   ;;  %v282_v32 = vld [vmem:[%s2142_s25 + $0x1d0] sm:$0xff]  }
  0x1b   : > { %195 = vst [vmem:[%s2147_s26 + $0x50] sm:$0xff] %v194_v10   ;;  %v286_v33 = vld [vmem:[%s2142_s25 + $0x1d8] sm:$0xff]   ;;  %v290_v34 = vld [vmem:[%s2142_s25 + $0x1e0] sm:$0xff]   ;;  %v294_v35 = vld [vmem:[%s2142_s25 + $0x1e8] sm:$0xff]  }
  0x1c   : > { %199 = vst [vmem:[%s2147_s26 + $0x58] sm:$0xff] %v198_v11   ;;  %v298_v36 = vld [vmem:[%s2142_s25 + $0x1f0] sm:$0xff]   ;;  %v302_v37 = vld [vmem:[%s2142_s25 + $0x1f8] sm:$0xff]   ;;  %v306_v38 = vld [vmem:[%s2142_s25 + $0x200] sm:$0xff]  }
  0x1d   : > { %203 = vst [vmem:[%s2147_s26 + $0x60] sm:$0xff] %v202_v12   ;;  %v310_v39 = vld [vmem:[%s2142_s25 + $0x270] sm:$0xff]   ;;  %v314_v40 = vld [vmem:[%s2142_s25 + $0x278] sm:$0xff]   ;;  %v318_v41 = vld [vmem:[%s2142_s25 + $0x280] sm:$0xff]  }
  0x1e   : > { %207 = vst [vmem:[%s2147_s26 + $0x68] sm:$0xff] %v206_v13   ;;  %v322_v42 = vld [vmem:[%s2142_s25 + $0x288] sm:$0xff]   ;;  %v326_v43 = vld [vmem:[%s2142_s25 + $0x290] sm:$0xff]   ;;  %v330_v44 = vld [vmem:[%s2142_s25 + $0x298] sm:$0xff]  }
  0x1f   : > { %211 = vst [vmem:[%s2147_s26 + $0x70] sm:$0xff] %v210_v14   ;;  %v334_v45 = vld [vmem:[%s2142_s25 + $0x2a0] sm:$0xff]   ;;  %v338_v46 = vld [vmem:[%s2142_s25 + $0x2a8] sm:$0xff]   ;;  %v342_v47 = vld [vmem:[%s2142_s25 + $0x2b0] sm:$0xff]  }
  0x20   : > { %215 = vst [vmem:[%s2147_s26 + $0x78] sm:$0xff] %v214_v15   ;;  %v346_v48 = vld [vmem:[%s2142_s25 + $0x2b8] sm:$0xff]   ;;  %v350_v49 = vld [vmem:[%s2142_s25 + $0x2c0] sm:$0xff]   ;;  %v354_v50 = vld [vmem:[%s2142_s25 + $0x2c8] sm:$0xff]  }
  0x21   : > { %219 = vst [vmem:[%s2147_s26 + $0x80] sm:$0xff] %v218_v16   ;;  %v358_v51 = vld [vmem:[%s2142_s25 + $0x2d0] sm:$0xff]  }
  0x22   : > { %223 = vst [vmem:[%s2147_s26 + $0x88] sm:$0xff] %v222_v17  }
  0x23   : > { %227 = vst [vmem:[%s2147_s26 + $0x90] sm:$0xff] %v226_v18  }
  0x24   : > { %231 = vst [vmem:[%s2147_s26 + $0x98] sm:$0xff] %v230_v19  }
  0x25   : > { %235 = vst [vmem:[%s2147_s26 + $0xa0] sm:$0xff] %v234_v20  }
  0x26   : > { %239 = vst [vmem:[%s2147_s26 + $0xa8] sm:$0xff] %v238_v21  }
  0x27   : > { %243 = vst [vmem:[%s2147_s26 + $0xb0] sm:$0xff] %v242_v22  }
  0x28   : > { %247 = vst [vmem:[%s2147_s26 + $0xb8] sm:$0xff] %v246_v23  }
  0x29   : > { %251 = vst [vmem:[%s2147_s26 + $0xc0] sm:$0xff] %v250_v24  }
  0x2a   : > { %255 = vst [vmem:[%s2147_s26 + $0xc8] sm:$0xff] %v254_v25  }
  0x2b   : > { %259 = vst [vmem:[%s2147_s26 + $0xd0] sm:$0xff] %v258_v26  }
  0x2c   : > { %263 = vst [vmem:[%s2147_s26 + $0xd8] sm:$0xff] %v262_v27  }
  0x2d   : > { %267 = vst [vmem:[%s2147_s26 + $0xe0] sm:$0xff] %v266_v28  }
  0x2e   : > { %271 = vst [vmem:[%s2147_s26 + $0xe8] sm:$0xff] %v270_v29  }
  0x2f   : > { %275 = vst [vmem:[%s2147_s26 + $0xf0] sm:$0xff] %v274_v30  }
  0x30   : > { %279 = vst [vmem:[%s2147_s26 + $0xf8] sm:$0xff] %v278_v31  }
  0x31   : > { %283 = vst [vmem:[%s2147_s26 + $0x100] sm:$0xff] %v282_v32  }
  0x32   : > { %287 = vst [vmem:[%s2147_s26 + $0x108] sm:$0xff] %v286_v33  }
  0x33   : > { %291 = vst [vmem:[%s2147_s26 + $0x110] sm:$0xff] %v290_v34  }
  0x34   : > { %295 = vst [vmem:[%s2147_s26 + $0x118] sm:$0xff] %v294_v35  }
  0x35   : > { %299 = vst [vmem:[%s2147_s26 + $0x120] sm:$0xff] %v298_v36  }
  0x36   : > { %303 = vst [vmem:[%s2147_s26 + $0x128] sm:$0xff] %v302_v37  }
  0x37   : > { %307 = vst [vmem:[%s2147_s26 + $0x130] sm:$0xff] %v306_v38  }
  0x38   : > { %311 = vst [vmem:[%s2147_s26 + $0x138] sm:$0xff] %v310_v39  }
  0x39   : > { %315 = vst [vmem:[%s2147_s26 + $0x140] sm:$0xff] %v314_v40  }
  0x3a   : > { %319 = vst [vmem:[%s2147_s26 + $0x148] sm:$0xff] %v318_v41  }
  0x3b   : > { %323 = vst [vmem:[%s2147_s26 + $0x150] sm:$0xff] %v322_v42  }
  0x3c   : > { %327 = vst [vmem:[%s2147_s26 + $0x158] sm:$0xff] %v326_v43  }
  0x3d   : > { %331 = vst [vmem:[%s2147_s26 + $0x160] sm:$0xff] %v330_v44  }
  0x3e   : > { %335 = vst [vmem:[%s2147_s26 + $0x168] sm:$0xff] %v334_v45  }
  0x3f   : > { %339 = vst [vmem:[%s2147_s26 + $0x170] sm:$0xff] %v338_v46  }
  0x40   : > { %343 = vst [vmem:[%s2147_s26 + $0x178] sm:$0xff] %v342_v47  }
  0x41   : > { %347 = vst [vmem:[%s2147_s26 + $0x180] sm:$0xff] %v346_v48  }
  0x42   : > { %351 = vst [vmem:[%s2147_s26 + $0x188] sm:$0xff] %v350_v49  }
  0x43   : > { %355 = vst [vmem:[%s2147_s26 + $0x190] sm:$0xff] %v354_v50  }
  0x44   : > { %359 = vst [vmem:[%s2147_s26 + $0x198] sm:$0xff] %v358_v51  }
  0x45 PF: > { %p1631_p5 = scmp.ge.s32.totalorder %s2086_s14, 1  ;;  %p592_p6 = scmp.lt.s32.totalorder %s2086_s14, 3 }
  0x47   : > { %p593_p7 = pnand %p1631_p5, %p592_p6 }
  0x48   : > { %s599_s17 = sand.u32 (!%p593_p7), 1, %s2078_s12   ;;  %s623_s12 = smul.u32 (!%p593_p7), 26, %s1626_s15 }
  0x49   : > { %596 = sbr.rel (%p593_p7) target bundleno = 454 (0x1c6), region = 69 }
  0x4a   : > { %s2038_s21 = smul.u32 (!%p593_p7), 416, %s599_s17  ;;  %p624_p8 = scmp.lt.s32.totalorder (!%p593_p7), %s623_s12, 51 }
  0x4c   : > { %s2277_s24 = scalar_lea.vmem (!%p593_p7), [#allocation2], %s2038_s21 }
  0x4e   : > { %v1935_v52 = vld [vmem:[%s2393_s1 + $0x38] sm:$0xff]  ;;  %v1934_v53 = vld [vmem:[%s2393_s1 + $0x30] sm:$0xff]  ;;  %v1933_v54 = vld [vmem:[%s2393_s1 + $0x28] sm:$0xff]  ;;  %s2400_s12 = smov (!%p624_p8, %s623_s12), 51 }
  0x4f   : > { %1109 = vmatpush.bf16.msra.mxu0 %v1935_v52  ;;  %2013 = vmatpush.bf16.msra.mxu1 %v1935_v52  ;;  %v1932_v55 = vld [vmem:[%s2393_s1 + $0x20] sm:$0xff]  ;;  %v1931_v56 = vld [vmem:[%s2393_s1 + $0x18] sm:$0xff]  ;;  %v1930_v57 = vld [vmem:[%s2393_s1 + $0x10] sm:$0xff]  ;;  %s1632_s14 = sshll.u32 %s2400_s12, 2 }
  0x50   : > { %2014 = vmatpush.bf16.msra.mxu2 %v1935_v52  ;;  %2015 = vmatpush.bf16.msra.mxu3 %v1935_v52  ;;  %v1929_v58 = vld [vmem:[%s2393_s1 + $0x8] sm:$0xff]  ;;  %v1928_v59 = vld [vmem:[%s2393_s1] sm:$0xff]  ;;  %v1902_v62 = vld [vmem:[%s2277_s24 + $0xd0] sm:$0xff]  ;;  %s2331_s28 = scalar_lea.vmem %s2395_s3, %s1632_s14 }
  0x51   : > { %v1876_v60 = vld [vmem:[%s2277_s24] sm:$0xff]  ;;  %v1889_v61 = vld [vmem:[%s2277_s24 + $0x68] sm:$0xff]  ;;  %v1915_v63 = vld [vmem:[%s2277_s24 + $0x138] sm:$0xff] }
  0x52   : > { %v1877_v0 = vld [vmem:[%s2277_s24 + $0x8] sm:$0xff]  ;;  %v1890_v1 = vld [vmem:[%s2277_s24 + $0x70] sm:$0xff]  ;;  %v1903_v2 = vld [vmem:[%s2277_s24 + $0xd8] sm:$0xff] }
  0x53   : > { %1110 = vmatpush.bf16.msra.mxu0 %v1934_v53  ;;  %2016 = vmatpush.bf16.msra.mxu1 %v1934_v53  ;;  %v1916_v3 = vld [vmem:[%s2277_s24 + $0x140] sm:$0xff]  ;;  %v1878_v4 = vld [vmem:[%s2277_s24 + $0x10] sm:$0xff]  ;;  %v1891_v5 = vld [vmem:[%s2277_s24 + $0x78] sm:$0xff] }
  0x54   : > { %2017 = vmatpush.bf16.msra.mxu2 %v1934_v53  ;;  %2018 = vmatpush.bf16.msra.mxu3 %v1934_v53  ;;  %v1904_v6 = vld [vmem:[%s2277_s24 + $0xe0] sm:$0xff]  ;;  %v1917_v7 = vld [vmem:[%s2277_s24 + $0x148] sm:$0xff]  ;;  %v1879_v8 = vld [vmem:[%s2277_s24 + $0x18] sm:$0xff] }
  0x55   : > { %v1892_v9 = vld [vmem:[%s2277_s24 + $0x80] sm:$0xff]  ;;  %v1905_v10 = vld [vmem:[%s2277_s24 + $0xe8] sm:$0xff]  ;;  %v1918_v11 = vld [vmem:[%s2277_s24 + $0x150] sm:$0xff] }
  0x56   : > { %v1880_v12 = vld [vmem:[%s2277_s24 + $0x20] sm:$0xff]  ;;  %v1893_v13 = vld [vmem:[%s2277_s24 + $0x88] sm:$0xff]  ;;  %v1906_v14 = vld [vmem:[%s2277_s24 + $0xf0] sm:$0xff] }
  0x57   : > { %1111 = vmatpush.bf16.msra.mxu0 %v1933_v54  ;;  %2019 = vmatpush.bf16.msra.mxu1 %v1933_v54  ;;  %v1919_v15 = vld [vmem:[%s2277_s24 + $0x158] sm:$0xff]  ;;  %v1881_v16 = vld [vmem:[%s2277_s24 + $0x28] sm:$0xff]  ;;  %v1894_v17 = vld [vmem:[%s2277_s24 + $0x90] sm:$0xff] }
  0x58   : > { %2020 = vmatpush.bf16.msra.mxu2 %v1933_v54  ;;  %2021 = vmatpush.bf16.msra.mxu3 %v1933_v54  ;;  %v1907_v18 = vld [vmem:[%s2277_s24 + $0xf8] sm:$0xff]  ;;  %v1920_v19 = vld [vmem:[%s2277_s24 + $0x160] sm:$0xff]  ;;  %v1882_v20 = vld [vmem:[%s2277_s24 + $0x30] sm:$0xff] }
  0x59   : > { %v1895_v21 = vld [vmem:[%s2277_s24 + $0x98] sm:$0xff]  ;;  %v1908_v22 = vld [vmem:[%s2277_s24 + $0x100] sm:$0xff]  ;;  %v1921_v23 = vld [vmem:[%s2277_s24 + $0x168] sm:$0xff] }
  0x5a   : > { %v1883_v24 = vld [vmem:[%s2277_s24 + $0x38] sm:$0xff]  ;;  %v1896_v25 = vld [vmem:[%s2277_s24 + $0xa0] sm:$0xff]  ;;  %v1909_v26 = vld [vmem:[%s2277_s24 + $0x108] sm:$0xff] }
  0x5b   : > { %1112 = vmatpush.bf16.msra.mxu0 %v1932_v55  ;;  %2022 = vmatpush.bf16.msra.mxu1 %v1932_v55  ;;  %v1922_v27 = vld [vmem:[%s2277_s24 + $0x170] sm:$0xff]  ;;  %v1884_v28 = vld [vmem:[%s2277_s24 + $0x40] sm:$0xff]  ;;  %v1897_v29 = vld [vmem:[%s2277_s24 + $0xa8] sm:$0xff] }
  0x5c   : > { %2023 = vmatpush.bf16.msra.mxu2 %v1932_v55  ;;  %2024 = vmatpush.bf16.msra.mxu3 %v1932_v55  ;;  %v1910_v32 = vld [vmem:[%s2277_s24 + $0x110] sm:$0xff]  ;;  %v1923_v33 = vld [vmem:[%s2277_s24 + $0x178] sm:$0xff]  ;;  %v2320_v41 = vld [vmem:[%s2394_s2] ss:$0 sm:$0xff] }
  0x5d   : > { %v1885_v45 = vld [vmem:[%s2277_s24 + $0x48] sm:$0xff]  ;;  %v1898_v46 = vld [vmem:[%s2277_s24 + $0xb0] sm:$0xff]  ;;  %v1911_v50 = vld [vmem:[%s2277_s24 + $0x118] sm:$0xff] }
  0x5e   : > { %v1924_v51 = vld [vmem:[%s2277_s24 + $0x180] sm:$0xff] }
  0x5f   : > { %1113 = vmatpush.bf16.msra.mxu0 %v1931_v56  ;;  %2025 = vmatpush.bf16.msra.mxu1 %v1931_v56 }
  0x60   : > { %2026 = vmatpush.bf16.msra.mxu2 %v1931_v56  ;;  %2027 = vmatpush.bf16.msra.mxu3 %v1931_v56 }
  0x63   : > { %1114 = vmatpush.bf16.msra.mxu0 %v1930_v57  ;;  %2028 = vmatpush.bf16.msra.mxu1 %v1930_v57 }
  0x64   : > { %2029 = vmatpush.bf16.msra.mxu2 %v1930_v57  ;;  %2030 = vmatpush.bf16.msra.mxu3 %v1930_v57 }
  0x67   : > { %1115 = vmatpush.bf16.msra.mxu0 %v1929_v58  ;;  %2031 = vmatpush.bf16.msra.mxu1 %v1929_v58 }
  0x68   : > { %2032 = vmatpush.bf16.msra.mxu2 %v1929_v58  ;;  %2033 = vmatpush.bf16.msra.mxu3 %v1929_v58 }
  0x6b   : > { %1116 = vmatpush.bf16.msra.mxu0 %v1928_v59  ;;  %2034 = vmatpush.bf16.msra.mxu1 %v1928_v59 }
  0x6c   : > { %2035 = vmatpush.bf16.msra.mxu2 %v1928_v59  ;;  %2036 = vmatpush.bf16.msra.mxu3 %v1928_v59 }
  0x6e   : > { %1117 = vmatmul.bf16.vlgmr.msra.gmra.mxu0 %v1876_v60  ;;  %1182 = vmatmul.bf16.vlgmr.msra.gmra.mxu1 %v1889_v61 }
  0x6f   : > { %1247 = vmatmul.bf16.vlgmr.msra.gmra.mxu2 %v1902_v62  ;;  %1312 = vmatmul.bf16.vlgmr.msra.gmra.mxu3 %v1915_v63 }
  0x7e   : > { %1122 = vmatmul.bf16.gmra.mxu0 %v1877_v0  ;;  %1187 = vmatmul.bf16.gmra.mxu1 %v1890_v1 }
  0x7f   : > { %1252 = vmatmul.bf16.gmra.mxu2 %v1903_v2  ;;  %1317 = vmatmul.bf16.gmra.mxu3 %v1916_v3 }
  0x8e   : > { %1127 = vmatmul.bf16.gmra.mxu0 %v1878_v4  ;;  %1192 = vmatmul.bf16.gmra.mxu1 %v1891_v5  ;;  %v1886_v4 = vld [vmem:[%s2277_s24 + $0x50] sm:$0xff]  ;;  %v1899_v5 = vld [vmem:[%s2277_s24 + $0xb8] sm:$0xff] }
  0x8f   : > { %1257 = vmatmul.bf16.gmra.mxu2 %v1904_v6  ;;  %1322 = vmatmul.bf16.gmra.mxu3 %v1917_v7 }
  0x9e   : > { %1132 = vmatmul.bf16.gmra.mxu0 %v1879_v8  ;;  %1197 = vmatmul.bf16.gmra.mxu1 %v1892_v9  ;;  %v1912_v9 = vld [vmem:[%s2277_s24 + $0x120] sm:$0xff] }
  0x9f   : > { %1262 = vmatmul.bf16.gmra.mxu2 %v1905_v10  ;;  %1327 = vmatmul.bf16.gmra.mxu3 %v1918_v11  ;;  %v1925_v10 = vld [vmem:[%s2277_s24 + $0x188] sm:$0xff] }
  0xae   : > { %1137 = vmatmul.bf16.gmra.mxu0 %v1880_v12  ;;  %1202 = vmatmul.bf16.gmra.mxu1 %v1893_v13 }
  0xaf   : > { %1267 = vmatmul.bf16.gmra.mxu2 %v1906_v14  ;;  %1332 = vmatmul.bf16.gmra.mxu3 %v1919_v15 }
  0xbe   : > { %1142 = vmatmul.bf16.gmra.mxu0 %v1881_v16  ;;  %1207 = vmatmul.bf16.gmra.mxu1 %v1894_v17 }
  0xbf   : > { %1272 = vmatmul.bf16.gmra.mxu2 %v1907_v18  ;;  %1337 = vmatmul.bf16.gmra.mxu3 %v1920_v19 }
  0xce   : > { %1147 = vmatmul.bf16.gmra.mxu0 %v1882_v20  ;;  %1212 = vmatmul.bf16.gmra.mxu1 %v1895_v21 }
  0xcf   : > { %1277 = vmatmul.bf16.gmra.mxu2 %v1908_v22  ;;  %1342 = vmatmul.bf16.gmra.mxu3 %v1921_v23 }
  0xde   : > { %1152 = vmatmul.bf16.gmra.mxu0 %v1883_v24  ;;  %1217 = vmatmul.bf16.gmra.mxu1 %v1896_v25 }
  0xdf   : > { %1282 = vmatmul.bf16.gmra.mxu2 %v1909_v26  ;;  %1347 = vmatmul.bf16.gmra.mxu3 %v1922_v27  ;;  %v1887_v27 = vld [vmem:[%s2277_s24 + $0x58] sm:$0xff] }
  0xeb   : > { %v1118_v30 = vpop.f32.mrf.mxu0  ;;  %v1183_v31 = vpop.f32.mrf.mxu1 }
  0xec   : > { %v1378_v34 = vmax.f32 %v1118_v30, %v1183_v31 }
  0xee   : > { %1157 = vmatmul.bf16.gmra.mxu0 %v1884_v28  ;;  %1222 = vmatmul.bf16.gmra.mxu1 %v1897_v29  ;;  %v1900_v28 = vld [vmem:[%s2277_s24 + $0xc0] sm:$0xff] }
  0xef   : > { %1287 = vmatmul.bf16.gmra.mxu2 %v1910_v32  ;;  %1352 = vmatmul.bf16.gmra.mxu3 %v1923_v33  ;;  %v1913_v32 = vld [vmem:[%s2277_s24 + $0x128] sm:$0xff]  ;;  %v1926_v33 = vld [vmem:[%s2277_s24 + $0x190] sm:$0xff] }
  0xf2   : > { %v1248_v35 = vpop.f32.mrf.mxu2  ;;  %v1313_v36 = vpop.f32.mrf.mxu3 }
  0xf3   : > { %v1120_v37 = vpop.f32.mrf.mxu0  ;;  %v1185_v38 = vpop.f32.mrf.mxu1  ;;  %v1379_v39 = vmax.f32 %v1378_v34, %v1248_v35 }
  0xf4   : > { %v1381_v42 = vmax.f32 %v1120_v37, %v1185_v38 }
  0xf5   : > { %v1380_v40 = vmax.f32 %v1379_v39, %v1313_v36 }
  0xf7   : > { %v1460_v52 = vadd.f32 %v2320_v41, %v1380_v40 }
  0xf9   : > { %v1486_v55 = vmax.f32 %v1460_v52, 0.0  ;;  %v1901_v52 = vld [vmem:[%s2277_s24 + $0xc8] sm:$0xff] }
  0xfa   : > { %v1250_v43 = vpop.f32.mrf.mxu2  ;;  %v1315_v44 = vpop.f32.mrf.mxu3 }
  0xfb   : > { %v1382_v47 = vmax.f32 %v1381_v42, %v1250_v43  ;;  %v1123_v48 = vpop.f32.mrf.mxu0  ;;  %v1188_v49 = vpop.f32.mrf.mxu1 }
  0xfc   : > { %v1384_v57 = vmax.f32 %v1123_v48, %v1188_v49 }
  0xfd   : > { %v1383_v53 = vmax.f32 %v1382_v47, %v1315_v44 }
  0xfe   : > { %1162 = vmatmul.bf16.gmra.mxu0 %v1885_v45  ;;  %1227 = vmatmul.bf16.gmra.mxu1 %v1898_v46 }
  0xff   : > { %v1461_v54 = vadd.f32 %v2320_v41, %v1383_v53  ;;  %1292 = vmatmul.bf16.gmra.mxu2 %v1911_v50  ;;  %1357 = vmatmul.bf16.gmra.mxu3 %v1924_v51  ;;  %v1888_v51 = vld [vmem:[%s2277_s24 + $0x60] sm:$0xff] }
 0x101   : > { %v1487_v56 = vmax.f32 %v1461_v54, 0.0 }
 0x102   : > { %v1253_v58 = vpop.f32.mrf.mxu2  ;;  %v1318_v59 = vpop.f32.mrf.mxu3 }
 0x103   : > { %v1939_v60 = vpack.c.bf16 %v1487_v56, %v1486_v55  ;;  %v1125_v61 = vpop.f32.mrf.mxu0  ;;  %v1190_v62 = vpop.f32.mrf.mxu1  ;;  %v1385_v63 = vmax.f32 %v1384_v57, %v1253_v58  ;;  %v1914_v56 = vld [vmem:[%s2277_s24 + $0x130] sm:$0xff]  ;;  %v1927_v57 = vld [vmem:[%s2277_s24 + $0x198] sm:$0xff] }
 0x104   : > { %v1387_v1 = vmax.f32 %v1125_v61, %v1190_v62 }
 0x105   : > { %1940 = vst [vmem:[%s2331_s28] sm:$0xff] %v1939_v60   ;;  %v1386_v0 = vmax.f32 %v1385_v63, %v1318_v59 }
 0x107   : > { %v1462_v11 = vadd.f32 %v2320_v41, %v1386_v0 }
 0x109   : > { %v1488_v14 = vmax.f32 %v1462_v11, 0.0 }
 0x10a   : > { %v1255_v2 = vpop.f32.mrf.mxu2  ;;  %v1320_v3 = vpop.f32.mrf.mxu3 }
 0x10b   : > { %v1388_v6 = vmax.f32 %v1387_v1, %v1255_v2  ;;  %v1128_v7 = vpop.f32.mrf.mxu0  ;;  %v1193_v8 = vpop.f32.mrf.mxu1 }
 0x10c   : > { %v1390_v16 = vmax.f32 %v1128_v7, %v1193_v8 }
 0x10d   : > { %v1389_v12 = vmax.f32 %v1388_v6, %v1320_v3 }
 0x10e   : > { %1167 = vmatmul.bf16.gmra.mxu0 %v1886_v4  ;;  %1232 = vmatmul.bf16.gmra.mxu1 %v1899_v5 }
 0x10f   : > { %v1463_v13 = vadd.f32 %v2320_v41, %v1389_v12  ;;  %1297 = vmatmul.bf16.gmra.mxu2 %v1912_v9  ;;  %1362 = vmatmul.bf16.gmra.mxu3 %v1925_v10 }
 0x111   : > { %v1489_v15 = vmax.f32 %v1463_v13, 0.0 }
 0x112   : > { %v1258_v17 = vpop.f32.mrf.mxu2  ;;  %v1323_v18 = vpop.f32.mrf.mxu3 }
 0x113   : > { %v1944_v19 = vpack.c.bf16 %v1489_v15, %v1488_v14  ;;  %v1130_v20 = vpop.f32.mrf.mxu0  ;;  %v1195_v21 = vpop.f32.mrf.mxu1  ;;  %v1391_v22 = vmax.f32 %v1390_v16, %v1258_v17 }
 0x114   : > { %v1393_v24 = vmax.f32 %v1130_v20, %v1195_v21 }
 0x115   : > { %2001 = vst [vmem:[%s2331_s28 + $0x8] sm:$0xff] %v1944_v19   ;;  %v1392_v23 = vmax.f32 %v1391_v22, %v1323_v18 }
 0x117   : > { %v1464_v34 = vadd.f32 %v2320_v41, %v1392_v23 }
 0x119   : > { %v1490_v37 = vmax.f32 %v1464_v34, 0.0 }
 0x11a   : > { %v1260_v25 = vpop.f32.mrf.mxu2  ;;  %v1325_v26 = vpop.f32.mrf.mxu3 }
 0x11b   : > { %v1394_v29 = vmax.f32 %v1393_v24, %v1260_v25  ;;  %v1133_v30 = vpop.f32.mrf.mxu0  ;;  %v1198_v31 = vpop.f32.mrf.mxu1 }
 0x11c   : > { %v1396_v39 = vmax.f32 %v1133_v30, %v1198_v31 }
 0x11d   : > { %v1395_v35 = vmax.f32 %v1394_v29, %v1325_v26 }
 0x11e   : > { %1172 = vmatmul.bf16.gmra.mxu0 %v1887_v27  ;;  %1237 = vmatmul.bf16.gmra.mxu1 %v1900_v28 }
 0x11f   : > { %v1465_v36 = vadd.f32 %v2320_v41, %v1395_v35  ;;  %1302 = vmatmul.bf16.gmra.mxu2 %v1913_v32  ;;  %1367 = vmatmul.bf16.gmra.mxu3 %v1926_v33 }
 0x121   : > { %v1491_v38 = vmax.f32 %v1465_v36, 0.0 }
 0x122   : > { %v1263_v40 = vpop.f32.mrf.mxu2  ;;  %v1328_v42 = vpop.f32.mrf.mxu3 }
 0x123   : > { %v1949_v43 = vpack.c.bf16 %v1491_v38, %v1490_v37  ;;  %v1135_v44 = vpop.f32.mrf.mxu0  ;;  %v1200_v45 = vpop.f32.mrf.mxu1  ;;  %v1397_v46 = vmax.f32 %v1396_v39, %v1263_v40 }
 0x124   : > { %v1399_v48 = vmax.f32 %v1135_v44, %v1200_v45 }
 0x125   : > { %2002 = vst [vmem:[%s2331_s28 + $0x10] sm:$0xff] %v1949_v43   ;;  %v1398_v47 = vmax.f32 %v1397_v46, %v1328_v42 }
 0x127   : > { %v1466_v58 = vadd.f32 %v2320_v41, %v1398_v47 }
 0x129   : > { %v1492_v61 = vmax.f32 %v1466_v58, 0.0 }
 0x12a   : > { %v1265_v49 = vpop.f32.mrf.mxu2  ;;  %v1330_v50 = vpop.f32.mrf.mxu3 }
 0x12b   : > { %v1400_v53 = vmax.f32 %v1399_v48, %v1265_v49  ;;  %v1138_v54 = vpop.f32.mrf.mxu0  ;;  %v1203_v55 = vpop.f32.mrf.mxu1 }
 0x12c   : > { %v1402_v63 = vmax.f32 %v1138_v54, %v1203_v55 }
 0x12d   : > { %v1401_v59 = vmax.f32 %v1400_v53, %v1330_v50 }
 0x12e   : > { %1177 = vmatmul.bf16.gmra.mxu0 %v1888_v51  ;;  %1242 = vmatmul.bf16.gmra.mxu1 %v1901_v52 }
 0x12f   : > { %v1467_v60 = vadd.f32 %v2320_v41, %v1401_v59  ;;  %1307 = vmatmul.bf16.gmra.mxu2 %v1914_v56  ;;  %1372 = vmatmul.bf16.gmra.mxu3 %v1927_v57 }
 0x131   : > { %v1493_v62 = vmax.f32 %v1467_v60, 0.0 }
 0x132   : > { %v1268_v0 = vpop.f32.mrf.mxu2  ;;  %v1333_v1 = vpop.f32.mrf.mxu3 }
 0x133   : > { %v1954_v2 = vpack.c.bf16 %v1493_v62, %v1492_v61  ;;  %v1140_v3 = vpop.f32.mrf.mxu0  ;;  %v1205_v4 = vpop.f32.mrf.mxu1  ;;  %v1403_v5 = vmax.f32 %v1402_v63, %v1268_v0 }
 0x134   : > { %v1405_v7 = vmax.f32 %v1140_v3, %v1205_v4 }
 0x135   : > { %2003 = vst [vmem:[%s2331_s28 + $0x18] sm:$0xff] %v1954_v2   ;;  %v1404_v6 = vmax.f32 %v1403_v5, %v1333_v1 }
 0x137   : > { %v1468_v13 = vadd.f32 %v2320_v41, %v1404_v6 }
 0x139   : > { %v1494_v16 = vmax.f32 %v1468_v13, 0.0 }
 0x13a   : > { %v1270_v8 = vpop.f32.mrf.mxu2  ;;  %v1335_v9 = vpop.f32.mrf.mxu3 }
 0x13b   : > { %v1406_v10 = vmax.f32 %v1405_v7, %v1270_v8  ;;  %v1143_v11 = vpop.f32.mrf.mxu0  ;;  %v1208_v12 = vpop.f32.mrf.mxu1 }
 0x13c   : > { %v1408_v18 = vmax.f32 %v1143_v11, %v1208_v12 }
 0x13d   : > { %v1407_v14 = vmax.f32 %v1406_v10, %v1335_v9 }
 0x13f   : > { %v1469_v15 = vadd.f32 %v2320_v41, %v1407_v14 }
 0x141   : > { %v1495_v17 = vmax.f32 %v1469_v15, 0.0 }
 0x142   : > { %v1273_v19 = vpop.f32.mrf.mxu2  ;;  %v1338_v20 = vpop.f32.mrf.mxu3 }
 0x143   : > { %v1959_v21 = vpack.c.bf16 %v1495_v17, %v1494_v16  ;;  %v1145_v22 = vpop.f32.mrf.mxu0  ;;  %v1210_v23 = vpop.f32.mrf.mxu1  ;;  %v1409_v24 = vmax.f32 %v1408_v18, %v1273_v19 }
 0x144   : > { %v1411_v26 = vmax.f32 %v1145_v22, %v1210_v23 }
 0x145   : > { %2004 = vst [vmem:[%s2331_s28 + $0x20] sm:$0xff] %v1959_v21   ;;  %v1410_v25 = vmax.f32 %v1409_v24, %v1338_v20 }
 0x147   : > { %v1470_v32 = vadd.f32 %v2320_v41, %v1410_v25 }
 0x149   : > { %v1496_v35 = vmax.f32 %v1470_v32, 0.0 }
 0x14a   : > { %v1275_v27 = vpop.f32.mrf.mxu2  ;;  %v1340_v28 = vpop.f32.mrf.mxu3 }
 0x14b   : > { %v1412_v29 = vmax.f32 %v1411_v26, %v1275_v27  ;;  %v1148_v30 = vpop.f32.mrf.mxu0  ;;  %v1213_v31 = vpop.f32.mrf.mxu1 }
 0x14c   : > { %v1414_v37 = vmax.f32 %v1148_v30, %v1213_v31 }
 0x14d   : > { %v1413_v33 = vmax.f32 %v1412_v29, %v1340_v28 }
 0x14f   : > { %v1471_v34 = vadd.f32 %v2320_v41, %v1413_v33 }
 0x151   : > { %v1497_v36 = vmax.f32 %v1471_v34, 0.0 }
 0x152   : > { %v1278_v38 = vpop.f32.mrf.mxu2  ;;  %v1343_v39 = vpop.f32.mrf.mxu3 }
 0x153   : > { %v1964_v40 = vpack.c.bf16 %v1497_v36, %v1496_v35  ;;  %v1150_v42 = vpop.f32.mrf.mxu0  ;;  %v1215_v43 = vpop.f32.mrf.mxu1  ;;  %v1415_v44 = vmax.f32 %v1414_v37, %v1278_v38 }
 0x154   : > { %v1417_v46 = vmax.f32 %v1150_v42, %v1215_v43 }
 0x155   : > { %2005 = vst [vmem:[%s2331_s28 + $0x28] sm:$0xff] %v1964_v40   ;;  %v1416_v45 = vmax.f32 %v1415_v44, %v1343_v39 }
 0x157   : > { %v1472_v52 = vadd.f32 %v2320_v41, %v1416_v45 }
 0x159   : > { %v1498_v55 = vmax.f32 %v1472_v52, 0.0 }
 0x15a   : > { %v1280_v47 = vpop.f32.mrf.mxu2  ;;  %v1345_v48 = vpop.f32.mrf.mxu3 }
 0x15b   : > { %v1418_v49 = vmax.f32 %v1417_v46, %v1280_v47  ;;  %v1153_v50 = vpop.f32.mrf.mxu0  ;;  %v1218_v51 = vpop.f32.mrf.mxu1 }
 0x15c   : > { %v1420_v57 = vmax.f32 %v1153_v50, %v1218_v51 }
 0x15d   : > { %v1419_v53 = vmax.f32 %v1418_v49, %v1345_v48 }
 0x15f   : > { %v1473_v54 = vadd.f32 %v2320_v41, %v1419_v53 }
 0x161   : > { %v1499_v56 = vmax.f32 %v1473_v54, 0.0 }
 0x162   : > { %v1283_v58 = vpop.f32.mrf.mxu2  ;;  %v1348_v59 = vpop.f32.mrf.mxu3 }
 0x163   : > { %v1969_v60 = vpack.c.bf16 %v1499_v56, %v1498_v55  ;;  %v1155_v61 = vpop.f32.mrf.mxu0  ;;  %v1220_v62 = vpop.f32.mrf.mxu1  ;;  %v1421_v63 = vmax.f32 %v1420_v57, %v1283_v58 }
 0x164   : > { %v1423_v1 = vmax.f32 %v1155_v61, %v1220_v62 }
 0x165   : > { %2006 = vst [vmem:[%s2331_s28 + $0x30] sm:$0xff] %v1969_v60   ;;  %v1422_v0 = vmax.f32 %v1421_v63, %v1348_v59 }
 0x167   : > { %v1474_v7 = vadd.f32 %v2320_v41, %v1422_v0 }
 0x169   : > { %v1500_v10 = vmax.f32 %v1474_v7, 0.0 }
 0x16a   : > { %v1285_v2 = vpop.f32.mrf.mxu2  ;;  %v1350_v3 = vpop.f32.mrf.mxu3 }
 0x16b   : > { %v1424_v4 = vmax.f32 %v1423_v1, %v1285_v2  ;;  %v1158_v5 = vpop.f32.mrf.mxu0  ;;  %v1223_v6 = vpop.f32.mrf.mxu1 }
 0x16c   : > { %v1426_v12 = vmax.f32 %v1158_v5, %v1223_v6 }
 0x16d   : > { %v1425_v8 = vmax.f32 %v1424_v4, %v1350_v3 }
 0x16f   : > { %v1475_v9 = vadd.f32 %v2320_v41, %v1425_v8 }
 0x171   : > { %v1501_v11 = vmax.f32 %v1475_v9, 0.0 }
 0x172   : > { %v1288_v13 = vpop.f32.mrf.mxu2  ;;  %v1353_v14 = vpop.f32.mrf.mxu3 }
 0x173   : > { %v1974_v15 = vpack.c.bf16 %v1501_v11, %v1500_v10  ;;  %v1160_v16 = vpop.f32.mrf.mxu0  ;;  %v1225_v17 = vpop.f32.mrf.mxu1  ;;  %v1427_v18 = vmax.f32 %v1426_v12, %v1288_v13 }
 0x174   : > { %v1429_v20 = vmax.f32 %v1160_v16, %v1225_v17 }
 0x175   : > { %2007 = vst [vmem:[%s2331_s28 + $0x38] sm:$0xff] %v1974_v15   ;;  %v1428_v19 = vmax.f32 %v1427_v18, %v1353_v14 }
 0x177   : > { %v1476_v26 = vadd.f32 %v2320_v41, %v1428_v19 }
 0x179   : > { %v1502_v29 = vmax.f32 %v1476_v26, 0.0 }
 0x17a   : > { %v1290_v21 = vpop.f32.mrf.mxu2  ;;  %v1355_v22 = vpop.f32.mrf.mxu3 }
 0x17b   : > { %v1430_v23 = vmax.f32 %v1429_v20, %v1290_v21  ;;  %v1163_v24 = vpop.f32.mrf.mxu0  ;;  %v1228_v25 = vpop.f32.mrf.mxu1 }
 0x17c   : > { %v1432_v31 = vmax.f32 %v1163_v24, %v1228_v25 }
 0x17d   : > { %v1431_v27 = vmax.f32 %v1430_v23, %v1355_v22 }
 0x17f   : > { %v1477_v28 = vadd.f32 %v2320_v41, %v1431_v27 }
 0x181   : > { %v1503_v30 = vmax.f32 %v1477_v28, 0.0 }
 0x182   : > { %v1293_v32 = vpop.f32.mrf.mxu2  ;;  %v1358_v33 = vpop.f32.mrf.mxu3 }
 0x183   : > { %v1979_v34 = vpack.c.bf16 %v1503_v30, %v1502_v29  ;;  %v1165_v35 = vpop.f32.mrf.mxu0  ;;  %v1230_v36 = vpop.f32.mrf.mxu1  ;;  %v1433_v37 = vmax.f32 %v1432_v31, %v1293_v32 }
 0x184   : > { %v1435_v39 = vmax.f32 %v1165_v35, %v1230_v36 }
 0x185   : > { %2008 = vst [vmem:[%s2331_s28 + $0x40] sm:$0xff] %v1979_v34   ;;  %v1434_v38 = vmax.f32 %v1433_v37, %v1358_v33 }
 0x187   : > { %v1478_v46 = vadd.f32 %v2320_v41, %v1434_v38 }
 0x189   : > { %v1504_v49 = vmax.f32 %v1478_v46, 0.0 }
 0x18a   : > { %v1295_v40 = vpop.f32.mrf.mxu2  ;;  %v1360_v42 = vpop.f32.mrf.mxu3 }
 0x18b   : > { %v1436_v43 = vmax.f32 %v1435_v39, %v1295_v40  ;;  %v1168_v44 = vpop.f32.mrf.mxu0  ;;  %v1233_v45 = vpop.f32.mrf.mxu1 }
 0x18c   : > { %v1438_v51 = vmax.f32 %v1168_v44, %v1233_v45 }
 0x18d   : > { %v1437_v47 = vmax.f32 %v1436_v43, %v1360_v42 }
 0x18f   : > { %v1479_v48 = vadd.f32 %v2320_v41, %v1437_v47 }
 0x191   : > { %v1505_v50 = vmax.f32 %v1479_v48, 0.0 }
 0x192   : > { %v1298_v52 = vpop.f32.mrf.mxu2  ;;  %v1363_v53 = vpop.f32.mrf.mxu3 }
 0x193   : > { %v1984_v54 = vpack.c.bf16 %v1505_v50, %v1504_v49  ;;  %v1170_v55 = vpop.f32.mrf.mxu0  ;;  %v1235_v56 = vpop.f32.mrf.mxu1  ;;  %v1439_v57 = vmax.f32 %v1438_v51, %v1298_v52 }
 0x194   : > { %v1441_v59 = vmax.f32 %v1170_v55, %v1235_v56 }
 0x195   : > { %2009 = vst [vmem:[%s2331_s28 + $0x48] sm:$0xff] %v1984_v54   ;;  %v1440_v58 = vmax.f32 %v1439_v57, %v1363_v53 }
 0x197   : > { %v1480_v1 = vadd.f32 %v2320_v41, %v1440_v58 }
 0x199   : > { %v1506_v4 = vmax.f32 %v1480_v1, 0.0 }
 0x19a   : > { %v1300_v60 = vpop.f32.mrf.mxu2  ;;  %v1365_v61 = vpop.f32.mrf.mxu3 }
 0x19b   : > { %v1442_v62 = vmax.f32 %v1441_v59, %v1300_v60  ;;  %v1173_v63 = vpop.f32.mrf.mxu0  ;;  %v1238_v0 = vpop.f32.mrf.mxu1 }
 0x19c   : > { %v1444_v6 = vmax.f32 %v1173_v63, %v1238_v0 }
 0x19d   : > { %v1443_v2 = vmax.f32 %v1442_v62, %v1365_v61 }
 0x19f   : > { %v1481_v3 = vadd.f32 %v2320_v41, %v1443_v2 }
 0x1a1   : > { %v1507_v5 = vmax.f32 %v1481_v3, 0.0 }
 0x1a2   : > { %v1303_v7 = vpop.f32.mrf.mxu2  ;;  %v1368_v8 = vpop.f32.mrf.mxu3 }
 0x1a3   : > { %v1989_v9 = vpack.c.bf16 %v1507_v5, %v1506_v4  ;;  %v1175_v10 = vpop.f32.mrf.mxu0  ;;  %v1240_v11 = vpop.f32.mrf.mxu1  ;;  %v1445_v12 = vmax.f32 %v1444_v6, %v1303_v7 }
 0x1a4   : > { %v1447_v14 = vmax.f32 %v1175_v10, %v1240_v11 }
 0x1a5   : > { %2010 = vst [vmem:[%s2331_s28 + $0x50] sm:$0xff] %v1989_v9   ;;  %v1446_v13 = vmax.f32 %v1445_v12, %v1368_v8 }
 0x1a7   : > { %v1482_v20 = vadd.f32 %v2320_v41, %v1446_v13 }
 0x1a9   : > { %v1508_v23 = vmax.f32 %v1482_v20, 0.0 }
 0x1aa   : > { %v1305_v15 = vpop.f32.mrf.mxu2  ;;  %v1370_v16 = vpop.f32.mrf.mxu3 }
 0x1ab   : > { %v1448_v17 = vmax.f32 %v1447_v14, %v1305_v15  ;;  %v1178_v18 = vpop.f32.mrf.mxu0  ;;  %v1243_v19 = vpop.f32.mrf.mxu1 }
 0x1ac   : > { %v1450_v25 = vmax.f32 %v1178_v18, %v1243_v19 }
 0x1ad   : > { %v1449_v21 = vmax.f32 %v1448_v17, %v1370_v16 }
 0x1af   : > { %v1483_v22 = vadd.f32 %v2320_v41, %v1449_v21 }
 0x1b1   : > { %v1509_v24 = vmax.f32 %v1483_v22, 0.0 }
 0x1b2   : > { %v1308_v26 = vpop.f32.mrf.mxu2  ;;  %v1373_v27 = vpop.f32.mrf.mxu3 }
 0x1b3   : > { %v1994_v28 = vpack.c.bf16 %v1509_v24, %v1508_v23  ;;  %v1451_v29 = vmax.f32 %v1450_v25, %v1308_v26  ;;  %v1180_v30 = vpop.f32.mrf.mxu0  ;;  %v1245_v31 = vpop.f32.mrf.mxu1 }
 0x1b4   : > { %v1453_v33 = vmax.f32 %v1180_v30, %v1245_v31 }
 0x1b5   : > { %2011 = vst [vmem:[%s2331_s28 + $0x58] sm:$0xff] %v1994_v28   ;;  %v1452_v32 = vmax.f32 %v1451_v29, %v1373_v27 }
 0x1b7   : > { %v1484_v37 = vadd.f32 %v2320_v41, %v1452_v32 }
 0x1b9   : > { %v1510_v40 = vmax.f32 %v1484_v37, 0.0 }
 0x1ba   : > { %v1310_v34 = vpop.f32.mrf.mxu2  ;;  %v1375_v36 = vpop.f32.mrf.mxu3 }
 0x1bb   : > { %v1454_v35 = vmax.f32 %v1453_v33, %v1310_v34 }
 0x1bd   : > { %v1455_v38 = vmax.f32 %v1454_v35, %v1375_v36 }
 0x1bf   : > { %v1485_v39 = vadd.f32 %v2320_v41, %v1455_v38 }
 0x1c1   : > { %v1511_v42 = vmax.f32 %v1485_v39, 0.0 }
 0x1c3   : > { %v1999_v43 = vpack.c.bf16 %v1511_v42, %v1510_v40 }
 0x1c5   : > { %2012 = vst [vmem:[%s2331_s28 + $0x60] sm:$0xff] %v1999_v43  }
 0x1c6 PF: > { %p10_p9 = scmp.ge.s32.totalorder %s2125_s16, 4   ;;  %s2396_s12 = smov %s2082_s13 }
 0x1c7   : > { %s2397_s13 = smov %s2134_s19  ;;  %s2398_s14 = smov %s2125_s16 }
 0x1c8   :  { %12 = sbr.rel (!%p10_p9) target bundleno = 2 (0x2), region = 108 }

// kernel: cnn_net_forward.4
= control target key start
LH: loop header
LB: loop body
LE: loop exit
PB: predicated region body
PF: predicated region fallthrough
CT: control target
= control target key end

     0   :  { %s1137_s12 = smov 0   ;;  %s1139_s13 = smov 0   ;;  %s1379_s0 = inlined_call_operand.vmem [shape: bf16[4,96,256], index: 0, kind: input, shape index: {}]   ;;  %s1380_s1 = inlined_call_operand.vmem [shape: bf16[256,128], index: 1, kind: input, shape index: {}]   ;;  %s1381_s2 = inlined_call_operand.vmem [shape: f32[1,128], index: 2, kind: input, shape index: {}]   ;;  %s1382_s3 = inlined_call_operand.vmem [shape: bf16[96,128], index: 3, kind: output, shape index: {}]  }
   0x1   :  { %s1141_s14 = smov 0  }
   0x2 LB: > { %s820_s15 = sadd.s32 4294967295, %s1115_s14   ;;  %s1154_s16 = sadd.s32 1, %s1115_s14   ;;  %s1115_s14 = sphi %s1141_s14, %s1385_s14   ;;  %s1111_s13 = sphi %s1139_s13, %s1384_s13   ;;  %s1107_s12 = sphi %s1137_s12, %s1383_s12  }
   0x3   : > { %s17_s17 = ssub.s32 %s1115_s14, %s1154_s16  ;;  %s20_s18 = sadd.s32 1, %s1111_s13 }
   0x4   : > { %p18_p0 = scmp.eq.s32.totalorder %s17_s17, 0  ;;  %p27_p1 = scmp.ne.s32.totalorder %s1111_s13, %s1107_s12 }
   0x5   : > { %p28_p2 = scmp.eq.s32.totalorder %s1115_s14, 0  ;;  %p823_p4 = scmp.ge.s32.totalorder %s1115_s14, 2 }
   0x6   : > { %s1163_s19 = scalar_select %p18_p0, %s1111_s13, %s20_s18  }
   0x7   : > { %p29_p3 = por %p28_p2, %p27_p1  ;;  %127 = sbr.rel (%p823_p4) target bundleno = 41 (0x29), region = 24 }
   0xc   : > { %130 = sbr.rel (!%p29_p3) target bundleno = 41 (0x29), region = 28  ;;  %s132_s20 = sand.u32 (%p29_p3), 1, %s1111_s13  }
   0xd   : > { %s1047_s21 = smul.u32 (%p29_p3), 48, %s1115_s14 }
   0xe   : > { %s1066_s22 = smul.u32 (%p29_p3), 192, %s132_s20 }
   0xf   : > { %s1171_s25 = scalar_lea.vmem (%p29_p3), %s1379_s0, %s1047_s21 }
  0x10   : > { %v213_v0 = vld [vmem:[%s1171_s25] sm:$0xff] (%p29_p3)  ;;  %v215_v1 = vld [vmem:[%s1171_s25 + $0x8] sm:$0xff] (%p29_p3)  ;;  %v217_v2 = vld [vmem:[%s1171_s25 + $0x10] sm:$0xff] (%p29_p3)  ;;  %s1176_s26 = scalar_lea.vmem (%p29_p3), [#allocation2], %s1066_s22 }
  0x11   : > { %214 = vst [vmem:[%s1176_s26] sm:$0xff] %v213_v0  ;;  %v219_v3 = vld [vmem:[%s1171_s25 + $0x18] sm:$0xff]  ;;  %v221_v4 = vld [vmem:[%s1171_s25 + $0x20] sm:$0xff]  ;;  %v223_v5 = vld [vmem:[%s1171_s25 + $0x28] sm:$0xff] }
  0x12   : > { %216 = vst [vmem:[%s1176_s26 + $0x8] sm:$0xff] %v215_v1  ;;  %v225_v6 = vld [vmem:[%s1171_s25 + $0x60] sm:$0xff]  ;;  %v227_v7 = vld [vmem:[%s1171_s25 + $0x68] sm:$0xff]  ;;  %v229_v8 = vld [vmem:[%s1171_s25 + $0x70] sm:$0xff] }
  0x13   : > { %218 = vst [vmem:[%s1176_s26 + $0x10] sm:$0xff] %v217_v2  ;;  %v231_v9 = vld [vmem:[%s1171_s25 + $0x78] sm:$0xff]  ;;  %v233_v10 = vld [vmem:[%s1171_s25 + $0x80] sm:$0xff]  ;;  %v235_v11 = vld [vmem:[%s1171_s25 + $0x88] sm:$0xff] }
  0x14   : > { %220 = vst [vmem:[%s1176_s26 + $0x18] sm:$0xff] %v219_v3  ;;  %v237_v12 = vld [vmem:[%s1171_s25 + $0xc0] sm:$0xff]  ;;  %v239_v13 = vld [vmem:[%s1171_s25 + $0xc8] sm:$0xff]  ;;  %v241_v14 = vld [vmem:[%s1171_s25 + $0xd0] sm:$0xff] }
  0x15   : > { %222 = vst [vmem:[%s1176_s26 + $0x20] sm:$0xff] %v221_v4  ;;  %v243_v15 = vld [vmem:[%s1171_s25 + $0xd8] sm:$0xff]  ;;  %v245_v16 = vld [vmem:[%s1171_s25 + $0xe0] sm:$0xff]  ;;  %v247_v17 = vld [vmem:[%s1171_s25 + $0xe8] sm:$0xff] }
  0x16   : > { %224 = vst [vmem:[%s1176_s26 + $0x28] sm:$0xff] %v223_v5  ;;  %v249_v18 = vld [vmem:[%s1171_s25 + $0x120] sm:$0xff]  ;;  %v251_v19 = vld [vmem:[%s1171_s25 + $0x128] sm:$0xff]  ;;  %v253_v20 = vld [vmem:[%s1171_s25 + $0x130] sm:$0xff] }
  0x17   : > { %226 = vst [vmem:[%s1176_s26 + $0x30] sm:$0xff] %v225_v6  ;;  %v255_v21 = vld [vmem:[%s1171_s25 + $0x138] sm:$0xff]  ;;  %v257_v22 = vld [vmem:[%s1171_s25 + $0x140] sm:$0xff]  ;;  %v259_v23 = vld [vmem:[%s1171_s25 + $0x148] sm:$0xff] }
  0x18   : > { %228 = vst [vmem:[%s1176_s26 + $0x38] sm:$0xff] %v227_v7 }
  0x19   : > { %230 = vst [vmem:[%s1176_s26 + $0x40] sm:$0xff] %v229_v8 }
  0x1a   : > { %232 = vst [vmem:[%s1176_s26 + $0x48] sm:$0xff] %v231_v9 }
  0x1b   : > { %234 = vst [vmem:[%s1176_s26 + $0x50] sm:$0xff] %v233_v10 }
  0x1c   : > { %236 = vst [vmem:[%s1176_s26 + $0x58] sm:$0xff] %v235_v11 }
  0x1d   : > { %238 = vst [vmem:[%s1176_s26 + $0x60] sm:$0xff] %v237_v12 }
  0x1e   : > { %240 = vst [vmem:[%s1176_s26 + $0x68] sm:$0xff] %v239_v13 }
  0x1f   : > { %242 = vst [vmem:[%s1176_s26 + $0x70] sm:$0xff] %v241_v14 }
  0x20   : > { %244 = vst [vmem:[%s1176_s26 + $0x78] sm:$0xff] %v243_v15 }
  0x21   : > { %246 = vst [vmem:[%s1176_s26 + $0x80] sm:$0xff] %v245_v16 }
  0x22   : > { %248 = vst [vmem:[%s1176_s26 + $0x88] sm:$0xff] %v247_v17 }
  0x23   : > { %250 = vst [vmem:[%s1176_s26 + $0x90] sm:$0xff] %v249_v18 }
  0x24   : > { %252 = vst [vmem:[%s1176_s26 + $0x98] sm:$0xff] %v251_v19 }
  0x25   : > { %254 = vst [vmem:[%s1176_s26 + $0xa0] sm:$0xff] %v253_v20 }
  0x26   : > { %256 = vst [vmem:[%s1176_s26 + $0xa8] sm:$0xff] %v255_v21 }
  0x27   : > { %258 = vst [vmem:[%s1176_s26 + $0xb0] sm:$0xff] %v257_v22 }
  0x28   : > { %260 = vst [vmem:[%s1176_s26 + $0xb8] sm:$0xff] %v259_v23 }
  0x29 PF: > { %p826_p5 = scmp.ge.s32.totalorder %s1115_s14, 1  ;;  %p265_p6 = scmp.lt.s32.totalorder %s1115_s14, 3 }
  0x2b   : > { %p266_p7 = pnand %p826_p5, %p265_p6 }
  0x2c   : > { %s272_s26 = sand.u32 (!%p266_p7), 1, %s1107_s12   ;;  %s296_s18 = smul.u32 (!%p266_p7), 6, %s820_s15 }
  0x2d   : > { %269 = sbr.rel (%p266_p7) target bundleno = 314 (0x13a), region = 66 }
  0x2e   : > { %s1067_s29 = smul.u32 (!%p266_p7), 192, %s272_s26  ;;  %p297_p8 = scmp.lt.s32.totalorder (!%p266_p7), %s296_s18, 11 }
  0x30   : > { %s1274_s17 = scalar_lea.vmem (!%p266_p7), [#allocation2], %s1067_s29 }
  0x32   : > { %v1023_v24 = vld [vmem:[%s1380_s1 + $0x38] sm:$0xff]  ;;  %v1022_v26 = vld [vmem:[%s1380_s1 + $0x30] sm:$0xff]  ;;  %v1021_v28 = vld [vmem:[%s1380_s1 + $0x28] sm:$0xff]  ;;  %s1387_s18 = smov (!%p297_p8, %s296_s18), 11 }
  0x33   : > { %v1031_v25 = vld [vmem:[%s1380_s1 + $0x78] sm:$0xff]  ;;  %574 = vmatpush.bf16.msra.mxu0 %v1023_v24  ;;  %1050 = vmatpush.bf16.msra.mxu2 %v1023_v24  ;;  %v1030_v27 = vld [vmem:[%s1380_s1 + $0x70] sm:$0xff]  ;;  %v1029_v29 = vld [vmem:[%s1380_s1 + $0x68] sm:$0xff]  ;;  %s827_s14 = sshll.u32 %s1387_s18, 2 }
  0x34   : > { %643 = vmatpush.bf16.msra.mxu1 %v1031_v25  ;;  %1058 = vmatpush.bf16.msra.mxu3 %v1031_v25  ;;  %v1020_v30 = vld [vmem:[%s1380_s1 + $0x20] sm:$0xff]  ;;  %v1019_v32 = vld [vmem:[%s1380_s1 + $0x18] sm:$0xff]  ;;  %v1018_v34 = vld [vmem:[%s1380_s1 + $0x10] sm:$0xff]  ;;  %s1352_s23 = scalar_lea.vmem %s1382_s3, %s827_s14 }
  0x35   : > { %v1028_v31 = vld [vmem:[%s1380_s1 + $0x60] sm:$0xff]  ;;  %v1027_v33 = vld [vmem:[%s1380_s1 + $0x58] sm:$0xff]  ;;  %v1026_v35 = vld [vmem:[%s1380_s1 + $0x50] sm:$0xff] }
  0x36   : > { %v1017_v36 = vld [vmem:[%s1380_s1 + $0x8] sm:$0xff]  ;;  %v1016_v38 = vld [vmem:[%s1380_s1] sm:$0xff]  ;;  %v838_v52 = vld [vmem:[%s1274_s17 + $0x10] sm:$0xf] }
  0x37   : > { %575 = vmatpush.bf16.msra.mxu0 %v1022_v26  ;;  %1051 = vmatpush.bf16.msra.mxu2 %v1022_v26  ;;  %v1025_v37 = vld [vmem:[%s1380_s1 + $0x48] sm:$0xff]  ;;  %v1024_v39 = vld [vmem:[%s1380_s1 + $0x40] sm:$0xff]  ;;  %v995_v53 = vld [vmem:[%s1274_s17 + $0x14] sm:$0xf0] }
  0x38   : > { %644 = vmatpush.bf16.msra.mxu1 %v1030_v27  ;;  %1059 = vmatpush.bf16.msra.mxu3 %v1030_v27  ;;  %v830_v40 = vld [vmem:[%s1274_s17] sm:$0xf]  ;;  %v993_v41 = vld [vmem:[%s1274_s17 + $0x4] sm:$0xf0]  ;;  %v992_v44 = vld [vmem:[%s1274_s17 + $0x4] sm:$0xf]  ;;  %v839_v60 = vor.u32 %v995_v53, %v838_v52 }
  0x39   : > { %v878_v42 = vld [vmem:[%s1274_s17 + $0x60] sm:$0xf]  ;;  %v1005_v43 = vld [vmem:[%s1274_s17 + $0x64] sm:$0xf0]  ;;  %v832_v45 = vld [vmem:[%s1274_s17 + $0x8] sm:$0xf0]  ;;  %v831_v48 = vor.u32 %v993_v41, %v830_v40 }
  0x3a   : > { %v1004_v46 = vld [vmem:[%s1274_s17 + $0x64] sm:$0xf]  ;;  %v880_v47 = vld [vmem:[%s1274_s17 + $0x68] sm:$0xf0]  ;;  %v879_v49 = vor.u32 %v1005_v43, %v878_v42  ;;  %v835_v50 = vor.u32 %v992_v44, %v832_v45  ;;  %v886_v54 = vld [vmem:[%s1274_s17 + $0x70] sm:$0xf] }
  0x3b   : > { %576 = vmatpush.bf16.msra.mxu0 %v1021_v28  ;;  %1052 = vmatpush.bf16.msra.mxu2 %v1021_v28  ;;  %v883_v51 = vor.u32 %v1004_v46, %v880_v47  ;;  %v1007_v55 = vld [vmem:[%s1274_s17 + $0x74] sm:$0xf0]  ;;  %v994_v56 = vld [vmem:[%s1274_s17 + $0x14] sm:$0xf]  ;;  %v840_v57 = vld [vmem:[%s1274_s17 + $0x18] sm:$0xf0] }
  0x3c   : > { %645 = vmatpush.bf16.msra.mxu1 %v1029_v29  ;;  %1060 = vmatpush.bf16.msra.mxu3 %v1029_v29  ;;  %v1006_v58 = vld [vmem:[%s1274_s17 + $0x74] sm:$0xf]  ;;  %v888_v59 = vld [vmem:[%s1274_s17 + $0x78] sm:$0xf0]  ;;  %v887_v61 = vor.u32 %v1007_v55, %v886_v54  ;;  %v843_v62 = vor.u32 %v994_v56, %v840_v57  ;;  %v846_v0 = vld [vmem:[%s1274_s17 + $0x20] sm:$0xf] }
  0x3d   : > { %v891_v63 = vor.u32 %v1006_v58, %v888_v59  ;;  %v997_v1 = vld [vmem:[%s1274_s17 + $0x24] sm:$0xf0]  ;;  %v894_v2 = vld [vmem:[%s1274_s17 + $0x80] sm:$0xf]  ;;  %v996_v4 = vld [vmem:[%s1274_s17 + $0x24] sm:$0xf] }
  0x3e   : > { %v1009_v3 = vld [vmem:[%s1274_s17 + $0x84] sm:$0xf0]  ;;  %v848_v5 = vld [vmem:[%s1274_s17 + $0x28] sm:$0xf0]  ;;  %v1008_v6 = vld [vmem:[%s1274_s17 + $0x84] sm:$0xf]  ;;  %v847_v8 = vor.u32 %v997_v1, %v846_v0 }
  0x3f   : > { %577 = vmatpush.bf16.msra.mxu0 %v1020_v30  ;;  %1053 = vmatpush.bf16.msra.mxu2 %v1020_v30  ;;  %v896_v7 = vld [vmem:[%s1274_s17 + $0x88] sm:$0xf0]  ;;  %v895_v9 = vor.u32 %v1009_v3, %v894_v2  ;;  %v851_v10 = vor.u32 %v996_v4, %v848_v5  ;;  %v854_v12 = vld [vmem:[%s1274_s17 + $0x30] sm:$0xf]  ;;  %v999_v13 = vld [vmem:[%s1274_s17 + $0x34] sm:$0xf0] }
  0x40   : > { %646 = vmatpush.bf16.msra.mxu1 %v1028_v31  ;;  %1061 = vmatpush.bf16.msra.mxu3 %v1028_v31  ;;  %v899_v11 = vor.u32 %v1008_v6, %v896_v7  ;;  %v902_v14 = vld [vmem:[%s1274_s17 + $0x90] sm:$0xf]  ;;  %v1011_v15 = vld [vmem:[%s1274_s17 + $0x94] sm:$0xf0]  ;;  %v998_v16 = vld [vmem:[%s1274_s17 + $0x34] sm:$0xf]  ;;  %v855_v20 = vor.u32 %v999_v13, %v854_v12 }
  0x41   : > { %v856_v17 = vld [vmem:[%s1274_s17 + $0x38] sm:$0xf0]  ;;  %v1010_v18 = vld [vmem:[%s1274_s17 + $0x94] sm:$0xf]  ;;  %v903_v21 = vor.u32 %v1011_v15, %v902_v14  ;;  %v862_v24 = vld [vmem:[%s1274_s17 + $0x40] sm:$0xf] }
  0x42   : > { %v904_v19 = vld [vmem:[%s1274_s17 + $0x98] sm:$0xf0]  ;;  %v859_v22 = vor.u32 %v998_v16, %v856_v17  ;;  %v1001_v25 = vld [vmem:[%s1274_s17 + $0x44] sm:$0xf0]  ;;  %v910_v26 = vld [vmem:[%s1274_s17 + $0xa0] sm:$0xf] }
  0x43   : > { %578 = vmatpush.bf16.msra.mxu0 %v1019_v32  ;;  %1054 = vmatpush.bf16.msra.mxu2 %v1019_v32  ;;  %v907_v23 = vor.u32 %v1010_v18, %v904_v19  ;;  %v1013_v27 = vld [vmem:[%s1274_s17 + $0xa4] sm:$0xf0]  ;;  %v1000_v28 = vld [vmem:[%s1274_s17 + $0x44] sm:$0xf]  ;;  %v864_v29 = vld [vmem:[%s1274_s17 + $0x48] sm:$0xf0]  ;;  %v863_v32 = vor.u32 %v1001_v25, %v862_v24 }
  0x44   : > { %647 = vmatpush.bf16.msra.mxu1 %v1027_v33  ;;  %1062 = vmatpush.bf16.msra.mxu3 %v1027_v33  ;;  %v1012_v30 = vld [vmem:[%s1274_s17 + $0xa4] sm:$0xf]  ;;  %v912_v31 = vld [vmem:[%s1274_s17 + $0xa8] sm:$0xf0]  ;;  %v911_v33 = vor.u32 %v1013_v27, %v910_v26  ;;  %v1002_v40 = vld [vmem:[%s1274_s17 + $0x54] sm:$0xf] }
  0x45   : > { %v872_v41 = vld [vmem:[%s1274_s17 + $0x58] sm:$0xf0]  ;;  %v1014_v42 = vld [vmem:[%s1274_s17 + $0xb4] sm:$0xf]  ;;  %v1345_v25 = vld [vmem:[%s1381_s2] ss:$0 sm:$0xff] }
  0x46   : > { %v920_v43 = vld [vmem:[%s1274_s17 + $0xb8] sm:$0xf0]  ;;  %v875_v46 = vor.u32 %v1002_v40, %v872_v41 }
  0x47   : > { %579 = vmatpush.bf16.msra.mxu0 %v1018_v34  ;;  %1055 = vmatpush.bf16.msra.mxu2 %v1018_v34  ;;  %v867_v34 = vor.u32 %v1000_v28, %v864_v29  ;;  %v923_v47 = vor.u32 %v1014_v42, %v920_v43 }
  0x48   : > { %648 = vmatpush.bf16.msra.mxu1 %v1026_v35  ;;  %1063 = vmatpush.bf16.msra.mxu3 %v1026_v35  ;;  %v915_v35 = vor.u32 %v1012_v30, %v912_v31 }
  0x4b   : > { %580 = vmatpush.bf16.msra.mxu0 %v1017_v36  ;;  %1056 = vmatpush.bf16.msra.mxu2 %v1017_v36  ;;  %v870_v36 = vld [vmem:[%s1274_s17 + $0x50] sm:$0xf] }
  0x4c   : > { %649 = vmatpush.bf16.msra.mxu1 %v1025_v37  ;;  %1064 = vmatpush.bf16.msra.mxu3 %v1025_v37  ;;  %v1003_v37 = vld [vmem:[%s1274_s17 + $0x54] sm:$0xf0] }
  0x4d   : > { %v871_v44 = vor.u32 %v1003_v37, %v870_v36 }
  0x4f   : > { %581 = vmatpush.bf16.msra.mxu0 %v1016_v38  ;;  %1057 = vmatpush.bf16.msra.mxu2 %v1016_v38  ;;  %v918_v38 = vld [vmem:[%s1274_s17 + $0xb0] sm:$0xf] }
  0x50   : > { %650 = vmatpush.bf16.msra.mxu1 %v1024_v39  ;;  %1065 = vmatpush.bf16.msra.mxu3 %v1024_v39  ;;  %v1015_v39 = vld [vmem:[%s1274_s17 + $0xb4] sm:$0xf0] }
  0x51   : > { %v919_v45 = vor.u32 %v1015_v39, %v918_v38 }
  0x52   : > { %582 = vmatmul.bf16.vlgmr.msra.gmra.mxu0 %v831_v48  ;;  %612 = vmatmul.bf16.vlgmr.msra.gmra.mxu2 %v879_v49 }
  0x53   : > { %651 = vmatmul.bf16.vlgmr.msra.gmra.mxu1 %v835_v50  ;;  %681 = vmatmul.bf16.vlgmr.msra.gmra.mxu3 %v883_v51 }
  0x62   : > { %587 = vmatmul.bf16.gmra.mxu0 %v839_v60  ;;  %617 = vmatmul.bf16.gmra.mxu2 %v887_v61 }
  0x63   : > { %656 = vmatmul.bf16.gmra.mxu1 %v843_v62  ;;  %686 = vmatmul.bf16.gmra.mxu3 %v891_v63 }
  0x72   : > { %592 = vmatmul.bf16.gmra.mxu0 %v847_v8  ;;  %622 = vmatmul.bf16.gmra.mxu2 %v895_v9 }
  0x73   : > { %661 = vmatmul.bf16.gmra.mxu1 %v851_v10  ;;  %691 = vmatmul.bf16.gmra.mxu3 %v899_v11 }
  0x82   : > { %597 = vmatmul.bf16.gmra.mxu0 %v855_v20  ;;  %627 = vmatmul.bf16.gmra.mxu2 %v903_v21 }
  0x83   : > { %666 = vmatmul.bf16.gmra.mxu1 %v859_v22  ;;  %696 = vmatmul.bf16.gmra.mxu3 %v907_v23 }
  0x92   : > { %602 = vmatmul.bf16.gmra.mxu0 %v863_v32  ;;  %632 = vmatmul.bf16.gmra.mxu2 %v911_v33 }
  0x93   : > { %671 = vmatmul.bf16.gmra.mxu1 %v867_v34  ;;  %701 = vmatmul.bf16.gmra.mxu3 %v915_v35 }
  0xa2   : > { %607 = vmatmul.bf16.gmra.mxu0 %v871_v44  ;;  %637 = vmatmul.bf16.gmra.mxu2 %v919_v45 }
  0xa3   : > { %676 = vmatmul.bf16.gmra.mxu1 %v875_v46  ;;  %706 = vmatmul.bf16.gmra.mxu3 %v923_v47 }
  0xcf   : > { %v583_v48 = vpop.f32.mrf.mxu0 }
  0xd0   : > { %v652_v49 = vpop.f32.mrf.mxu1 }
  0xd1   : > { %v653_v11 = vadd.f32 %v652_v49, %v583_v48 }
  0xd5   : > { %v613_v50 = vpop.f32.mrf.mxu2 }
  0xd6   : > { %v682_v51 = vpop.f32.mrf.mxu3 }
  0xd7   : > { %v585_v52 = vpop.f32.mrf.mxu0  ;;  %v683_v17 = vadd.f32 %v682_v51, %v613_v50 }
  0xd8   : > { %v654_v53 = vpop.f32.mrf.mxu1 }
  0xd9   : > { %v655_v18 = vadd.f32 %v654_v53, %v585_v52 }
  0xdd   : > { %v615_v54 = vpop.f32.mrf.mxu2 }
  0xde   : > { %v684_v55 = vpop.f32.mrf.mxu3 }
  0xdf   : > { %v588_v56 = vpop.f32.mrf.mxu0  ;;  %v685_v23 = vadd.f32 %v684_v55, %v615_v54 }
  0xe0   : > { %v657_v57 = vpop.f32.mrf.mxu1 }
  0xe1   : > { %v658_v36 = vadd.f32 %v657_v57, %v588_v56 }
  0xe5   : > { %v618_v58 = vpop.f32.mrf.mxu2 }
  0xe6   : > { %v687_v59 = vpop.f32.mrf.mxu3 }
  0xe7   : > { %v590_v60 = vpop.f32.mrf.mxu0  ;;  %v688_v45 = vadd.f32 %v687_v59, %v618_v58 }
  0xe8   : > { %v659_v61 = vpop.f32.mrf.mxu1 }
  0xe9   : > { %v660_v46 = vadd.f32 %v659_v61, %v590_v60 }
  0xed   : > { %v620_v62 = vpop.f32.mrf.mxu2 }
  0xee   : > { %v689_v63 = vpop.f32.mrf.mxu3 }
  0xef   : > { %v1324_v0 = vpop.f32.mrf.mxu0  ;;  %v690_v51 = vadd.f32 %v689_v63, %v620_v62 }
  0xf0   : > { %v1326_v1 = vpop.f32.mrf.mxu1 }
  0xf1   : > { %v663_v60 = vadd.f32 %v1326_v1, %v1324_v0 }
  0xf5   : > { %v1328_v2 = vpop.f32.mrf.mxu2 }
  0xf6   : > { %v1330_v3 = vpop.f32.mrf.mxu3 }
  0xf7   : > { %v1332_v4 = vpop.f32.mrf.mxu0 }
  0xf8   : > { %v1334_v5 = vpop.f32.mrf.mxu1 }
  0xfd   : > { %v1336_v6 = vpop.f32.mrf.mxu2 }
  0xfe   : > { %v1338_v7 = vpop.f32.mrf.mxu3 }
  0xff   : > { %v598_v8 = vpop.f32.mrf.mxu0  ;;  %v695_v1 = vadd.f32 %v1338_v7, %v1336_v6 }
 0x100   : > { %v667_v9 = vpop.f32.mrf.mxu1 }
 0x101   : > { %v668_v10 = vadd.f32 %v667_v9, %v598_v8 }
 0x103   : > { %v712_v14 = vmax.f32 %v653_v11, %v668_v10 }
 0x105   : > { %v628_v12 = vpop.f32.mrf.mxu2  ;;  %v713_v21 = vmax.f32 %v712_v14, %v683_v17  ;;  %v665_v17 = vadd.f32 %v1334_v5, %v1332_v4 }
 0x106   : > { %v697_v13 = vpop.f32.mrf.mxu3 }
 0x107   : > { %v600_v15 = vpop.f32.mrf.mxu0  ;;  %v698_v19 = vadd.f32 %v697_v13, %v628_v12 }
 0x108   : > { %v669_v16 = vpop.f32.mrf.mxu1 }
 0x109   : > { %v670_v20 = vadd.f32 %v669_v16, %v600_v15  ;;  %v714_v24 = vmax.f32 %v713_v21, %v698_v19  ;;  %v693_v16 = vadd.f32 %v1330_v3, %v1328_v2 }
 0x10b   : > { %v715_v22 = vmax.f32 %v655_v18, %v670_v20  ;;  %v734_v32 = vadd.f32 %v1345_v25, %v714_v24 }
 0x10d   : > { %v630_v26 = vpop.f32.mrf.mxu2  ;;  %v716_v29 = vmax.f32 %v715_v22, %v685_v23  ;;  %v740_v37 = vmax.f32 %v734_v32, 0.0 }
 0x10e   : > { %v699_v27 = vpop.f32.mrf.mxu3 }
 0x10f   : > { %v700_v28 = vadd.f32 %v699_v27, %v630_v26  ;;  %v603_v30 = vpop.f32.mrf.mxu0 }
 0x110   : > { %v672_v31 = vpop.f32.mrf.mxu1 }
 0x111   : > { %v717_v33 = vmax.f32 %v716_v29, %v700_v28  ;;  %v673_v35 = vadd.f32 %v672_v31, %v603_v30 }
 0x113   : > { %v735_v34 = vadd.f32 %v1345_v25, %v717_v33  ;;  %v718_v42 = vmax.f32 %v658_v36, %v673_v35 }
 0x115   : > { %v741_v38 = vmax.f32 %v735_v34, 0.0  ;;  %v633_v39 = vpop.f32.mrf.mxu2  ;;  %v719_v49 = vmax.f32 %v718_v42, %v688_v45 }
 0x116   : > { %v702_v40 = vpop.f32.mrf.mxu3 }
 0x117   : > { %v1035_v41 = vpack.c.bf16 %v741_v38, %v740_v37  ;;  %v605_v43 = vpop.f32.mrf.mxu0  ;;  %v703_v47 = vadd.f32 %v702_v40, %v633_v39 }
 0x118   : > { %v674_v44 = vpop.f32.mrf.mxu1 }
 0x119   : > { %1036 = vst [vmem:[%s1352_s23] sm:$0xff] %v1035_v41   ;;  %v675_v48 = vadd.f32 %v674_v44, %v605_v43  ;;  %v720_v52 = vmax.f32 %v719_v49, %v703_v47 }
 0x11b   : > { %v721_v50 = vmax.f32 %v660_v46, %v675_v48  ;;  %v736_v9 = vadd.f32 %v1345_v25, %v720_v52 }
 0x11d   : > { %v635_v53 = vpop.f32.mrf.mxu2  ;;  %v722_v56 = vmax.f32 %v721_v50, %v690_v51  ;;  %v742_v61 = vmax.f32 %v736_v9, 0.0 }
 0x11e   : > { %v704_v54 = vpop.f32.mrf.mxu3 }
 0x11f   : > { %v705_v55 = vadd.f32 %v704_v54, %v635_v53  ;;  %v608_v57 = vpop.f32.mrf.mxu0 }
 0x120   : > { %v677_v8 = vpop.f32.mrf.mxu1 }
 0x121   : > { %v723_v10 = vmax.f32 %v722_v56, %v705_v55  ;;  %v678_v59 = vadd.f32 %v677_v8, %v608_v57 }
 0x123   : > { %v737_v58 = vadd.f32 %v1345_v25, %v723_v10  ;;  %v724_v13 = vmax.f32 %v663_v60, %v678_v59 }
 0x125   : > { %v743_v11 = vmax.f32 %v737_v58, 0.0  ;;  %v638_v62 = vpop.f32.mrf.mxu2  ;;  %v725_v20 = vmax.f32 %v724_v13, %v693_v16 }
 0x126   : > { %v707_v63 = vpop.f32.mrf.mxu3 }
 0x127   : > { %v1040_v12 = vpack.c.bf16 %v743_v11, %v742_v61  ;;  %v610_v14 = vpop.f32.mrf.mxu0  ;;  %v708_v18 = vadd.f32 %v707_v63, %v638_v62 }
 0x128   : > { %v679_v15 = vpop.f32.mrf.mxu1 }
 0x129   : > { %1048 = vst [vmem:[%s1352_s23 + $0x8] sm:$0xff] %v1040_v12   ;;  %v680_v19 = vadd.f32 %v679_v15, %v610_v14  ;;  %v726_v21 = vmax.f32 %v725_v20, %v708_v18 }
 0x12b   : > { %v727_v0 = vmax.f32 %v665_v17, %v680_v19  ;;  %v738_v27 = vadd.f32 %v1345_v25, %v726_v21 }
 0x12d   : > { %v640_v22 = vpop.f32.mrf.mxu2  ;;  %v728_v26 = vmax.f32 %v727_v0, %v695_v1  ;;  %v744_v4 = vmax.f32 %v738_v27, 0.0 }
 0x12e   : > { %v709_v23 = vpop.f32.mrf.mxu3 }
 0x12f   : > { %v710_v24 = vadd.f32 %v709_v23, %v640_v22 }
 0x131   : > { %v729_v2 = vmax.f32 %v728_v26, %v710_v24 }
 0x133   : > { %v739_v3 = vadd.f32 %v1345_v25, %v729_v2 }
 0x135   : > { %v745_v5 = vmax.f32 %v739_v3, 0.0 }
 0x137   : > { %v1045_v28 = vpack.c.bf16 %v745_v5, %v744_v4 }
 0x139   : > { %1049 = vst [vmem:[%s1352_s23 + $0x10] sm:$0xff] %v1045_v28  }
 0x13a PF: > { %p10_p9 = scmp.ge.s32.totalorder %s1154_s16, 4   ;;  %s1383_s12 = smov %s1111_s13 }
 0x13b   : > { %s1384_s13 = smov %s1163_s19  ;;  %s1385_s14 = smov %s1154_s16 }
 0x13c   :  { %12 = sbr.rel (!%p10_p9) target bundleno = 2 (0x2), region = 105 }

// kernel: cnn_net_forward.5
= control target key start
LH: loop header
LB: loop body
LE: loop exit
PB: predicated region body
PF: predicated region fallthrough
CT: control target
= control target key end

     0   :  { %s5958_s1 = inlined_call_operand.vmem [shape: bf16[4608,128], index: 1, kind: input, shape index: {}]   ;;  %s5959_s0 = inlined_call_operand.vmem [shape: bf16[16,4608], index: 0, kind: input, shape index: {}]   ;;  %s5960_s2 = inlined_call_operand.vmem [shape: f32[1,128], index: 2, kind: input, shape index: {}]   ;;  %s5961_s4 = inlined_call_operand.vmem [shape: f32[1,128], index: 4, kind: input, shape index: {}]   ;;  %s5962_s3 = inlined_call_operand.vmem [shape: bf16[128,128], index: 3, kind: input, shape index: {}]   ;;  %s5963_s5 = inlined_call_operand.vmem [shape: f32[16,128], index: 5, kind: output, shape index: {}]  }
   0x1   :  { %v4512_v0 = vld [vmem:[%s5958_s1 + $0x38] sm:$0xff]  ;;  %v4511_v4 = vld [vmem:[%s5958_s1 + $0x30] sm:$0xff]  ;;  %v4510_v8 = vld [vmem:[%s5958_s1 + $0x28] sm:$0xff] }
   0x2   :  { %v4520_v1 = vld [vmem:[%s5958_s1 + $0x78] sm:$0xff]  ;;  %2544 = vmatpush.bf16.msra.mxu0 %v4512_v0  ;;  %v4519_v5 = vld [vmem:[%s5958_s1 + $0x70] sm:$0xff]  ;;  %v4518_v9 = vld [vmem:[%s5958_s1 + $0x68] sm:$0xff] }
   0x3   :  { %v4528_v2 = vld [vmem:[%s5958_s1 + $0xb8] sm:$0xff]  ;;  %2558 = vmatpush.bf16.msra.mxu1 %v4520_v1  ;;  %v4527_v6 = vld [vmem:[%s5958_s1 + $0xb0] sm:$0xff]  ;;  %v4526_v10 = vld [vmem:[%s5958_s1 + $0xa8] sm:$0xff] }
   0x4   :  { %v4536_v3 = vld [vmem:[%s5958_s1 + $0xf8] sm:$0xff]  ;;  %2572 = vmatpush.bf16.msra.mxu2 %v4528_v2  ;;  %v4535_v7 = vld [vmem:[%s5958_s1 + $0xf0] sm:$0xff]  ;;  %v4534_v11 = vld [vmem:[%s5958_s1 + $0xe8] sm:$0xff] }
   0x5   :  { %2586 = vmatpush.bf16.msra.mxu3 %v4536_v3  ;;  %v4509_v12 = vld [vmem:[%s5958_s1 + $0x20] sm:$0xff]  ;;  %v4508_v16 = vld [vmem:[%s5958_s1 + $0x18] sm:$0xff]  ;;  %v4507_v20 = vld [vmem:[%s5958_s1 + $0x10] sm:$0xff] }
   0x6   :  { %2545 = vmatpush.bf16.msra.mxu0 %v4511_v4  ;;  %v4517_v13 = vld [vmem:[%s5958_s1 + $0x60] sm:$0xff]  ;;  %v4516_v17 = vld [vmem:[%s5958_s1 + $0x58] sm:$0xff]  ;;  %v4515_v21 = vld [vmem:[%s5958_s1 + $0x50] sm:$0xff] }
   0x7   :  { %2559 = vmatpush.bf16.msra.mxu1 %v4519_v5  ;;  %v4525_v14 = vld [vmem:[%s5958_s1 + $0xa0] sm:$0xff]  ;;  %v4524_v18 = vld [vmem:[%s5958_s1 + $0x98] sm:$0xff]  ;;  %v4523_v22 = vld [vmem:[%s5958_s1 + $0x90] sm:$0xff] }
   0x8   :  { %2573 = vmatpush.bf16.msra.mxu2 %v4527_v6  ;;  %v4533_v15 = vld [vmem:[%s5958_s1 + $0xe0] sm:$0xff]  ;;  %v4532_v19 = vld [vmem:[%s5958_s1 + $0xd8] sm:$0xff]  ;;  %v4531_v23 = vld [vmem:[%s5958_s1 + $0xd0] sm:$0xff] }
   0x9   :  { %2587 = vmatpush.bf16.msra.mxu3 %v4535_v7  ;;  %v4506_v24 = vld [vmem:[%s5958_s1 + $0x8] sm:$0xff]  ;;  %v4505_v28 = vld [vmem:[%s5958_s1] sm:$0xff]  ;;  %v4544_v32 = vld [vmem:[%s5958_s1 + $0x138] sm:$0xff] }
   0xa   :  { %2546 = vmatpush.bf16.msra.mxu0 %v4510_v8  ;;  %v4514_v25 = vld [vmem:[%s5958_s1 + $0x48] sm:$0xff]  ;;  %v4513_v29 = vld [vmem:[%s5958_s1 + $0x40] sm:$0xff]  ;;  %v4552_v33 = vld [vmem:[%s5958_s1 + $0x178] sm:$0xff] }
   0xb   :  { %2560 = vmatpush.bf16.msra.mxu1 %v4518_v9  ;;  %v4522_v26 = vld [vmem:[%s5958_s1 + $0x88] sm:$0xff]  ;;  %v4521_v30 = vld [vmem:[%s5958_s1 + $0x80] sm:$0xff]  ;;  %v4487_v35 = vld [vmem:[%s5959_s0 + $0x8c] sm:$0xf0] }
   0xc   :  { %2574 = vmatpush.bf16.msra.mxu2 %v4526_v10  ;;  %v4530_v27 = vld [vmem:[%s5958_s1 + $0xc8] sm:$0xff]  ;;  %v4529_v31 = vld [vmem:[%s5958_s1 + $0xc0] sm:$0xff]  ;;  %v4488_v37 = vld [vmem:[%s5959_s0 + $0x94] sm:$0xf0] }
   0xd   :  { %2588 = vmatpush.bf16.msra.mxu3 %v4534_v11  ;;  %v3143_v34 = vld [vmem:[%s5959_s0] sm:$0xf]  ;;  %v3151_v36 = vld [vmem:[%s5959_s0 + $0x8] sm:$0xf]  ;;  %v4469_v38 = vld [vmem:[%s5959_s0 + $0x4] sm:$0xf] }
   0xe   :  { %2547 = vmatpush.bf16.msra.mxu0 %v4509_v12  ;;  %v3145_v39 = vld [vmem:[%s5959_s0 + $0x90] sm:$0xf0]  ;;  %v4470_v40 = vld [vmem:[%s5959_s0 + $0xc] sm:$0xf]  ;;  %v3153_v41 = vld [vmem:[%s5959_s0 + $0x98] sm:$0xf0]  ;;  %v3144_v44 = vor.u32 %v4487_v35, %v3143_v34  ;;  %v3152_v45 = vor.u32 %v4488_v37, %v3151_v36 }
   0xf   :  { %2561 = vmatpush.bf16.msra.mxu1 %v4517_v13  ;;  %v4560_v42 = vld [vmem:[%s5958_s1 + $0x1b8] sm:$0xff]  ;;  %v3148_v46 = vor.u32 %v4469_v38, %v3145_v39  ;;  %v3156_v47 = vor.u32 %v4470_v40, %v3153_v41  ;;  %v4543_v48 = vld [vmem:[%s5958_s1 + $0x130] sm:$0xff]  ;;  %v4542_v52 = vld [vmem:[%s5958_s1 + $0x128] sm:$0xff] }
  0x10   :  { %2575 = vmatpush.bf16.msra.mxu2 %v4525_v14  ;;  %v4568_v43 = vld [vmem:[%s5958_s1 + $0x1f8] sm:$0xff]  ;;  %v4551_v49 = vld [vmem:[%s5958_s1 + $0x170] sm:$0xff]  ;;  %v4550_v53 = vld [vmem:[%s5958_s1 + $0x168] sm:$0xff] }
  0x11   :  { %2589 = vmatpush.bf16.msra.mxu3 %v4533_v15  ;;  %v4559_v50 = vld [vmem:[%s5958_s1 + $0x1b0] sm:$0xff]  ;;  %v4558_v54 = vld [vmem:[%s5958_s1 + $0x1a8] sm:$0xff]  ;;  %v4541_v56 = vld [vmem:[%s5958_s1 + $0x120] sm:$0xff] }
  0x12   :  { %2548 = vmatpush.bf16.msra.mxu0 %v4508_v16  ;;  %v4567_v51 = vld [vmem:[%s5958_s1 + $0x1f0] sm:$0xff]  ;;  %v4566_v55 = vld [vmem:[%s5958_s1 + $0x1e8] sm:$0xff]  ;;  %v4549_v57 = vld [vmem:[%s5958_s1 + $0x160] sm:$0xff] }
  0x13   :  { %2562 = vmatpush.bf16.msra.mxu1 %v4516_v17  ;;  %v4557_v58 = vld [vmem:[%s5958_s1 + $0x1a0] sm:$0xff]  ;;  %v4540_v60 = vld [vmem:[%s5958_s1 + $0x118] sm:$0xff]  ;;  %v4539_v0 = vld [vmem:[%s5958_s1 + $0x110] sm:$0xff] }
  0x14   :  { %2576 = vmatpush.bf16.msra.mxu2 %v4524_v18  ;;  %v4565_v59 = vld [vmem:[%s5958_s1 + $0x1e0] sm:$0xff]  ;;  %v4548_v61 = vld [vmem:[%s5958_s1 + $0x158] sm:$0xff]  ;;  %v4547_v1 = vld [vmem:[%s5958_s1 + $0x150] sm:$0xff] }
  0x15   :  { %2590 = vmatpush.bf16.msra.mxu3 %v4532_v19  ;;  %v4556_v62 = vld [vmem:[%s5958_s1 + $0x198] sm:$0xff]  ;;  %v4555_v2 = vld [vmem:[%s5958_s1 + $0x190] sm:$0xff]  ;;  %v4538_v4 = vld [vmem:[%s5958_s1 + $0x108] sm:$0xff] }
  0x16   :  { %2549 = vmatpush.bf16.msra.mxu0 %v4507_v20  ;;  %v4564_v63 = vld [vmem:[%s5958_s1 + $0x1d8] sm:$0xff]  ;;  %v4563_v3 = vld [vmem:[%s5958_s1 + $0x1d0] sm:$0xff]  ;;  %v4546_v5 = vld [vmem:[%s5958_s1 + $0x148] sm:$0xff] }
  0x17   :  { %2563 = vmatpush.bf16.msra.mxu1 %v4515_v21  ;;  %v4554_v6 = vld [vmem:[%s5958_s1 + $0x188] sm:$0xff]  ;;  %v4537_v8 = vld [vmem:[%s5958_s1 + $0x100] sm:$0xff]  ;;  %v4576_v12 = vld [vmem:[%s5958_s1 + $0x238] sm:$0xff] }
  0x18   :  { %2577 = vmatpush.bf16.msra.mxu2 %v4523_v22  ;;  %v4562_v7 = vld [vmem:[%s5958_s1 + $0x1c8] sm:$0xff]  ;;  %v4545_v9 = vld [vmem:[%s5958_s1 + $0x140] sm:$0xff]  ;;  %v4584_v13 = vld [vmem:[%s5958_s1 + $0x278] sm:$0xff] }
  0x19   :  { %2591 = vmatpush.bf16.msra.mxu3 %v4531_v23  ;;  %v4553_v10 = vld [vmem:[%s5958_s1 + $0x180] sm:$0xff]  ;;  %v3159_v14 = vld [vmem:[%s5959_s0 + $0x10] sm:$0xf]  ;;  %v3167_v16 = vld [vmem:[%s5959_s0 + $0x18] sm:$0xf] }
  0x1a   :  { %2550 = vmatpush.bf16.msra.mxu0 %v4506_v24  ;;  %v4561_v11 = vld [vmem:[%s5958_s1 + $0x1c0] sm:$0xff]  ;;  %v4490_v17 = vld [vmem:[%s5959_s0 + $0xa4] sm:$0xf0]  ;;  %v4471_v18 = vld [vmem:[%s5959_s0 + $0x14] sm:$0xf] }
  0x1b   :  { %2564 = vmatpush.bf16.msra.mxu1 %v4514_v25  ;;  %v4489_v15 = vld [vmem:[%s5959_s0 + $0x9c] sm:$0xf0]  ;;  %v3161_v19 = vld [vmem:[%s5959_s0 + $0xa0] sm:$0xf0]  ;;  %v4472_v20 = vld [vmem:[%s5959_s0 + $0x1c] sm:$0xf]  ;;  %v3168_v25 = vor.u32 %v4490_v17, %v3167_v16 }
  0x1c   :  { %2578 = vmatpush.bf16.msra.mxu2 %v4522_v26  ;;  %v3169_v21 = vld [vmem:[%s5959_s0 + $0xa8] sm:$0xf0]  ;;  %v4592_v22 = vld [vmem:[%s5958_s1 + $0x2b8] sm:$0xff]  ;;  %v3160_v24 = vor.u32 %v4489_v15, %v3159_v14  ;;  %v3164_v26 = vor.u32 %v4471_v18, %v3161_v19  ;;  %v4573_v36 = vld [vmem:[%s5958_s1 + $0x220] sm:$0xff] }
  0x1d   :  { %2592 = vmatpush.bf16.msra.mxu3 %v4530_v27  ;;  %v4600_v23 = vld [vmem:[%s5958_s1 + $0x2f8] sm:$0xff]  ;;  %v3172_v27 = vor.u32 %v4472_v20, %v3169_v21  ;;  %v4590_v34 = vld [vmem:[%s5958_s1 + $0x2a8] sm:$0xff]  ;;  %v4581_v37 = vld [vmem:[%s5958_s1 + $0x260] sm:$0xff] }
  0x1e   :  { %2551 = vmatpush.bf16.msra.mxu0 %v4505_v28  ;;  %v4575_v28 = vld [vmem:[%s5958_s1 + $0x230] sm:$0xff]  ;;  %v4598_v35 = vld [vmem:[%s5958_s1 + $0x2e8] sm:$0xff]  ;;  %v4589_v38 = vld [vmem:[%s5958_s1 + $0x2a0] sm:$0xff] }
  0x1f   :  { %2565 = vmatpush.bf16.msra.mxu1 %v4513_v29  ;;  %v4583_v29 = vld [vmem:[%s5958_s1 + $0x270] sm:$0xff]  ;;  %v4597_v39 = vld [vmem:[%s5958_s1 + $0x2e0] sm:$0xff]  ;;  %v4572_v40 = vld [vmem:[%s5958_s1 + $0x218] sm:$0xff] }
  0x20   :  { %2579 = vmatpush.bf16.msra.mxu2 %v4521_v30  ;;  %v4591_v30 = vld [vmem:[%s5958_s1 + $0x2b0] sm:$0xff]  ;;  %v4580_v41 = vld [vmem:[%s5958_s1 + $0x258] sm:$0xff]  ;;  %v4622_v14 = vld [vmem:[%s5958_s1 + $0x3a8] sm:$0xff] }
  0x21   :  { %2593 = vmatpush.bf16.msra.mxu3 %v4529_v31  ;;  %2552 = vmatmul.bf16.vlgmr.msra.gmra.mxu0 %v3144_v44  ;;  %v4599_v31 = vld [vmem:[%s5958_s1 + $0x2f0] sm:$0xff]  ;;  %v4630_v15 = vld [vmem:[%s5958_s1 + $0x3e8] sm:$0xff]  ;;  %v4605_v16 = vld [vmem:[%s5958_s1 + $0x320] sm:$0xff] }
  0x22   :  { %2600 = vmatpush.bf16.msrb.mxu0 %v4544_v32  ;;  %2566 = vmatmul.bf16.vlgmr.msra.gmra.mxu1 %v3148_v46  ;;  %v4574_v32 = vld [vmem:[%s5958_s1 + $0x228] sm:$0xff]  ;;  %v4571_v44 = vld [vmem:[%s5958_s1 + $0x210] sm:$0xff]  ;;  %v4613_v17 = vld [vmem:[%s5958_s1 + $0x360] sm:$0xff] }
  0x23   :  { %2614 = vmatpush.bf16.msrb.mxu1 %v4552_v33  ;;  %2580 = vmatmul.bf16.vlgmr.msra.gmra.mxu2 %v3152_v45  ;;  %v4582_v33 = vld [vmem:[%s5958_s1 + $0x268] sm:$0xff]  ;;  %v4579_v45 = vld [vmem:[%s5958_s1 + $0x250] sm:$0xff]  ;;  %v4621_v18 = vld [vmem:[%s5958_s1 + $0x3a0] sm:$0xff] }
  0x24   :  { %2628 = vmatpush.bf16.msrb.mxu2 %v4560_v42  ;;  %2594 = vmatmul.bf16.vlgmr.msra.gmra.mxu3 %v3156_v47  ;;  %v4588_v42 = vld [vmem:[%s5958_s1 + $0x298] sm:$0xff]  ;;  %v4587_v46 = vld [vmem:[%s5958_s1 + $0x290] sm:$0xff]  ;;  %v4629_v19 = vld [vmem:[%s5958_s1 + $0x3e0] sm:$0xff] }
  0x25   :  { %2642 = vmatpush.bf16.msrb.mxu3 %v4568_v43  ;;  %v4596_v43 = vld [vmem:[%s5958_s1 + $0x2d8] sm:$0xff]  ;;  %v4595_v47 = vld [vmem:[%s5958_s1 + $0x2d0] sm:$0xff] }
  0x26   :  { %2601 = vmatpush.bf16.msrb.mxu0 %v4543_v48  ;;  %v4570_v48 = vld [vmem:[%s5958_s1 + $0x208] sm:$0xff]  ;;  %v4604_v20 = vld [vmem:[%s5958_s1 + $0x318] sm:$0xff] }
  0x27   :  { %2615 = vmatpush.bf16.msrb.mxu1 %v4551_v49  ;;  %v4578_v49 = vld [vmem:[%s5958_s1 + $0x248] sm:$0xff]  ;;  %v4612_v21 = vld [vmem:[%s5958_s1 + $0x358] sm:$0xff] }
  0x28   :  { %2629 = vmatpush.bf16.msrb.mxu2 %v4559_v50  ;;  %v4586_v50 = vld [vmem:[%s5958_s1 + $0x288] sm:$0xff] }
  0x29   :  { %2643 = vmatpush.bf16.msrb.mxu3 %v4567_v51  ;;  %v4594_v51 = vld [vmem:[%s5958_s1 + $0x2c8] sm:$0xff] }
  0x2a   :  { %2602 = vmatpush.bf16.msrb.mxu0 %v4542_v52  ;;  %v4569_v52 = vld [vmem:[%s5958_s1 + $0x200] sm:$0xff] }
  0x2b   :  { %2616 = vmatpush.bf16.msrb.mxu1 %v4550_v53  ;;  %v4577_v53 = vld [vmem:[%s5958_s1 + $0x240] sm:$0xff] }
  0x2c   :  { %2630 = vmatpush.bf16.msrb.mxu2 %v4558_v54  ;;  %v4585_v54 = vld [vmem:[%s5958_s1 + $0x280] sm:$0xff] }
  0x2d   :  { %2644 = vmatpush.bf16.msrb.mxu3 %v4566_v55  ;;  %v4593_v55 = vld [vmem:[%s5958_s1 + $0x2c0] sm:$0xff] }
  0x2e   :  { %2603 = vmatpush.bf16.msrb.mxu0 %v4541_v56  ;;  %v4608_v56 = vld [vmem:[%s5958_s1 + $0x338] sm:$0xff] }
  0x2f   :  { %2617 = vmatpush.bf16.msrb.mxu1 %v4549_v57  ;;  %v4616_v57 = vld [vmem:[%s5958_s1 + $0x378] sm:$0xff] }
  0x30   :  { %2631 = vmatpush.bf16.msrb.mxu2 %v4557_v58  ;;  %v3175_v58 = vld [vmem:[%s5959_s0 + $0x20] sm:$0xf] }
  0x31   :  { %2645 = vmatpush.bf16.msrb.mxu3 %v4565_v59  ;;  %v4491_v59 = vld [vmem:[%s5959_s0 + $0xac] sm:$0xf0] }
  0x32   :  { %2604 = vmatpush.bf16.msrb.mxu0 %v4540_v60  ;;  %v3183_v60 = vld [vmem:[%s5959_s0 + $0x28] sm:$0xf] }
  0x33   :  { %2618 = vmatpush.bf16.msrb.mxu1 %v4548_v61  ;;  %v4492_v61 = vld [vmem:[%s5959_s0 + $0xb4] sm:$0xf0] }
  0x34   :  { %2632 = vmatpush.bf16.msrb.mxu2 %v4556_v62  ;;  %v4473_v62 = vld [vmem:[%s5959_s0 + $0x24] sm:$0xf] }
  0x35   :  { %2646 = vmatpush.bf16.msrb.mxu3 %v4564_v63  ;;  %v3177_v63 = vld [vmem:[%s5959_s0 + $0xb0] sm:$0xf0] }
  0x36   :  { %2605 = vmatpush.bf16.msrb.mxu0 %v4539_v0  ;;  %v4474_v0 = vld [vmem:[%s5959_s0 + $0x2c] sm:$0xf] }
  0x37   :  { %2619 = vmatpush.bf16.msrb.mxu1 %v4547_v1  ;;  %v3185_v1 = vld [vmem:[%s5959_s0 + $0xb8] sm:$0xf0] }
  0x38   :  { %2633 = vmatpush.bf16.msrb.mxu2 %v4555_v2  ;;  %v4624_v2 = vld [vmem:[%s5958_s1 + $0x3b8] sm:$0xff] }
  0x39   :  { %2647 = vmatpush.bf16.msrb.mxu3 %v4563_v3  ;;  %v4632_v3 = vld [vmem:[%s5958_s1 + $0x3f8] sm:$0xff] }
  0x3a   :  { %2606 = vmatpush.bf16.msrb.mxu0 %v4538_v4  ;;  %v3176_v4 = vor.u32 %v4491_v59, %v3175_v58  ;;  %v4654_v58 = vld [vmem:[%s5958_s1 + $0x4a8] sm:$0xff] }
  0x3b   :  { %2620 = vmatpush.bf16.msrb.mxu1 %v4546_v5  ;;  %v3184_v5 = vor.u32 %v4492_v61, %v3183_v60  ;;  %v4662_v59 = vld [vmem:[%s5958_s1 + $0x4e8] sm:$0xff]  ;;  %v4637_v60 = vld [vmem:[%s5958_s1 + $0x420] sm:$0xff] }
  0x3c   :  { %2634 = vmatpush.bf16.msrb.mxu2 %v4554_v6  ;;  %v3180_v6 = vor.u32 %v4473_v62, %v3177_v63  ;;  %v4645_v61 = vld [vmem:[%s5958_s1 + $0x460] sm:$0xff] }
  0x3d   :  { %2648 = vmatpush.bf16.msrb.mxu3 %v4562_v7  ;;  %v3188_v7 = vor.u32 %v4474_v0, %v3185_v1  ;;  %v4653_v62 = vld [vmem:[%s5958_s1 + $0x4a0] sm:$0xff]  ;;  %v4636_v0 = vld [vmem:[%s5958_s1 + $0x418] sm:$0xff] }
  0x3e   :  { %2607 = vmatpush.bf16.msrb.mxu0 %v4537_v8  ;;  %v4607_v8 = vld [vmem:[%s5958_s1 + $0x330] sm:$0xff]  ;;  %v4661_v63 = vld [vmem:[%s5958_s1 + $0x4e0] sm:$0xff]  ;;  %v4644_v1 = vld [vmem:[%s5958_s1 + $0x458] sm:$0xff] }
  0x3f   :  { %2621 = vmatpush.bf16.msrb.mxu1 %v4545_v9  ;;  %v4615_v9 = vld [vmem:[%s5958_s1 + $0x370] sm:$0xff] }
  0x40   :  { %2635 = vmatpush.bf16.msrb.mxu2 %v4553_v10  ;;  %v4623_v10 = vld [vmem:[%s5958_s1 + $0x3b0] sm:$0xff] }
  0x41   :  { %2649 = vmatpush.bf16.msrb.mxu3 %v4561_v11  ;;  %2608 = vmatmul.bf16.vlgmr.msrb.gmra.mxu0 %v3160_v24  ;;  %v4631_v11 = vld [vmem:[%s5958_s1 + $0x3f0] sm:$0xff] }
  0x42   :  { %2656 = vmatpush.bf16.msra.mxu0 %v4576_v12  ;;  %2622 = vmatmul.bf16.vlgmr.msrb.gmra.mxu1 %v3164_v26  ;;  %v4606_v12 = vld [vmem:[%s5958_s1 + $0x328] sm:$0xff]  ;;  %v4603_v24 = vld [vmem:[%s5958_s1 + $0x310] sm:$0xff] }
  0x43   :  { %2670 = vmatpush.bf16.msra.mxu1 %v4584_v13  ;;  %2636 = vmatmul.bf16.vlgmr.msrb.gmra.mxu2 %v3168_v25  ;;  %v4614_v13 = vld [vmem:[%s5958_s1 + $0x368] sm:$0xff]  ;;  %v4611_v25 = vld [vmem:[%s5958_s1 + $0x350] sm:$0xff] }
  0x44   :  { %2684 = vmatpush.bf16.msra.mxu2 %v4592_v22  ;;  %2650 = vmatmul.bf16.vlgmr.msrb.gmra.mxu3 %v3172_v27  ;;  %v4620_v22 = vld [vmem:[%s5958_s1 + $0x398] sm:$0xff]  ;;  %v4619_v26 = vld [vmem:[%s5958_s1 + $0x390] sm:$0xff] }
  0x45   :  { %2698 = vmatpush.bf16.msra.mxu3 %v4600_v23  ;;  %v4628_v23 = vld [vmem:[%s5958_s1 + $0x3d8] sm:$0xff]  ;;  %v4627_v27 = vld [vmem:[%s5958_s1 + $0x3d0] sm:$0xff] }
  0x46   :  { %2657 = vmatpush.bf16.msra.mxu0 %v4575_v28  ;;  %v4602_v28 = vld [vmem:[%s5958_s1 + $0x308] sm:$0xff] }
  0x47   :  { %2671 = vmatpush.bf16.msra.mxu1 %v4583_v29  ;;  %v4610_v29 = vld [vmem:[%s5958_s1 + $0x348] sm:$0xff] }
  0x48   :  { %2685 = vmatpush.bf16.msra.mxu2 %v4591_v30  ;;  %v4618_v30 = vld [vmem:[%s5958_s1 + $0x388] sm:$0xff] }
  0x49   :  { %2699 = vmatpush.bf16.msra.mxu3 %v4599_v31  ;;  %v4626_v31 = vld [vmem:[%s5958_s1 + $0x3c8] sm:$0xff] }
  0x4a   :  { %2658 = vmatpush.bf16.msra.mxu0 %v4574_v32  ;;  %v4601_v32 = vld [vmem:[%s5958_s1 + $0x300] sm:$0xff] }
  0x4b   :  { %2672 = vmatpush.bf16.msra.mxu1 %v4582_v33  ;;  %v4609_v33 = vld [vmem:[%s5958_s1 + $0x340] sm:$0xff] }
  0x4c   :  { %2686 = vmatpush.bf16.msra.mxu2 %v4590_v34  ;;  %v4617_v34 = vld [vmem:[%s5958_s1 + $0x380] sm:$0xff] }
  0x4d   :  { %2700 = vmatpush.bf16.msra.mxu3 %v4598_v35  ;;  %v4625_v35 = vld [vmem:[%s5958_s1 + $0x3c0] sm:$0xff] }
  0x4e   :  { %2659 = vmatpush.bf16.msra.mxu0 %v4573_v36  ;;  %v4640_v36 = vld [vmem:[%s5958_s1 + $0x438] sm:$0xff] }
  0x4f   :  { %2673 = vmatpush.bf16.msra.mxu1 %v4581_v37  ;;  %v4648_v37 = vld [vmem:[%s5958_s1 + $0x478] sm:$0xff] }
  0x50   :  { %2687 = vmatpush.bf16.msra.mxu2 %v4589_v38  ;;  %v3191_v38 = vld [vmem:[%s5959_s0 + $0x30] sm:$0xf] }
  0x51   :  { %2701 = vmatpush.bf16.msra.mxu3 %v4597_v39  ;;  %v4493_v39 = vld [vmem:[%s5959_s0 + $0xbc] sm:$0xf0] }
  0x52   :  { %2660 = vmatpush.bf16.msra.mxu0 %v4572_v40  ;;  %v3199_v40 = vld [vmem:[%s5959_s0 + $0x38] sm:$0xf] }
  0x53   :  { %2674 = vmatpush.bf16.msra.mxu1 %v4580_v41  ;;  %v4494_v41 = vld [vmem:[%s5959_s0 + $0xc4] sm:$0xf0] }
  0x54   :  { %2688 = vmatpush.bf16.msra.mxu2 %v4588_v42  ;;  %v4475_v42 = vld [vmem:[%s5959_s0 + $0x34] sm:$0xf] }
  0x55   :  { %2702 = vmatpush.bf16.msra.mxu3 %v4596_v43  ;;  %v3193_v43 = vld [vmem:[%s5959_s0 + $0xc0] sm:$0xf0] }
  0x56   :  { %2661 = vmatpush.bf16.msra.mxu0 %v4571_v44  ;;  %v4476_v44 = vld [vmem:[%s5959_s0 + $0x3c] sm:$0xf] }
  0x57   :  { %2675 = vmatpush.bf16.msra.mxu1 %v4579_v45  ;;  %v3201_v45 = vld [vmem:[%s5959_s0 + $0xc8] sm:$0xf0] }
  0x58   :  { %2689 = vmatpush.bf16.msra.mxu2 %v4587_v46  ;;  %v4656_v46 = vld [vmem:[%s5958_s1 + $0x4b8] sm:$0xff] }
  0x59   :  { %2703 = vmatpush.bf16.msra.mxu3 %v4595_v47  ;;  %v4664_v47 = vld [vmem:[%s5958_s1 + $0x4f8] sm:$0xff] }
  0x5a   :  { %2662 = vmatpush.bf16.msra.mxu0 %v4570_v48  ;;  %v3192_v48 = vor.u32 %v4493_v39, %v3191_v38  ;;  %v4801_v38 = vld [vmem:[%s5960_s2] ss:$0 sm:$0xff]  ;;  %v4686_v39 = vld [vmem:[%s5958_s1 + $0x5a8] sm:$0xff] }
  0x5b   :  { %2676 = vmatpush.bf16.msra.mxu1 %v4578_v49  ;;  %v3200_v49 = vor.u32 %v4494_v41, %v3199_v40  ;;  %v4694_v40 = vld [vmem:[%s5958_s1 + $0x5e8] sm:$0xff] }
  0x5c   :  { %2690 = vmatpush.bf16.msra.mxu2 %v4586_v50  ;;  %v3196_v50 = vor.u32 %v4475_v42, %v3193_v43  ;;  %v4669_v42 = vld [vmem:[%s5958_s1 + $0x520] sm:$0xff] }
  0x5d   :  { %2704 = vmatpush.bf16.msra.mxu3 %v4594_v51  ;;  %v3204_v51 = vor.u32 %v4476_v44, %v3201_v45  ;;  %v4677_v43 = vld [vmem:[%s5958_s1 + $0x560] sm:$0xff] }
  0x5e   :  { %2663 = vmatpush.bf16.msra.mxu0 %v4569_v52  ;;  %v4639_v52 = vld [vmem:[%s5958_s1 + $0x430] sm:$0xff] }
  0x5f   :  { %2677 = vmatpush.bf16.msra.mxu1 %v4577_v53  ;;  %v4647_v53 = vld [vmem:[%s5958_s1 + $0x470] sm:$0xff] }
  0x60   :  { %2691 = vmatpush.bf16.msra.mxu2 %v4585_v54  ;;  %v4655_v54 = vld [vmem:[%s5958_s1 + $0x4b0] sm:$0xff] }
  0x61   :  { %2705 = vmatpush.bf16.msra.mxu3 %v4593_v55  ;;  %2664 = vmatmul.bf16.vlgmr.msra.gmra.mxu0 %v3176_v4  ;;  %v4663_v55 = vld [vmem:[%s5958_s1 + $0x4f0] sm:$0xff] }
  0x62   :  { %2712 = vmatpush.bf16.msrb.mxu0 %v4608_v56  ;;  %2678 = vmatmul.bf16.vlgmr.msra.gmra.mxu1 %v3180_v6  ;;  %v4638_v56 = vld [vmem:[%s5958_s1 + $0x428] sm:$0xff]  ;;  %v4635_v4 = vld [vmem:[%s5958_s1 + $0x410] sm:$0xff] }
  0x63   :  { %2726 = vmatpush.bf16.msrb.mxu1 %v4616_v57  ;;  %2692 = vmatmul.bf16.vlgmr.msra.gmra.mxu2 %v3184_v5  ;;  %v4646_v57 = vld [vmem:[%s5958_s1 + $0x468] sm:$0xff]  ;;  %v4643_v5 = vld [vmem:[%s5958_s1 + $0x450] sm:$0xff] }
  0x64   :  { %2740 = vmatpush.bf16.msrb.mxu2 %v4624_v2  ;;  %2706 = vmatmul.bf16.vlgmr.msra.gmra.mxu3 %v3188_v7  ;;  %v4652_v2 = vld [vmem:[%s5958_s1 + $0x498] sm:$0xff]  ;;  %v4651_v6 = vld [vmem:[%s5958_s1 + $0x490] sm:$0xff] }
  0x65   :  { %2754 = vmatpush.bf16.msrb.mxu3 %v4632_v3  ;;  %v4660_v3 = vld [vmem:[%s5958_s1 + $0x4d8] sm:$0xff]  ;;  %v4659_v7 = vld [vmem:[%s5958_s1 + $0x4d0] sm:$0xff] }
  0x66   :  { %2713 = vmatpush.bf16.msrb.mxu0 %v4607_v8  ;;  %v4634_v8 = vld [vmem:[%s5958_s1 + $0x408] sm:$0xff] }
  0x67   :  { %2727 = vmatpush.bf16.msrb.mxu1 %v4615_v9  ;;  %v4642_v9 = vld [vmem:[%s5958_s1 + $0x448] sm:$0xff] }
  0x68   :  { %2741 = vmatpush.bf16.msrb.mxu2 %v4623_v10  ;;  %v4650_v10 = vld [vmem:[%s5958_s1 + $0x488] sm:$0xff] }
  0x69   :  { %2755 = vmatpush.bf16.msrb.mxu3 %v4631_v11  ;;  %v4658_v11 = vld [vmem:[%s5958_s1 + $0x4c8] sm:$0xff] }
  0x6a   :  { %2714 = vmatpush.bf16.msrb.mxu0 %v4606_v12  ;;  %v4633_v12 = vld [vmem:[%s5958_s1 + $0x400] sm:$0xff] }
  0x6b   :  { %2728 = vmatpush.bf16.msrb.mxu1 %v4614_v13  ;;  %v4641_v13 = vld [vmem:[%s5958_s1 + $0x440] sm:$0xff] }
  0x6c   :  { %2742 = vmatpush.bf16.msrb.mxu2 %v4622_v14  ;;  %v4649_v14 = vld [vmem:[%s5958_s1 + $0x480] sm:$0xff] }
  0x6d   :  { %2756 = vmatpush.bf16.msrb.mxu3 %v4630_v15  ;;  %v4657_v15 = vld [vmem:[%s5958_s1 + $0x4c0] sm:$0xff] }
  0x6e   :  { %2715 = vmatpush.bf16.msrb.mxu0 %v4605_v16  ;;  %v4672_v16 = vld [vmem:[%s5958_s1 + $0x538] sm:$0xff] }
  0x6f   :  { %2729 = vmatpush.bf16.msrb.mxu1 %v4613_v17  ;;  %v4680_v17 = vld [vmem:[%s5958_s1 + $0x578] sm:$0xff] }
  0x70   :  { %2743 = vmatpush.bf16.msrb.mxu2 %v4621_v18  ;;  %v3207_v18 = vld [vmem:[%s5959_s0 + $0x40] sm:$0xf] }
  0x71   :  { %2757 = vmatpush.bf16.msrb.mxu3 %v4629_v19  ;;  %v4495_v19 = vld [vmem:[%s5959_s0 + $0xcc] sm:$0xf0] }
  0x72   :  { %2716 = vmatpush.bf16.msrb.mxu0 %v4604_v20  ;;  %v3215_v20 = vld [vmem:[%s5959_s0 + $0x48] sm:$0xf] }
  0x73   :  { %2730 = vmatpush.bf16.msrb.mxu1 %v4612_v21  ;;  %v4496_v21 = vld [vmem:[%s5959_s0 + $0xd4] sm:$0xf0] }
  0x74   :  { %2744 = vmatpush.bf16.msrb.mxu2 %v4620_v22  ;;  %v4477_v22 = vld [vmem:[%s5959_s0 + $0x44] sm:$0xf] }
  0x75   :  { %2758 = vmatpush.bf16.msrb.mxu3 %v4628_v23  ;;  %v3209_v23 = vld [vmem:[%s5959_s0 + $0xd0] sm:$0xf0] }
  0x76   :  { %2717 = vmatpush.bf16.msrb.mxu0 %v4603_v24  ;;  %v4478_v24 = vld [vmem:[%s5959_s0 + $0x4c] sm:$0xf] }
  0x77   :  { %2731 = vmatpush.bf16.msrb.mxu1 %v4611_v25  ;;  %v3217_v25 = vld [vmem:[%s5959_s0 + $0xd8] sm:$0xf0] }
  0x78   :  { %2745 = vmatpush.bf16.msrb.mxu2 %v4619_v26  ;;  %v4688_v26 = vld [vmem:[%s5958_s1 + $0x5b8] sm:$0xff] }
  0x79   :  { %2759 = vmatpush.bf16.msrb.mxu3 %v4627_v27  ;;  %v4696_v27 = vld [vmem:[%s5958_s1 + $0x5f8] sm:$0xff] }
  0x7a   :  { %2718 = vmatpush.bf16.msrb.mxu0 %v4602_v28  ;;  %v3208_v28 = vor.u32 %v4495_v19, %v3207_v18  ;;  %v4498_v18 = vld [vmem:[%s5959_s0 + $0xe4] sm:$0xf0]  ;;  %v4479_v19 = vld [vmem:[%s5959_s0 + $0x54] sm:$0xf] }
  0x7b   :  { %2732 = vmatpush.bf16.msrb.mxu1 %v4610_v29  ;;  %v3216_v29 = vor.u32 %v4496_v21, %v3215_v20  ;;  %v3225_v20 = vld [vmem:[%s5959_s0 + $0xe0] sm:$0xf0]  ;;  %v4480_v21 = vld [vmem:[%s5959_s0 + $0x5c] sm:$0xf] }
  0x7c   :  { %2746 = vmatpush.bf16.msrb.mxu2 %v4618_v30  ;;  %v3212_v30 = vor.u32 %v4477_v22, %v3209_v23  ;;  %v3233_v22 = vld [vmem:[%s5959_s0 + $0xe8] sm:$0xf0]  ;;  %v4720_v23 = vld [vmem:[%s5958_s1 + $0x6b8] sm:$0xff] }
  0x7d   :  { %2760 = vmatpush.bf16.msrb.mxu3 %v4626_v31  ;;  %v3220_v31 = vor.u32 %v4478_v24, %v3217_v25  ;;  %v4728_v24 = vld [vmem:[%s5958_s1 + $0x6f8] sm:$0xff] }
  0x7e   :  { %2719 = vmatpush.bf16.msrb.mxu0 %v4601_v32  ;;  %v4671_v32 = vld [vmem:[%s5958_s1 + $0x530] sm:$0xff] }
  0x7f   :  { %2733 = vmatpush.bf16.msrb.mxu1 %v4609_v33  ;;  %v4679_v33 = vld [vmem:[%s5958_s1 + $0x570] sm:$0xff] }
  0x80   :  { %2747 = vmatpush.bf16.msrb.mxu2 %v4617_v34  ;;  %v4687_v34 = vld [vmem:[%s5958_s1 + $0x5b0] sm:$0xff] }
  0x81   :  { %2761 = vmatpush.bf16.msrb.mxu3 %v4625_v35  ;;  %2720 = vmatmul.bf16.vlgmr.msrb.gmra.mxu0 %v3192_v48  ;;  %v4695_v35 = vld [vmem:[%s5958_s1 + $0x5f0] sm:$0xff] }
  0x82   :  { %2768 = vmatpush.bf16.msra.mxu0 %v4640_v36  ;;  %2734 = vmatmul.bf16.vlgmr.msrb.gmra.mxu1 %v3196_v50  ;;  %v4670_v36 = vld [vmem:[%s5958_s1 + $0x528] sm:$0xff]  ;;  %v4676_v50 = vld [vmem:[%s5958_s1 + $0x558] sm:$0xff] }
  0x83   :  { %2782 = vmatpush.bf16.msra.mxu1 %v4648_v37  ;;  %2748 = vmatmul.bf16.vlgmr.msrb.gmra.mxu2 %v3200_v49  ;;  %v4678_v37 = vld [vmem:[%s5958_s1 + $0x568] sm:$0xff]  ;;  %v4668_v49 = vld [vmem:[%s5958_s1 + $0x518] sm:$0xff] }
  0x84   :  { %2796 = vmatpush.bf16.msra.mxu2 %v4656_v46  ;;  %2762 = vmatmul.bf16.vlgmr.msrb.gmra.mxu3 %v3204_v51  ;;  %v4685_v46 = vld [vmem:[%s5958_s1 + $0x5a0] sm:$0xff]  ;;  %v4684_v51 = vld [vmem:[%s5958_s1 + $0x598] sm:$0xff] }
  0x85   :  { %2810 = vmatpush.bf16.msra.mxu3 %v4664_v47  ;;  %v4693_v47 = vld [vmem:[%s5958_s1 + $0x5e0] sm:$0xff] }
  0x86   :  { %2769 = vmatpush.bf16.msra.mxu0 %v4639_v52  ;;  %v4692_v52 = vld [vmem:[%s5958_s1 + $0x5d8] sm:$0xff] }
  0x87   :  { %2783 = vmatpush.bf16.msra.mxu1 %v4647_v53 }
  0x88   :  { %2797 = vmatpush.bf16.msra.mxu2 %v4655_v54 }
  0x89   :  { %2811 = vmatpush.bf16.msra.mxu3 %v4663_v55 }
  0x8a   :  { %2770 = vmatpush.bf16.msra.mxu0 %v4638_v56 }
  0x8b   :  { %2784 = vmatpush.bf16.msra.mxu1 %v4646_v57  ;;  %v4667_v57 = vld [vmem:[%s5958_s1 + $0x510] sm:$0xff] }
  0x8c   :  { %2798 = vmatpush.bf16.msra.mxu2 %v4654_v58  ;;  %v4675_v58 = vld [vmem:[%s5958_s1 + $0x550] sm:$0xff] }
  0x8d   :  { %2812 = vmatpush.bf16.msra.mxu3 %v4662_v59 }
  0x8e   :  { %2771 = vmatpush.bf16.msra.mxu0 %v4637_v60 }
  0x8f   :  { %2785 = vmatpush.bf16.msra.mxu1 %v4645_v61  ;;  %v4683_v61 = vld [vmem:[%s5958_s1 + $0x590] sm:$0xff] }
  0x90   :  { %2799 = vmatpush.bf16.msra.mxu2 %v4653_v62  ;;  %v4691_v62 = vld [vmem:[%s5958_s1 + $0x5d0] sm:$0xff] }
  0x91   :  { %2813 = vmatpush.bf16.msra.mxu3 %v4661_v63 }
  0x92   :  { %2772 = vmatpush.bf16.msra.mxu0 %v4636_v0 }
  0x93   :  { %2786 = vmatpush.bf16.msra.mxu1 %v4644_v1  ;;  %v4666_v1 = vld [vmem:[%s5958_s1 + $0x508] sm:$0xff] }
  0x94   :  { %2800 = vmatpush.bf16.msra.mxu2 %v4652_v2  ;;  %v4674_v2 = vld [vmem:[%s5958_s1 + $0x548] sm:$0xff] }
  0x95   :  { %2814 = vmatpush.bf16.msra.mxu3 %v4660_v3  ;;  %v4682_v3 = vld [vmem:[%s5958_s1 + $0x588] sm:$0xff] }
  0x96   :  { %2773 = vmatpush.bf16.msra.mxu0 %v4635_v4  ;;  %v4690_v4 = vld [vmem:[%s5958_s1 + $0x5c8] sm:$0xff] }
  0x97   :  { %2787 = vmatpush.bf16.msra.mxu1 %v4643_v5 }
  0x98   :  { %2801 = vmatpush.bf16.msra.mxu2 %v4651_v6  ;;  %v4665_v6 = vld [vmem:[%s5958_s1 + $0x500] sm:$0xff] }
  0x99   :  { %2815 = vmatpush.bf16.msra.mxu3 %v4659_v7 }
  0x9a   :  { %2774 = vmatpush.bf16.msra.mxu0 %v4634_v8  ;;  %v4673_v8 = vld [vmem:[%s5958_s1 + $0x540] sm:$0xff] }
  0x9b   :  { %2788 = vmatpush.bf16.msra.mxu1 %v4642_v9  ;;  %v4681_v9 = vld [vmem:[%s5958_s1 + $0x580] sm:$0xff] }
  0x9c   :  { %2802 = vmatpush.bf16.msra.mxu2 %v4650_v10  ;;  %v4689_v10 = vld [vmem:[%s5958_s1 + $0x5c0] sm:$0xff] }
  0x9d   :  { %2816 = vmatpush.bf16.msra.mxu3 %v4658_v11 }
  0x9e   :  { %2775 = vmatpush.bf16.msra.mxu0 %v4633_v12  ;;  %v2553_v41 = vpop.f32.mrf.mxu0  ;;  %v4704_v12 = vld [vmem:[%s5958_s1 + $0x638] sm:$0xff] }
  0x9f   :  { %2789 = vmatpush.bf16.msra.mxu1 %v4641_v13  ;;  %v2554_v44 = vadd.f32 %v4801_v38, %v2553_v41  ;;  %v2567_v45 = vpop.f32.mrf.mxu1  ;;  %v4712_v13 = vld [vmem:[%s5958_s1 + $0x678] sm:$0xff]  ;;  %v4717_v41 = vld [vmem:[%s5958_s1 + $0x6a0] sm:$0xff] }
  0xa0   :  { %2803 = vmatpush.bf16.msra.mxu2 %v4649_v14  ;;  %v3223_v14 = vld [vmem:[%s5959_s0 + $0x50] sm:$0xf] }
  0xa1   :  { %2817 = vmatpush.bf16.msra.mxu3 %v4657_v15  ;;  %2776 = vmatmul.bf16.vlgmr.msra.gmra.mxu0 %v3208_v28  ;;  %v2568_v48 = vadd.f32 %v2567_v45, %v2554_v44  ;;  %v4497_v15 = vld [vmem:[%s5959_s0 + $0xdc] sm:$0xf0]  ;;  %v3236_v28 = vor.u32 %v4480_v21, %v3233_v22  ;;  %v4700_v45 = vld [vmem:[%s5958_s1 + $0x618] sm:$0xff]  ;;  %v4759_v21 = vld [vmem:[%s5958_s1 + $0x7f0] sm:$0xff] }
  0xa2   :  { %2824 = vmatpush.bf16.msrb.mxu0 %v4672_v16  ;;  %2790 = vmatmul.bf16.vlgmr.msra.gmra.mxu1 %v3212_v30  ;;  %v3224_v25 = vor.u32 %v4497_v15, %v3223_v14  ;;  %v4711_v30 = vld [vmem:[%s5958_s1 + $0x670] sm:$0xff]  ;;  %v4734_v22 = vld [vmem:[%s5958_s1 + $0x728] sm:$0xff] }
  0xa3   :  { %2838 = vmatpush.bf16.msrb.mxu1 %v4680_v17  ;;  %2804 = vmatmul.bf16.vlgmr.msra.gmra.mxu2 %v3216_v29  ;;  %v3231_v17 = vld [vmem:[%s5959_s0 + $0x58] sm:$0xf]  ;;  %v4703_v29 = vld [vmem:[%s5958_s1 + $0x630] sm:$0xff] }
  0xa4   :  { %2852 = vmatpush.bf16.msrb.mxu2 %v4688_v26  ;;  %2818 = vmatmul.bf16.vlgmr.msra.gmra.mxu3 %v3220_v31  ;;  %v3232_v26 = vor.u32 %v4498_v18, %v3231_v17  ;;  %v4719_v31 = vld [vmem:[%s5958_s1 + $0x6b0] sm:$0xff] }
  0xa5   :  { %2866 = vmatpush.bf16.msrb.mxu3 %v4696_v27  ;;  %v3228_v27 = vor.u32 %v4479_v19, %v3225_v20  ;;  %v4735_v18 = vld [vmem:[%s5958_s1 + $0x730] sm:$0xff] }
  0xa6   :  { %2825 = vmatpush.bf16.msrb.mxu0 %v4671_v32  ;;  %v2581_v53 = vpop.f32.mrf.mxu2  ;;  %v2555_v56 = vpop.f32.mrf.mxu0  ;;  %v4727_v32 = vld [vmem:[%s5958_s1 + $0x6f0] sm:$0xff] }
  0xa7   :  { %2839 = vmatpush.bf16.msrb.mxu1 %v4679_v33  ;;  %v2582_v54 = vadd.f32 %v2581_v53, %v2568_v48  ;;  %v2595_v55 = vpop.f32.mrf.mxu3  ;;  %v2556_v59 = vadd.f32 %v4801_v38, %v2555_v56  ;;  %v2569_v63 = vpop.f32.mrf.mxu1  ;;  %v4702_v33 = vld [vmem:[%s5958_s1 + $0x628] sm:$0xff]  ;;  %v4724_v48 = vld [vmem:[%s5958_s1 + $0x6d8] sm:$0xff]  ;;  %v4699_v53 = vld [vmem:[%s5958_s1 + $0x610] sm:$0xff] }
  0xa8   :  { %2853 = vmatpush.bf16.msrb.mxu2 %v4687_v34  ;;  %v4710_v34 = vld [vmem:[%s5958_s1 + $0x668] sm:$0xff]  ;;  %v4723_v56 = vld [vmem:[%s5958_s1 + $0x6d0] sm:$0xff] }
  0xa9   :  { %2867 = vmatpush.bf16.msrb.mxu3 %v4695_v35  ;;  %v5502_v60 = vadd.f32 %v2595_v55, %v2582_v54  ;;  %v2570_v0 = vadd.f32 %v2569_v63, %v2556_v59  ;;  %v4718_v35 = vld [vmem:[%s5958_s1 + $0x6a8] sm:$0xff]  ;;  %v4707_v54 = vld [vmem:[%s5958_s1 + $0x650] sm:$0xff]  ;;  %v4713_v63 = vld [vmem:[%s5958_s1 + $0x680] sm:$0xff] }
  0xaa   :  { %2826 = vmatpush.bf16.msrb.mxu0 %v4670_v36  ;;  %v4726_v36 = vld [vmem:[%s5958_s1 + $0x6e8] sm:$0xff]  ;;  %v4715_v55 = vld [vmem:[%s5958_s1 + $0x690] sm:$0xff] }
  0xab   :  { %2840 = vmatpush.bf16.msrb.mxu1 %v4678_v37  ;;  %v4714_v59 = vld [vmem:[%s5958_s1 + $0x688] sm:$0xff]  ;;  %v4743_v19 = vld [vmem:[%s5958_s1 + $0x770] sm:$0xff] }
  0xac   :  { %2854 = vmatpush.bf16.msrb.mxu2 %v4686_v39  ;;  %v4701_v39 = vld [vmem:[%s5958_s1 + $0x620] sm:$0xff]  ;;  %v4751_v20 = vld [vmem:[%s5958_s1 + $0x7b0] sm:$0xff] }
  0xad   :  { %2868 = vmatpush.bf16.msrb.mxu3 %v4694_v40  ;;  %v4709_v40 = vld [vmem:[%s5958_s1 + $0x660] sm:$0xff] }
  0xae   :  { %2827 = vmatpush.bf16.msrb.mxu0 %v4669_v42  ;;  %v2583_v5 = vpop.f32.mrf.mxu2  ;;  %v4725_v42 = vld [vmem:[%s5958_s1 + $0x6e0] sm:$0xff] }
  0xaf   :  { %2841 = vmatpush.bf16.msrb.mxu1 %v4677_v43  ;;  %v2584_v7 = vadd.f32 %v2583_v5, %v2570_v0  ;;  %v2597_v11 = vpop.f32.mrf.mxu3  ;;  %v4721_v0 = vld [vmem:[%s5958_s1 + $0x6c0] sm:$0xff]  ;;  %v3247_v5 = vld [vmem:[%s5959_s0 + $0x68] sm:$0xf] }
  0xb0   :  { %2855 = vmatpush.bf16.msrb.mxu2 %v4685_v46  ;;  %v4708_v46 = vld [vmem:[%s5958_s1 + $0x658] sm:$0xff] }
  0xb1   :  { %2869 = vmatpush.bf16.msrb.mxu3 %v4693_v47  ;;  %v5546_v16 = vadd.f32 %v2597_v11, %v2584_v7  ;;  %v4716_v47 = vld [vmem:[%s5958_s1 + $0x698] sm:$0xff]  ;;  %v4481_v7 = vld [vmem:[%s5959_s0 + $0x64] sm:$0xf] }
  0xb2   :  { %2828 = vmatpush.bf16.msrb.mxu0 %v4668_v49  ;;  %v4752_v11 = vld [vmem:[%s5958_s1 + $0x7b8] sm:$0xff] }
  0xb3   :  { %2842 = vmatpush.bf16.msrb.mxu1 %v4676_v50 }
  0xb4   :  { %2856 = vmatpush.bf16.msrb.mxu2 %v4684_v51 }
  0xb5   :  { %2870 = vmatpush.bf16.msrb.mxu3 %v4692_v52 }
  0xb6   :  { %2829 = vmatpush.bf16.msrb.mxu0 %v4667_v57  ;;  %v4698_v57 = vld [vmem:[%s5958_s1 + $0x608] sm:$0xff] }
  0xb7   :  { %2843 = vmatpush.bf16.msrb.mxu1 %v4675_v58  ;;  %v4706_v58 = vld [vmem:[%s5958_s1 + $0x648] sm:$0xff] }
  0xb8   :  { %2857 = vmatpush.bf16.msrb.mxu2 %v4683_v61  ;;  %v4697_v61 = vld [vmem:[%s5958_s1 + $0x600] sm:$0xff] }
  0xb9   :  { %2871 = vmatpush.bf16.msrb.mxu3 %v4691_v62  ;;  %v4705_v62 = vld [vmem:[%s5958_s1 + $0x640] sm:$0xff] }
  0xba   :  { %2830 = vmatpush.bf16.msrb.mxu0 %v4666_v1  ;;  %v4736_v1 = vld [vmem:[%s5958_s1 + $0x738] sm:$0xff] }
  0xbb   :  { %2844 = vmatpush.bf16.msrb.mxu1 %v4674_v2  ;;  %v4744_v2 = vld [vmem:[%s5958_s1 + $0x778] sm:$0xff] }
  0xbc   :  { %2858 = vmatpush.bf16.msrb.mxu2 %v4682_v3  ;;  %v3239_v3 = vld [vmem:[%s5959_s0 + $0x60] sm:$0xf] }
  0xbd   :  { %2872 = vmatpush.bf16.msrb.mxu3 %v4690_v4  ;;  %v4499_v4 = vld [vmem:[%s5959_s0 + $0xec] sm:$0xf0] }
  0xbe   :  { %2831 = vmatpush.bf16.msrb.mxu0 %v4665_v6  ;;  %v2609_v37 = vpop.f32.mrf.mxu0  ;;  %v4500_v6 = vld [vmem:[%s5959_s0 + $0xf4] sm:$0xf0] }
  0xbf   :  { %2845 = vmatpush.bf16.msrb.mxu1 %v4673_v8  ;;  %v2610_v38 = vadd.f32 %v2609_v37, %v5502_v60  ;;  %v2623_v43 = vpop.f32.mrf.mxu1  ;;  %v4722_v60 = vld [vmem:[%s5958_s1 + $0x6c8] sm:$0xff]  ;;  %v3241_v8 = vld [vmem:[%s5959_s0 + $0xf0] sm:$0xf0]  ;;  %v3248_v14 = vor.u32 %v4500_v6, %v3247_v5 }
  0xc0   :  { %2859 = vmatpush.bf16.msrb.mxu2 %v4681_v9  ;;  %v4482_v9 = vld [vmem:[%s5959_s0 + $0x6c] sm:$0xf]  ;;  %v3244_v15 = vor.u32 %v4481_v7, %v3241_v8  ;;  %v4755_v37 = vld [vmem:[%s5958_s1 + $0x7d0] sm:$0xff]  ;;  %v4765_v7 = vld [vmem:[%s5958_s1 + $0x820] sm:$0xff] }
  0xc1   :  { %2873 = vmatpush.bf16.msrb.mxu3 %v4689_v10  ;;  %2832 = vmatmul.bf16.vlgmr.msrb.gmra.mxu0 %v3224_v25  ;;  %v2624_v44 = vadd.f32 %v2623_v43, %v2610_v38  ;;  %v3249_v10 = vld [vmem:[%s5959_s0 + $0xf8] sm:$0xf0]  ;;  %v4758_v25 = vld [vmem:[%s5958_s1 + $0x7e8] sm:$0xff]  ;;  %v4737_v43 = vld [vmem:[%s5958_s1 + $0x740] sm:$0xff] }
  0xc2   :  { %2880 = vmatpush.bf16.msra.mxu0 %v4704_v12  ;;  %2846 = vmatmul.bf16.vlgmr.msrb.gmra.mxu1 %v3228_v27  ;;  %v4760_v12 = vld [vmem:[%s5958_s1 + $0x7f8] sm:$0xff]  ;;  %v3252_v17 = vor.u32 %v4482_v9, %v3249_v10  ;;  %v4741_v27 = vld [vmem:[%s5958_s1 + $0x760] sm:$0xff]  ;;  %v4730_v38 = vld [vmem:[%s5958_s1 + $0x708] sm:$0xff] }
  0xc3   :  { %2894 = vmatpush.bf16.msra.mxu1 %v4712_v13  ;;  %2860 = vmatmul.bf16.vlgmr.msrb.gmra.mxu2 %v3232_v26  ;;  %v3240_v13 = vor.u32 %v4499_v4, %v3239_v3  ;;  %v4733_v26 = vld [vmem:[%s5958_s1 + $0x720] sm:$0xff]  ;;  %v4766_v3 = vld [vmem:[%s5958_s1 + $0x828] sm:$0xff] }
  0xc4   :  { %2908 = vmatpush.bf16.msra.mxu2 %v4720_v23  ;;  %2874 = vmatmul.bf16.vlgmr.msrb.gmra.mxu3 %v3236_v28  ;;  %v4742_v23 = vld [vmem:[%s5958_s1 + $0x768] sm:$0xff]  ;;  %v4749_v28 = vld [vmem:[%s5958_s1 + $0x7a0] sm:$0xff] }
  0xc5   :  { %2922 = vmatpush.bf16.msra.mxu3 %v4728_v24  ;;  %v4750_v24 = vld [vmem:[%s5958_s1 + $0x7a8] sm:$0xff]  ;;  %v4773_v8 = vld [vmem:[%s5958_s1 + $0x860] sm:$0xff] }
  0xc6   :  { %2881 = vmatpush.bf16.msra.mxu0 %v4703_v29  ;;  %v2637_v49 = vpop.f32.mrf.mxu2  ;;  %v4757_v29 = vld [vmem:[%s5958_s1 + $0x7e0] sm:$0xff]  ;;  %v4774_v4 = vld [vmem:[%s5958_s1 + $0x868] sm:$0xff] }
  0xc7   :  { %2895 = vmatpush.bf16.msra.mxu1 %v4711_v30  ;;  %v2638_v50 = vadd.f32 %v2637_v49, %v2624_v44  ;;  %v2651_v51 = vpop.f32.mrf.mxu3  ;;  %v4732_v30 = vld [vmem:[%s5958_s1 + $0x718] sm:$0xff]  ;;  %v4745_v44 = vld [vmem:[%s5958_s1 + $0x780] sm:$0xff]  ;;  %v4782_v5 = vld [vmem:[%s5958_s1 + $0x8a8] sm:$0xff] }
  0xc8   :  { %2909 = vmatpush.bf16.msra.mxu2 %v4719_v31  ;;  %v4740_v31 = vld [vmem:[%s5958_s1 + $0x758] sm:$0xff]  ;;  %v4501_v49 = vld [vmem:[%s5959_s0 + $0xfc] sm:$0xf0]  ;;  %v4790_v6 = vld [vmem:[%s5958_s1 + $0x8e8] sm:$0xff] }
  0xc9   :  { %2923 = vmatpush.bf16.msra.mxu3 %v4727_v32  ;;  %v5621_v52 = vadd.f32 %v2651_v51, %v2638_v50  ;;  %v4748_v32 = vld [vmem:[%s5958_s1 + $0x798] sm:$0xff]  ;;  %v4502_v51 = vld [vmem:[%s5959_s0 + $0x104] sm:$0xf0]  ;;  %v4781_v9 = vld [vmem:[%s5958_s1 + $0x8a0] sm:$0xff] }
  0xca   :  { %2882 = vmatpush.bf16.msra.mxu0 %v4702_v33  ;;  %v4756_v33 = vld [vmem:[%s5958_s1 + $0x7d8] sm:$0xff]  ;;  %v4789_v10 = vld [vmem:[%s5958_s1 + $0x8e0] sm:$0xff] }
  0xcb   :  { %2896 = vmatpush.bf16.msra.mxu1 %v4710_v34  ;;  %v4731_v34 = vld [vmem:[%s5958_s1 + $0x710] sm:$0xff]  ;;  %v3263_v50 = vld [vmem:[%s5959_s0 + $0x78] sm:$0xf] }
  0xcc   :  { %2910 = vmatpush.bf16.msra.mxu2 %v4718_v35  ;;  %v4739_v35 = vld [vmem:[%s5958_s1 + $0x750] sm:$0xff] }
  0xcd   :  { %2924 = vmatpush.bf16.msra.mxu3 %v4726_v36  ;;  %v4747_v36 = vld [vmem:[%s5958_s1 + $0x790] sm:$0xff] }
  0xce   :  { %2883 = vmatpush.bf16.msra.mxu0 %v4701_v39  ;;  %v4738_v39 = vld [vmem:[%s5958_s1 + $0x748] sm:$0xff] }
  0xcf   :  { %2897 = vmatpush.bf16.msra.mxu1 %v4709_v40  ;;  %v4746_v40 = vld [vmem:[%s5958_s1 + $0x788] sm:$0xff] }
  0xd0   :  { %2911 = vmatpush.bf16.msra.mxu2 %v4717_v41  ;;  %v4754_v41 = vld [vmem:[%s5958_s1 + $0x7c8] sm:$0xff] }
  0xd1   :  { %2925 = vmatpush.bf16.msra.mxu3 %v4725_v42  ;;  %v4729_v42 = vld [vmem:[%s5958_s1 + $0x700] sm:$0xff] }
  0xd2   :  { %2884 = vmatpush.bf16.msra.mxu0 %v4700_v45  ;;  %v4753_v45 = vld [vmem:[%s5958_s1 + $0x7c0] sm:$0xff] }
  0xd3   :  { %2898 = vmatpush.bf16.msra.mxu1 %v4708_v46  ;;  %v4768_v46 = vld [vmem:[%s5958_s1 + $0x838] sm:$0xff] }
  0xd4   :  { %2912 = vmatpush.bf16.msra.mxu2 %v4716_v47  ;;  %v4776_v47 = vld [vmem:[%s5958_s1 + $0x878] sm:$0xff] }
  0xd5   :  { %2926 = vmatpush.bf16.msra.mxu3 %v4724_v48  ;;  %v3255_v48 = vld [vmem:[%s5959_s0 + $0x70] sm:$0xf] }
  0xd6   :  { %2885 = vmatpush.bf16.msra.mxu0 %v4699_v53  ;;  %v4483_v53 = vld [vmem:[%s5959_s0 + $0x74] sm:$0xf] }
  0xd7   :  { %2899 = vmatpush.bf16.msra.mxu1 %v4707_v54  ;;  %v3257_v54 = vld [vmem:[%s5959_s0 + $0x100] sm:$0xf0] }
  0xd8   :  { %2913 = vmatpush.bf16.msra.mxu2 %v4715_v55  ;;  %v4484_v55 = vld [vmem:[%s5959_s0 + $0x7c] sm:$0xf] }
  0xd9   :  { %2927 = vmatpush.bf16.msra.mxu3 %v4723_v56  ;;  %v3265_v56 = vld [vmem:[%s5959_s0 + $0x108] sm:$0xf0] }
  0xda   :  { %2886 = vmatpush.bf16.msra.mxu0 %v4698_v57  ;;  %v4784_v57 = vld [vmem:[%s5958_s1 + $0x8b8] sm:$0xff] }
  0xdb   :  { %2900 = vmatpush.bf16.msra.mxu1 %v4706_v58  ;;  %v4792_v58 = vld [vmem:[%s5958_s1 + $0x8f8] sm:$0xff] }
  0xdc   :  { %2914 = vmatpush.bf16.msra.mxu2 %v4714_v59  ;;  %v3256_v59 = vor.u32 %v4501_v49, %v3255_v48 }
  0xdd   :  { %2928 = vmatpush.bf16.msra.mxu3 %v4722_v60  ;;  %v3264_v60 = vor.u32 %v4502_v51, %v3263_v50 }
  0xde   :  { %2887 = vmatpush.bf16.msra.mxu0 %v4697_v61  ;;  %v3260_v61 = vor.u32 %v4483_v53, %v3257_v54 }
  0xdf   :  { %2901 = vmatpush.bf16.msra.mxu1 %v4705_v62  ;;  %v3268_v62 = vor.u32 %v4484_v55, %v3265_v56 }
  0xe0   :  { %2915 = vmatpush.bf16.msra.mxu2 %v4713_v63  ;;  %v4767_v63 = vld [vmem:[%s5958_s1 + $0x830] sm:$0xff] }
  0xe1   :  { %2929 = vmatpush.bf16.msra.mxu3 %v4721_v0  ;;  %2888 = vmatmul.bf16.vlgmr.msra.gmra.mxu0 %v3240_v13  ;;  %v4775_v0 = vld [vmem:[%s5958_s1 + $0x870] sm:$0xff]  ;;  %v4780_v13 = vld [vmem:[%s5958_s1 + $0x898] sm:$0xff] }
  0xe2   :  { %2936 = vmatpush.bf16.msrb.mxu0 %v4736_v1  ;;  %2902 = vmatmul.bf16.vlgmr.msra.gmra.mxu1 %v3244_v15  ;;  %v4783_v1 = vld [vmem:[%s5958_s1 + $0x8b0] sm:$0xff] }
  0xe3   :  { %2950 = vmatpush.bf16.msrb.mxu1 %v4744_v2  ;;  %2916 = vmatmul.bf16.vlgmr.msra.gmra.mxu2 %v3248_v14  ;;  %v4791_v2 = vld [vmem:[%s5958_s1 + $0x8f0] sm:$0xff]  ;;  %v4788_v14 = vld [vmem:[%s5958_s1 + $0x8d8] sm:$0xff] }
  0xe4   :  { %2964 = vmatpush.bf16.msrb.mxu2 %v4752_v11  ;;  %2930 = vmatmul.bf16.vlgmr.msra.gmra.mxu3 %v3252_v17  ;;  %v4764_v11 = vld [vmem:[%s5958_s1 + $0x818] sm:$0xff]  ;;  %v4763_v15 = vld [vmem:[%s5958_s1 + $0x810] sm:$0xff] }
  0xe5   :  { %2978 = vmatpush.bf16.msrb.mxu3 %v4760_v12  ;;  %v4772_v12 = vld [vmem:[%s5958_s1 + $0x858] sm:$0xff]  ;;  %v4771_v17 = vld [vmem:[%s5958_s1 + $0x850] sm:$0xff] }
  0xe6   :  { %2937 = vmatpush.bf16.msrb.mxu0 %v4735_v18  ;;  %v4779_v18 = vld [vmem:[%s5958_s1 + $0x890] sm:$0xff] }
  0xe7   :  { %2951 = vmatpush.bf16.msrb.mxu1 %v4743_v19  ;;  %v4787_v19 = vld [vmem:[%s5958_s1 + $0x8d0] sm:$0xff] }
  0xe8   :  { %2965 = vmatpush.bf16.msrb.mxu2 %v4751_v20  ;;  %v4762_v20 = vld [vmem:[%s5958_s1 + $0x808] sm:$0xff] }
  0xe9   :  { %2979 = vmatpush.bf16.msrb.mxu3 %v4759_v21  ;;  %v4770_v21 = vld [vmem:[%s5958_s1 + $0x848] sm:$0xff] }
  0xea   :  { %2938 = vmatpush.bf16.msrb.mxu0 %v4734_v22  ;;  %v4778_v22 = vld [vmem:[%s5958_s1 + $0x888] sm:$0xff] }
  0xeb   :  { %2952 = vmatpush.bf16.msrb.mxu1 %v4742_v23  ;;  %v4786_v23 = vld [vmem:[%s5958_s1 + $0x8c8] sm:$0xff] }
  0xec   :  { %2966 = vmatpush.bf16.msrb.mxu2 %v4750_v24  ;;  %v4761_v24 = vld [vmem:[%s5958_s1 + $0x800] sm:$0xff] }
  0xed   :  { %2980 = vmatpush.bf16.msrb.mxu3 %v4758_v25  ;;  %v4769_v25 = vld [vmem:[%s5958_s1 + $0x840] sm:$0xff] }
  0xee   :  { %2939 = vmatpush.bf16.msrb.mxu0 %v4733_v26  ;;  %v4777_v26 = vld [vmem:[%s5958_s1 + $0x880] sm:$0xff] }
  0xef   :  { %2953 = vmatpush.bf16.msrb.mxu1 %v4741_v27  ;;  %v4785_v27 = vld [vmem:[%s5958_s1 + $0x8c0] sm:$0xff] }
  0xf0   :  { %2967 = vmatpush.bf16.msrb.mxu2 %v4749_v28  ;;  %v3271_v28 = vld [vmem:[%s5959_s0 + $0x80] sm:$0xf] }
  0xf1   :  { %2981 = vmatpush.bf16.msrb.mxu3 %v4757_v29  ;;  %v4503_v29 = vld [vmem:[%s5959_s0 + $0x10c] sm:$0xf0] }
  0xf2   :  { %2940 = vmatpush.bf16.msrb.mxu0 %v4732_v30  ;;  %v4485_v30 = vld [vmem:[%s5959_s0 + $0x84] sm:$0xf] }
  0xf3   :  { %2954 = vmatpush.bf16.msrb.mxu1 %v4740_v31  ;;  %v3273_v31 = vld [vmem:[%s5959_s0 + $0x110] sm:$0xf0] }
  0xf4   :  { %2968 = vmatpush.bf16.msrb.mxu2 %v4748_v32  ;;  %v3279_v32 = vld [vmem:[%s5959_s0 + $0x88] sm:$0xf] }
  0xf5   :  { %2982 = vmatpush.bf16.msrb.mxu3 %v4756_v33  ;;  %v4504_v33 = vld [vmem:[%s5959_s0 + $0x114] sm:$0xf0] }
  0xf6   :  { %2941 = vmatpush.bf16.msrb.mxu0 %v4731_v34  ;;  %v4486_v34 = vld [vmem:[%s5959_s0 + $0x8c] sm:$0xf] }
  0xf7   :  { %2955 = vmatpush.bf16.msrb.mxu1 %v4739_v35  ;;  %v3281_v35 = vld [vmem:[%s5959_s0 + $0x118] sm:$0xf0] }
  0xf8   :  { %2969 = vmatpush.bf16.msrb.mxu2 %v4747_v36  ;;  %v3272_v36 = vor.u32 %v4503_v29, %v3271_v28  ;;  %v4800_v28 = vld [vmem:[%s5962_s3 + $0x38] sm:$0xff] }
  0xf9   :  { %2983 = vmatpush.bf16.msrb.mxu3 %v4755_v37  ;;  %v3276_v37 = vor.u32 %v4485_v30, %v3273_v31  ;;  %v4799_v30 = vld [vmem:[%s5962_s3 + $0x30] sm:$0xff] }
  0xfa   :  { %2942 = vmatpush.bf16.msrb.mxu0 %v4730_v38  ;;  %v3280_v38 = vor.u32 %v4504_v33, %v3279_v32 }
  0xfb   :  { %2956 = vmatpush.bf16.msrb.mxu1 %v4738_v39  ;;  %v3284_v39 = vor.u32 %v4486_v34, %v3281_v35 }
  0xfc   :  { %2970 = vmatpush.bf16.msrb.mxu2 %v4746_v40  ;;  %v2611_v40 = vpop.f32.mrf.mxu0 }
  0xfd   :  { %2984 = vmatpush.bf16.msrb.mxu3 %v4754_v41  ;;  %v2625_v41 = vpop.f32.mrf.mxu1 }
  0xfe   :  { %2943 = vmatpush.bf16.msrb.mxu0 %v4729_v42  ;;  %v2639_v42 = vpop.f32.mrf.mxu2 }
  0xff   :  { %2957 = vmatpush.bf16.msrb.mxu1 %v4737_v43  ;;  %v2653_v43 = vpop.f32.mrf.mxu3 }
 0x100   :  { %2971 = vmatpush.bf16.msrb.mxu2 %v4745_v44 }
 0x101   :  { %2985 = vmatpush.bf16.msrb.mxu3 %v4753_v45  ;;  %2944 = vmatmul.bf16.vlgmr.msrb.gmra.mxu0 %v3256_v59  ;;  %v2612_v59 = vadd.f32 %v2611_v40, %v5546_v16 }
 0x102   :  { %2992 = vmatpush.bf16.msra.mxu0 %v4768_v46  ;;  %2958 = vmatmul.bf16.vlgmr.msrb.gmra.mxu1 %v3260_v61 }
 0x103   :  { %3006 = vmatpush.bf16.msra.mxu1 %v4776_v47  ;;  %2972 = vmatmul.bf16.vlgmr.msrb.gmra.mxu2 %v3264_v60 }
 0x104   :  { %3020 = vmatpush.bf16.msra.mxu2 %v4784_v57  ;;  %2986 = vmatmul.bf16.vlgmr.msrb.gmra.mxu3 %v3268_v62  ;;  %v2665_v44 = vpop.f32.mrf.mxu0 }
 0x105   :  { %3034 = vmatpush.bf16.msra.mxu3 %v4792_v58  ;;  %v2679_v45 = vpop.f32.mrf.mxu1 }
 0x106   :  { %2993 = vmatpush.bf16.msra.mxu0 %v4767_v63  ;;  %v2693_v46 = vpop.f32.mrf.mxu2  ;;  %v2626_v63 = vadd.f32 %v2625_v41, %v2612_v59  ;;  %v4798_v41 = vld [vmem:[%s5962_s3 + $0x28] sm:$0xff] }
 0x107   :  { %3007 = vmatpush.bf16.msra.mxu1 %v4775_v0  ;;  %v2707_v47 = vpop.f32.mrf.mxu3 }
 0x108   :  { %3021 = vmatpush.bf16.msra.mxu2 %v4783_v1  ;;  %v2640_v1 = vadd.f32 %v2639_v42, %v2626_v63 }
 0x109   :  { %3035 = vmatpush.bf16.msra.mxu3 %v4791_v2  ;;  %v2666_v2 = vadd.f32 %v2665_v44, %v5621_v52 }
 0x10a   :  { %2994 = vmatpush.bf16.msra.mxu0 %v4766_v3 }
 0x10b   :  { %3008 = vmatpush.bf16.msra.mxu1 %v4774_v4 }
 0x10c   :  { %3022 = vmatpush.bf16.msra.mxu2 %v4782_v5  ;;  %v2667_v48 = vpop.f32.mrf.mxu0  ;;  %v2654_v5 = vadd.f32 %v2653_v43, %v2640_v1 }
 0x10d   :  { %3036 = vmatpush.bf16.msra.mxu3 %v4790_v6  ;;  %v2681_v49 = vpop.f32.mrf.mxu1  ;;  %v2680_v6 = vadd.f32 %v2679_v45, %v2666_v2 }
 0x10e   :  { %2995 = vmatpush.bf16.msra.mxu0 %v4765_v7  ;;  %v2695_v50 = vpop.f32.mrf.mxu2  ;;  %v2668_v7 = vadd.f32 %v2667_v48, %v2654_v5  ;;  %v4793_v5 = vld [vmem:[%s5962_s3] sm:$0xff] }
 0x10f   :  { %3009 = vmatpush.bf16.msra.mxu1 %v4773_v8  ;;  %v2709_v51 = vpop.f32.mrf.mxu3 }
 0x110   :  { %3023 = vmatpush.bf16.msra.mxu2 %v4781_v9  ;;  %v2694_v9 = vadd.f32 %v2693_v46, %v2680_v6 }
 0x111   :  { %3037 = vmatpush.bf16.msra.mxu3 %v4789_v10 }
 0x112   :  { %2996 = vmatpush.bf16.msra.mxu0 %v4764_v11  ;;  %v2682_v11 = vadd.f32 %v2681_v49, %v2668_v7 }
 0x113   :  { %3010 = vmatpush.bf16.msra.mxu1 %v4772_v12  ;;  %v2708_v12 = vadd.f32 %v2707_v47, %v2694_v9  ;;  %v4797_v47 = vld [vmem:[%s5962_s3 + $0x20] sm:$0xff] }
 0x114   :  { %3024 = vmatpush.bf16.msra.mxu2 %v4780_v13  ;;  %v2721_v53 = vpop.f32.mrf.mxu0  ;;  %v2696_v13 = vadd.f32 %v2695_v50, %v2682_v11 }
 0x115   :  { %3038 = vmatpush.bf16.msra.mxu3 %v4788_v14  ;;  %v2735_v54 = vpop.f32.mrf.mxu1 }
 0x116   :  { %2997 = vmatpush.bf16.msra.mxu0 %v4763_v15  ;;  %v2749_v55 = vpop.f32.mrf.mxu2  ;;  %v2722_v15 = vadd.f32 %v2721_v53, %v2708_v12  ;;  %v4796_v53 = vld [vmem:[%s5962_s3 + $0x18] sm:$0xff] }
 0x117   :  { %3011 = vmatpush.bf16.msra.mxu1 %v4771_v17  ;;  %v2763_v56 = vpop.f32.mrf.mxu3 }
 0x118   :  { %3025 = vmatpush.bf16.msra.mxu2 %v4779_v18  ;;  %v2710_v18 = vadd.f32 %v2709_v51, %v2696_v13 }
 0x119   :  { %3039 = vmatpush.bf16.msra.mxu3 %v4787_v19 }
 0x11a   :  { %2998 = vmatpush.bf16.msra.mxu0 %v4762_v20  ;;  %v2736_v20 = vadd.f32 %v2735_v54, %v2722_v15 }
 0x11b   :  { %3012 = vmatpush.bf16.msra.mxu1 %v4770_v21 }
 0x11c   :  { %3026 = vmatpush.bf16.msra.mxu2 %v4778_v22  ;;  %v2723_v57 = vpop.f32.mrf.mxu0  ;;  %v2750_v52 = vadd.f32 %v2749_v55, %v2736_v20 }
 0x11d   :  { %3040 = vmatpush.bf16.msra.mxu3 %v4786_v23  ;;  %v2737_v58 = vpop.f32.mrf.mxu1  ;;  %v2724_v21 = vadd.f32 %v2723_v57, %v2710_v18  ;;  %v4795_v57 = vld [vmem:[%s5962_s3 + $0x10] sm:$0xff] }
 0x11e   :  { %2999 = vmatpush.bf16.msra.mxu0 %v4761_v24  ;;  %v2751_v60 = vpop.f32.mrf.mxu2 }
 0x11f   :  { %3013 = vmatpush.bf16.msra.mxu1 %v4769_v25  ;;  %v2765_v61 = vpop.f32.mrf.mxu3  ;;  %v2738_v24 = vadd.f32 %v2737_v58, %v2724_v21  ;;  %v2764_v25 = vadd.f32 %v2763_v56, %v2750_v52 }
 0x120   :  { %3027 = vmatpush.bf16.msra.mxu2 %v4777_v26 }
 0x121   :  { %3041 = vmatpush.bf16.msra.mxu3 %v4785_v27  ;;  %3000 = vmatmul.bf16.vlgmr.msra.gmra.mxu0 %v3272_v36  ;;  %v2752_v26 = vadd.f32 %v2751_v60, %v2738_v24 }
 0x122   :  { %3014 = vmatmul.bf16.vlgmr.msra.gmra.mxu1 %v3276_v37  ;;  %3119 = vmatpush.bf16.msrb.mxu0 %v4800_v28 }
 0x123   :  { %3028 = vmatmul.bf16.vlgmr.msra.gmra.mxu2 %v3280_v38  ;;  %v2766_v32 = vadd.f32 %v2765_v61, %v2752_v26 }
 0x124   :  { %3042 = vmatmul.bf16.vlgmr.msra.gmra.mxu3 %v3284_v39  ;;  %v2777_v62 = vpop.f32.mrf.mxu0 }
 0x125   :  { %v2791_v0 = vpop.f32.mrf.mxu1  ;;  %v2778_v29 = vadd.f32 %v2777_v62, %v2764_v25 }
 0x126   :  { %v2805_v3 = vpop.f32.mrf.mxu2  ;;  %3120 = vmatpush.bf16.msrb.mxu0 %v4799_v30 }
 0x127   :  { %v2819_v4 = vpop.f32.mrf.mxu3  ;;  %v2792_v33 = vadd.f32 %v2791_v0, %v2778_v29  ;;  %v4794_v0 = vld [vmem:[%s5962_s3 + $0x8] sm:$0xff] }
 0x129   :  { %v2806_v37 = vadd.f32 %v2805_v3, %v2792_v33 }
 0x12a   :  { %3121 = vmatpush.bf16.msrb.mxu0 %v4798_v41 }
 0x12b   :  { %v2820_v42 = vadd.f32 %v2819_v4, %v2806_v37 }
 0x12c   :  { %v2779_v8 = vpop.f32.mrf.mxu0 }
 0x12d   :  { %v2793_v10 = vpop.f32.mrf.mxu1  ;;  %v2780_v34 = vadd.f32 %v2779_v8, %v2766_v32 }
 0x12e   :  { %v2807_v16 = vpop.f32.mrf.mxu2  ;;  %3122 = vmatpush.bf16.msrb.mxu0 %v4797_v47 }
 0x12f   :  { %v2821_v14 = vpop.f32.mrf.mxu3  ;;  %v2794_v39 = vadd.f32 %v2793_v10, %v2780_v34 }
 0x131   :  { %v2808_v43 = vadd.f32 %v2807_v16, %v2794_v39 }
 0x132   :  { %3123 = vmatpush.bf16.msrb.mxu0 %v4796_v53 }
 0x133   :  { %v2822_v48 = vadd.f32 %v2821_v14, %v2808_v43  ;;  %v4802_v43 = vld [vmem:[%s5961_s4] ss:$0 sm:$0xff] }
 0x136   :  { %3124 = vmatpush.bf16.msrb.mxu0 %v4795_v57 }
 0x13a   :  { %3125 = vmatpush.bf16.msrb.mxu0 %v4794_v0 }
 0x13e   :  { %v2833_v17 = vpop.f32.mrf.mxu0  ;;  %3126 = vmatpush.bf16.msrb.mxu0 %v4793_v5 }
 0x13f   :  { %v2847_v19 = vpop.f32.mrf.mxu1  ;;  %v2834_v44 = vadd.f32 %v2833_v17, %v2820_v42 }
 0x141   :  { %v2848_v49 = vadd.f32 %v2847_v19, %v2834_v44 }
 0x146   :  { %v2861_v22 = vpop.f32.mrf.mxu2  ;;  %v2835_v27 = vpop.f32.mrf.mxu0 }
 0x147   :  { %v2875_v23 = vpop.f32.mrf.mxu3  ;;  %v2849_v31 = vpop.f32.mrf.mxu1  ;;  %v2836_v50 = vadd.f32 %v2835_v27, %v2822_v48  ;;  %v2862_v54 = vadd.f32 %v2861_v22, %v2848_v49 }
 0x149   :  { %v2850_v56 = vadd.f32 %v2849_v31, %v2836_v50  ;;  %v2876_v58 = vadd.f32 %v2875_v23, %v2862_v54 }
 0x14e   :  { %v2863_v35 = vpop.f32.mrf.mxu2 }
 0x14f   :  { %v2877_v36 = vpop.f32.mrf.mxu3  ;;  %v2864_v59 = vadd.f32 %v2863_v35, %v2850_v56 }
 0x151   :  { %v2878_v1 = vadd.f32 %v2877_v36, %v2864_v59 }
 0x15e   :  { %v2889_v38 = vpop.f32.mrf.mxu0 }
 0x15f   :  { %v2903_v40 = vpop.f32.mrf.mxu1  ;;  %v2890_v62 = vadd.f32 %v2889_v38, %v2876_v58 }
 0x161   :  { %v2904_v3 = vadd.f32 %v2903_v40, %v2890_v62 }
 0x166   :  { %v2917_v45 = vpop.f32.mrf.mxu2  ;;  %v2891_v51 = vpop.f32.mrf.mxu0 }
 0x167   :  { %v2931_v46 = vpop.f32.mrf.mxu3  ;;  %v2905_v55 = vpop.f32.mrf.mxu1  ;;  %v2892_v4 = vadd.f32 %v2891_v51, %v2878_v1  ;;  %v2918_v6 = vadd.f32 %v2917_v45, %v2904_v3 }
 0x169   :  { %v2906_v9 = vadd.f32 %v2905_v55, %v2892_v4  ;;  %v2932_v10 = vadd.f32 %v2931_v46, %v2918_v6 }
 0x16e   :  { %v2919_v60 = vpop.f32.mrf.mxu2 }
 0x16f   :  { %v2933_v61 = vpop.f32.mrf.mxu3  ;;  %v2920_v11 = vadd.f32 %v2919_v60, %v2906_v9 }
 0x171   :  { %v2934_v14 = vadd.f32 %v2933_v61, %v2920_v11 }
 0x17e   :  { %v2945_v63 = vpop.f32.mrf.mxu0 }
 0x17f   :  { %v2959_v2 = vpop.f32.mrf.mxu1  ;;  %v2946_v13 = vadd.f32 %v2945_v63, %v2932_v10 }
 0x181   :  { %v2960_v15 = vadd.f32 %v2959_v2, %v2946_v13 }
 0x186   :  { %v2973_v7 = vpop.f32.mrf.mxu2  ;;  %v2947_v12 = vpop.f32.mrf.mxu0 }
 0x187   :  { %v2987_v8 = vpop.f32.mrf.mxu3  ;;  %v2961_v16 = vpop.f32.mrf.mxu1  ;;  %v2948_v17 = vadd.f32 %v2947_v12, %v2934_v14  ;;  %v2974_v20 = vadd.f32 %v2973_v7, %v2960_v15 }
 0x189   :  { %v2962_v52 = vadd.f32 %v2961_v16, %v2948_v17  ;;  %v2988_v23 = vadd.f32 %v2987_v8, %v2974_v20 }
 0x18e   :  { %v2975_v18 = vpop.f32.mrf.mxu2 }
 0x18f   :  { %v2989_v19 = vpop.f32.mrf.mxu3  ;;  %v2976_v24 = vadd.f32 %v2975_v18, %v2962_v52 }
 0x191   :  { %v2990_v28 = vadd.f32 %v2989_v19, %v2976_v24 }
 0x19e   :  { %v3001_v21 = vpop.f32.mrf.mxu0 }
 0x19f   :  { %v3015_v22 = vpop.f32.mrf.mxu1  ;;  %v3002_v25 = vadd.f32 %v3001_v21, %v2988_v23 }
 0x1a1   :  { %v3016_v30 = vadd.f32 %v3015_v22, %v3002_v25 }
 0x1a6   :  { %v3029_v26 = vpop.f32.mrf.mxu2  ;;  %v3003_v29 = vpop.f32.mrf.mxu0 }
 0x1a7   :  { %v3043_v27 = vpop.f32.mrf.mxu3  ;;  %v3004_v31 = vadd.f32 %v3003_v29, %v2990_v28  ;;  %v3030_v32 = vadd.f32 %v3029_v26, %v3016_v30  ;;  %v3017_v33 = vpop.f32.mrf.mxu1 }
 0x1a9   :  { %v3018_v34 = vadd.f32 %v3017_v33, %v3004_v31  ;;  %v3044_v36 = vadd.f32 %v3043_v27, %v3030_v32 }
 0x1ab   :  { %v3048_v40 = vmax.f32 %v3044_v36, 0.0 }
 0x1ae   :  { %v3031_v35 = vpop.f32.mrf.mxu2 }
 0x1af   :  { %v3032_v37 = vadd.f32 %v3031_v35, %v3018_v34  ;;  %v3045_v38 = vpop.f32.mrf.mxu3 }
 0x1b1   :  { %v3046_v39 = vadd.f32 %v3045_v38, %v3032_v37 }
 0x1b3   :  { %v3049_v41 = vmax.f32 %v3046_v39, 0.0 }
 0x1b5   :  { %v3050_v42 = vpack.c.bf16 %v3049_v41, %v3048_v40 }
 0x1b7   :  { %3127 = vmatmul.bf16.vlgmr.msrb.gmra.mxu0 %v3050_v42 }
 0x234   :  { %v3128_v44 = vpop.f32.mrf.mxu0 }
 0x235   :  { %v3129_v45 = vadd.f32 %v4802_v43, %v3128_v44 }
 0x237   :  { %v3133_v46 = vmax.f32 %v3129_v45, 0.0 }
 0x239   :  { %3135 = vst [vmem:[%s5963_s5] sm:$0xff] %v3133_v46 }
 0x23c   :  { %v3130_v47 = vpop.f32.mrf.mxu0 }
 0x23d   :  { %v3131_v48 = vadd.f32 %v4802_v43, %v3130_v47 }
 0x23f   :  { %v3134_v49 = vmax.f32 %v3131_v48, 0.0 }
 0x241   :  { %3136 = vst [vmem:[%s5963_s5 + $0x8] sm:$0xff] %v3134_v49 }

</bundles_post_ra>
